<compile_context>
chip_gen: v7x
topology: tpu7x:2x2x1
jax: 0.10.0
libtpu: 0.0.40
codegen_flags: <defaults>
</compile_context>

<pallas_src>
import math
import jax
import jax.numpy as jnp
from jax.experimental import pallas as pl
from jax.experimental.pallas import tpu as pltpu


def _vae_attn_flash_kernel(xq_ref, xk_ref, scale_ref, shift_ref,
                           wq_ref, bq_ref, wkv_ref, bkv_ref, wo_ref, bo_ref,
                           o_ref,
                           q_scr, m_scr, l_scr, acc_scr):
    # xq_ref: (1, TQ, C) f32  raw q-side tokens (also the residual)
    # xk_ref: (1, TK, C) f32  raw kv-side tokens
    # scale_ref/shift_ref: (1, 1, C) f32   folded GroupNorm (gamma*inv_std, beta-mean*gamma*inv_std)
    # wq_ref: (C, C) bf16 (pre-scaled by 1/sqrt(C)), bq_ref: (1, C) f32 (pre-scaled)
    # wkv_ref: (C, 2C) bf16 fused K|V weights, bkv_ref: (1, 2C) f32
    # wo_ref: (C, C) bf16, bo_ref: (1, C) f32
    ki = pl.program_id(2)
    c = xq_ref.shape[2]

    scale = scale_ref[0]                                   # (1, C)
    shift = shift_ref[0]                                   # (1, C)

    @pl.when(ki == 0)
    def _init():
        # GroupNorm (folded) + Q projection, once per q tile.
        xq_n = (xq_ref[0] * scale + shift).astype(jnp.bfloat16)
        q = jnp.dot(xq_n, wq_ref[...],
                    preferred_element_type=jnp.float32) + bq_ref[...]
        q_scr[...] = q.astype(jnp.bfloat16)
        m_scr[...] = jnp.full_like(m_scr, -jnp.inf)
        l_scr[...] = jnp.zeros_like(l_scr)
        acc_scr[...] = jnp.zeros_like(acc_scr)

    # GroupNorm (folded) + fused K/V projection for this kv tile.
    xk_n = (xk_ref[0] * scale + shift).astype(jnp.bfloat16)
    kv = jnp.dot(xk_n, wkv_ref[...],
                 preferred_element_type=jnp.float32) + bkv_ref[...]   # (TK, 2C) f32
    k = kv[:, :c].astype(jnp.bfloat16)
    v = kv[:, c:].astype(jnp.bfloat16)

    # scores for this (q_tile, kv_tile) block; 1/sqrt(d_head) already folded into Wq/bq.
    s = jax.lax.dot_general(q_scr[...], k, (((1,), (1,)), ((), ())),
                            preferred_element_type=jnp.float32)       # (TQ, TK) f32

    # online softmax update (all f32)
    m_prev = m_scr[...]
    m_new = jnp.maximum(m_prev, jnp.max(s, axis=-1, keepdims=True))
    alpha = jnp.exp(m_prev - m_new)
    p = jnp.exp(s - m_new)
    l_scr[...] = alpha * l_scr[...] + jnp.sum(p, axis=-1, keepdims=True)
    acc_scr[...] = alpha * acc_scr[...] + jnp.dot(
        p.astype(jnp.bfloat16), v, preferred_element_type=jnp.float32)
    m_scr[...] = m_new

    @pl.when(ki == pl.num_programs(2) - 1)
    def _finalize():
        out = acc_scr[...] * pl.reciprocal(l_scr[...], approx=True)    # EUP reciprocal
        out = jnp.dot(out.astype(jnp.bfloat16), wo_ref[...],
                      preferred_element_type=jnp.float32) + bo_ref[...]
        o_ref[0] = out + xq_ref[0]                                     # residual add in f32


def vae_attention_block(x, params, num_groups, *, tq=128, tk=128):
    """x: (N, C, H, W) float32.  Returns (N, C, H, W).  Matches VAE_AttentionBlock.forward."""
    n, c, h, w = x.shape
    hw = h * w
    g = num_groups
    assert c % g == 0

    # tile sizes: multiples of 8 (sublane), capped per v7x VMEM budget guidance.
    tq = min(tq, hw, 512)
    tk = min(tk, hw, 1024)
    assert hw % tq == 0 and hw % tk == 0, "H*W must be divisible by the chosen tile sizes"
    assert tq % 8 == 0 and tk % 8 == 0

    x = x.astype(jnp.float32)

    # ---- GroupNorm stats in the wrapper (tiny two-pass reduction, no E[x^2]-E[x]^2 cancel) ----
    xg = x.reshape(n, g, (c // g) * hw)
    gmean = jnp.mean(xg, axis=-1)                                   # (N, G)
    gvar = jnp.mean((xg - gmean[:, :, None]) ** 2, axis=-1)         # (N, G) biased (matches GN)
    inv = jax.lax.rsqrt(gvar + 1e-5)
    mean_c = jnp.repeat(gmean, c // g, axis=1)                      # (N, C)
    inv_c = jnp.repeat(inv, c // g, axis=1)                         # (N, C)
    gamma = params["gamma"].astype(jnp.float32)
    beta = params["beta"].astype(jnp.float32)
    scale_c = (gamma[None, :] * inv_c).reshape(n, 1, c)             # xn = x*scale + shift
    shift_c = (beta[None, :] - mean_c * gamma[None, :] * inv_c).reshape(n, 1, c)

    # ---- weights: pre-transpose, fuse K|V, fold softmax scale into Wq/bq, cast MXU operands bf16
    sm_scale = 1.0 / math.sqrt(c)                                   # n_heads = 1 -> d_head = C
    w_in = params["w_in"].astype(jnp.float32)                       # (3C, C) PyTorch Linear layout
    b_in = params["b_in"].astype(jnp.float32)                       # (3C,)
    wq_t = (w_in[0:c].T * sm_scale).astype(jnp.bfloat16)            # (C, C)
    bq = (b_in[0:c] * sm_scale).reshape(1, c)
    wkv_t = jnp.concatenate([w_in[c:2 * c].T, w_in[2 * c:3 * c].T], axis=1).astype(jnp.bfloat16)
    bkv = jnp.concatenate([b_in[c:2 * c], b_in[2 * c:3 * c]]).reshape(1, 2 * c)
    wo_t = params["w_out"].astype(jnp.float32).T.astype(jnp.bfloat16)
    bo = params["b_out"].astype(jnp.float32).reshape(1, c)

    # NCHW -> (N, HW, C) token-major (lane-dense channel axis)
    x_seq = jnp.transpose(x.reshape(n, c, hw), (0, 2, 1))

    def const2d(arr):
        # NOTE: weights/biases are grid-invariant; pipeline_mode=pl.Buffered(1) would halve
        # their VMEM footprint, kept at the default here for maximum lowering compatibility.
        return pl.BlockSpec(arr.shape, lambda b, qi, ki: (0, 0))

    grid = (n, hw // tq, hw // tk)

    # advisory cost estimate so XLA can overlap the wrapper layout transposes with the kernel
    flops = n * (2 * hw * c * 3 * c + 4 * hw * hw * c + 2 * hw * c * c)
    cost = pl.CostEstimate(
        flops=int(flops),
        transcendentals=int(n * hw * hw),
        bytes_accessed=int(4 * 3 * n * hw * c + 2 * 5 * c * c),
    )

    out_seq = pl.pallas_call(
        _vae_attn_flash_kernel,
        out_shape=jax.ShapeDtypeStruct((n, hw, c), jnp.float32),
        grid_spec=pltpu.PrefetchScalarGridSpec(
            num_scalar_prefetch=0,
            grid=grid,
            in_specs=[
                pl.BlockSpec((1, tq, c), lambda b, qi, ki: (b, qi, 0)),   # x (q-side / residual)
                pl.BlockSpec((1, tk, c), lambda b, qi, ki: (b, ki, 0)),   # x (kv-side)
                pl.BlockSpec((1, 1, c), lambda b, qi, ki: (b, 0, 0)),     # GN scale
                pl.BlockSpec((1, 1, c), lambda b, qi, ki: (b, 0, 0)),     # GN shift
                const2d(wq_t), const2d(bq),
                const2d(wkv_t), const2d(bkv),
                const2d(wo_t), const2d(bo),
            ],
            out_specs=pl.BlockSpec((1, tq, c), lambda b, qi, ki: (b, qi, 0)),
            scratch_shapes=[
                pltpu.VMEM((tq, c), jnp.bfloat16),    # cached Q tile
                pltpu.VMEM((tq, 1), jnp.float32),     # m (running max)
                pltpu.VMEM((tq, 1), jnp.float32),     # l (running denom)
                pltpu.VMEM((tq, c), jnp.float32),     # acc (running numerator)
            ],
        ),
        compiler_params=pltpu.CompilerParams(
            dimension_semantics=("parallel", "parallel", "arbitrary"),
            vmem_limit_bytes=64 * 1024 * 1024,
        ),
        cost_estimate=cost,
    )(x_seq, x_seq, scale_c, shift_c, wq_t, bq, wkv_t, bkv, wo_t, bo)

    # (N, HW, C) -> NCHW
    # TODO(synk): fully transpose-free variant would read (N, C, HW) directly and swap
    # contraction dims in-kernel; kept out to preserve lane-dense C-major matmul layout.
    return jnp.transpose(out_seq, (0, 2, 1)).reshape(n, c, h, w)


def vae_attention_block_reference(x, params, num_groups):
    """Pure-JAX f32 reference mirroring the PyTorch forward."""
    n, c, h, w = x.shape
    xg = x.reshape(n, num_groups, c // num_groups, h, w)
    mean = xg.mean(axis=(2, 3, 4), keepdims=True)
    var = xg.var(axis=(2, 3, 4), keepdims=True)
    xn = (xg - mean) / jnp.sqrt(var + 1e-5)
    xn = xn.reshape(n, c, h, w) * params["gamma"][None, :, None, None] + params["beta"][None, :, None, None]
    seq = jnp.transpose(xn.reshape(n, c, h * w), (0, 2, 1))
    qkv = seq @ params["w_in"].T + params["b_in"]
    q, k, v = jnp.split(qkv, 3, axis=-1)
    att = jax.nn.softmax(q @ jnp.swapaxes(k, -1, -2) / math.sqrt(c), axis=-1)
    out = att @ v
    out = out @ params["w_out"].T + params["b_out"]
    out = jnp.transpose(out, (0, 2, 1)).reshape(n, c, h, w)
    return out + x


if __name__ == "__main__":
    # Small but lane-dense shapes: C=128 (multiple of 128 lanes, divisible by 32 groups),
    # HW = 16*16 = 256 -> 2 q-tiles x 2 kv-tiles per batch element (exercises online softmax).
    N, C, H, W = 2, 128, 16, 16
    NUM_GROUPS = 32

    key = jax.random.PRNGKey(0)
    kx, k0, k1, k2, k3, k4, k5 = jax.random.split(key, 7)
    x = jax.random.normal(kx, (N, C, H, W), dtype=jnp.float32)

    params = {
        "gamma": 1.0 + 0.1 * jax.random.normal(k0, (C,), dtype=jnp.float32),
        "beta": 0.1 * jax.random.normal(k1, (C,), dtype=jnp.float32),
        "w_in": 0.05 * jax.random.normal(k2, (3 * C, C), dtype=jnp.float32),
        "b_in": 0.05 * jax.random.normal(k3, (3 * C,), dtype=jnp.float32),
        "w_out": 0.05 * jax.random.normal(k4, (C, C), dtype=jnp.float32),
        "b_out": 0.05 * jax.random.normal(k5, (C,), dtype=jnp.float32),
    }

    out = vae_attention_block(x, params, NUM_GROUPS, tq=128, tk=128)
    out = jax.block_until_ready(out)

    ref = jax.block_until_ready(vae_attention_block_reference(x, params, NUM_GROUPS))
    assert out.shape == (N, C, H, W)
    # bf16 MXU operands with f32 accumulation -> slightly looser tolerance than pure-f32.
    max_diff = float(jnp.max(jnp.abs(out - ref)))
    assert jnp.allclose(out, ref, atol=2e-2, rtol=2e-2), max_diff

    print("KERNEL_OK")
</pallas_src>

<mosaic_0001>
module attributes {stable_mosaic.version = 11 : i64} {
  func.func @_vae_attn_flash_kernel(%arg0: i32, %arg1: i32, %arg2: i32, %arg3: memref<1x128x128xf32, #tpu.memory_space<vmem>>, %arg4: memref<1x128x128xf32, #tpu.memory_space<vmem>>, %arg5: memref<1x1x128xf32, #tpu.memory_space<vmem>>, %arg6: memref<1x1x128xf32, #tpu.memory_space<vmem>>, %arg7: memref<128x128xbf16, #tpu.memory_space<vmem>>, %arg8: memref<1x128xf32, #tpu.memory_space<vmem>>, %arg9: memref<128x256xbf16, #tpu.memory_space<vmem>>, %arg10: memref<1x256xf32, #tpu.memory_space<vmem>>, %arg11: memref<128x128xbf16, #tpu.memory_space<vmem>>, %arg12: memref<1x128xf32, #tpu.memory_space<vmem>>, %arg13: memref<1x128x128xf32, #tpu.memory_space<vmem>>, %arg14: memref<128x128xbf16, #tpu.memory_space<vmem>>, %arg15: memref<128x1xf32, #tpu.memory_space<vmem>>, %arg16: memref<128x1xf32, #tpu.memory_space<vmem>>, %arg17: memref<128x128xf32, #tpu.memory_space<vmem>>) attributes {dimension_semantics = [#tpu.dimension_semantics<parallel>, #tpu.dimension_semantics<parallel>, #tpu.dimension_semantics<arbitrary>], iteration_bounds = array<i64: 2, 2, 2>, scalar_prefetch = 0 : i64, scratch_operands = 4 : i64, tpu.core_type = #tpu.core_type<tc>, window_params = [{transform_indices = @transform_0, window_bounds = array<i64: 1, 128, 128>}, {transform_indices = @transform_1, window_bounds = array<i64: 1, 128, 128>}, {transform_indices = @transform_2, window_bounds = array<i64: 1, 1, 128>}, {transform_indices = @transform_3, window_bounds = array<i64: 1, 1, 128>}, {pipeline_mode = #tpu.pipeline_mode<synchronous>, transform_indices = @transform_4, window_bounds = array<i64: 128, 128>}, {pipeline_mode = #tpu.pipeline_mode<synchronous>, transform_indices = @transform_5, window_bounds = array<i64: 1, 128>}, {pipeline_mode = #tpu.pipeline_mode<synchronous>, transform_indices = @transform_6, window_bounds = array<i64: 128, 256>}, {pipeline_mode = #tpu.pipeline_mode<synchronous>, transform_indices = @transform_7, window_bounds = array<i64: 1, 256>}, {pipeline_mode = #tpu.pipeline_mode<synchronous>, transform_indices = @transform_8, window_bounds = array<i64: 128, 128>}, {pipeline_mode = #tpu.pipeline_mode<synchronous>, transform_indices = @transform_9, window_bounds = array<i64: 1, 128>}, {transform_indices = @transform_10, window_bounds = array<i64: 1, 128, 128>}]} {
    %c0 = arith.constant 0 : index
    %c0_0 = arith.constant 0 : index
    %c0_1 = arith.constant 0 : index
    %0 = vector.load %arg5[%c0, %c0_0, %c0_1] : memref<1x1x128xf32, #tpu.memory_space<vmem>>, vector<1x1x128xf32>
    %1 = vector.shape_cast %0 : vector<1x1x128xf32> to vector<1x128xf32>
    %c0_2 = arith.constant 0 : index
    %c0_3 = arith.constant 0 : index
    %c0_4 = arith.constant 0 : index
    %2 = vector.load %arg6[%c0_2, %c0_3, %c0_4] : memref<1x1x128xf32, #tpu.memory_space<vmem>>, vector<1x1x128xf32>
    %3 = vector.shape_cast %2 : vector<1x1x128xf32> to vector<1x128xf32>
    %c0_i32 = arith.constant 0 : i32
    %4 = arith.cmpi eq, %arg2, %c0_i32 : i32
    %5 = arith.extui %4 : i1 to i32
    %c0_i32_5 = arith.constant 0 : i32
    %6 = arith.cmpi ne, %5, %c0_i32_5 : i32
    scf.if %6 {
      %c0_32 = arith.constant 0 : index
      %c0_33 = arith.constant 0 : index
      %c0_34 = arith.constant 0 : index
      %51 = vector.load %arg3[%c0_32, %c0_33, %c0_34] : memref<1x128x128xf32, #tpu.memory_space<vmem>>, vector<1x128x128xf32>
      %52 = vector.shape_cast %51 : vector<1x128x128xf32> to vector<128x128xf32>
      %53 = vector.broadcast %1 : vector<1x128xf32> to vector<128x128xf32>
      %54 = arith.mulf %52, %53 : vector<128x128xf32>
      %55 = vector.broadcast %3 : vector<1x128xf32> to vector<128x128xf32>
      %56 = arith.addf %54, %55 : vector<128x128xf32>
      %57 = arith.truncf %56 : vector<128x128xf32> to vector<128x128xbf16>
      %c0_35 = arith.constant 0 : index
      %c0_36 = arith.constant 0 : index
      %58 = vector.load %arg7[%c0_35, %c0_36] : memref<128x128xbf16, #tpu.memory_space<vmem>>, vector<128x128xbf16>
      %cst_37 = arith.constant dense<0.000000e+00> : vector<128x128xf32>
      %59 = tpu.matmul %57, %58, %cst_37 {dimension_numbers = #tpu.dot_dimension_numbers<[1], [0], [0], [1], [0, 0, 1, 1], [], []>} : vector<128x128xbf16>, vector<128x128xbf16>, vector<128x128xf32> -> vector<128x128xf32>
      %c0_38 = arith.constant 0 : index
      %c0_39 = arith.constant 0 : index
      %60 = vector.load %arg8[%c0_38, %c0_39] : memref<1x128xf32, #tpu.memory_space<vmem>>, vector<1x128xf32>
      %61 = vector.broadcast %60 : vector<1x128xf32> to vector<128x128xf32>
      %62 = arith.addf %59, %61 : vector<128x128xf32>
      %63 = arith.truncf %62 : vector<128x128xf32> to vector<128x128xbf16>
      %c0_40 = arith.constant 0 : index
      %c0_41 = arith.constant 0 : index
      %64 = vector.load %arg14[%c0_40, %c0_41] : memref<128x128xbf16, #tpu.memory_space<vmem>>, vector<128x128xbf16>
      tpu.vector_store %arg14[%c0_40, %c0_41], %63 {strides = array<i32>} : memref<128x128xbf16, #tpu.memory_space<vmem>>, vector<128x128xbf16>,
      %cst_42 = arith.constant 0xFF800000 : f32
      %65 = vector.broadcast %cst_42 : f32 to vector<128x1xf32>
      %c0_43 = arith.constant 0 : index
      %c0_44 = arith.constant 0 : index
      %66 = vector.load %arg15[%c0_43, %c0_44] : memref<128x1xf32, #tpu.memory_space<vmem>>, vector<128x1xf32>
      tpu.vector_store %arg15[%c0_43, %c0_44], %65 {strides = array<i32>} : memref<128x1xf32, #tpu.memory_space<vmem>>, vector<128x1xf32>,
      %cst_45 = arith.constant 0.000000e+00 : f32
      %67 = vector.broadcast %cst_45 : f32 to vector<128x1xf32>
      %c0_46 = arith.constant 0 : index
      %c0_47 = arith.constant 0 : index
      %68 = vector.load %arg16[%c0_46, %c0_47] : memref<128x1xf32, #tpu.memory_space<vmem>>, vector<128x1xf32>
      tpu.vector_store %arg16[%c0_46, %c0_47], %67 {strides = array<i32>} : memref<128x1xf32, #tpu.memory_space<vmem>>, vector<128x1xf32>,
      %cst_48 = arith.constant 0.000000e+00 : f32
      %69 = vector.broadcast %cst_48 : f32 to vector<128x128xf32>
      %c0_49 = arith.constant 0 : index
      %c0_50 = arith.constant 0 : index
      %70 = vector.load %arg17[%c0_49, %c0_50] : memref<128x128xf32, #tpu.memory_space<vmem>>, vector<128x128xf32>
      tpu.vector_store %arg17[%c0_49, %c0_50], %69 {strides = array<i32>} : memref<128x128xf32, #tpu.memory_space<vmem>>, vector<128x128xf32>,
    } else {
    }
    %c0_6 = arith.constant 0 : index
    %c0_7 = arith.constant 0 : index
    %c0_8 = arith.constant 0 : index
    %7 = vector.load %arg4[%c0_6, %c0_7, %c0_8] : memref<1x128x128xf32, #tpu.memory_space<vmem>>, vector<1x128x128xf32>
    %8 = vector.shape_cast %7 : vector<1x128x128xf32> to vector<128x128xf32>
    %9 = vector.broadcast %1 : vector<1x128xf32> to vector<128x128xf32>
    %10 = arith.mulf %8, %9 : vector<128x128xf32>
    %11 = vector.broadcast %3 : vector<1x128xf32> to vector<128x128xf32>
    %12 = arith.addf %10, %11 : vector<128x128xf32>
    %13 = arith.truncf %12 : vector<128x128xf32> to vector<128x128xbf16>
    %c0_9 = arith.constant 0 : index
    %c0_10 = arith.constant 0 : index
    %14 = vector.load %arg9[%c0_9, %c0_10] : memref<128x256xbf16, #tpu.memory_space<vmem>>, vector<128x256xbf16>
    %cst = arith.constant dense<0.000000e+00> : vector<128x256xf32>
    %15 = tpu.matmul %13, %14, %cst {dimension_numbers = #tpu.dot_dimension_numbers<[1], [0], [0], [1], [0, 0, 1, 1], [], []>} : vector<128x128xbf16>, vector<128x256xbf16>, vector<128x256xf32> -> vector<128x256xf32>
    %c0_11 = arith.constant 0 : index
    %c0_12 = arith.constant 0 : index
    %16 = vector.load %arg10[%c0_11, %c0_12] : memref<1x256xf32, #tpu.memory_space<vmem>>, vector<1x256xf32>
    %17 = vector.broadcast %16 : vector<1x256xf32> to vector<128x256xf32>
    %18 = arith.addf %15, %17 : vector<128x256xf32>
    %19 = vector.extract_strided_slice %18 {offsets = [0, 0], sizes = [128, 128], strides = [1, 1]} : vector<128x256xf32> to vector<128x128xf32>
    %20 = arith.truncf %19 : vector<128x128xf32> to vector<128x128xbf16>
    %21 = vector.extract_strided_slice %18 {offsets = [0, 128], sizes = [128, 128], strides = [1, 1]} : vector<128x256xf32> to vector<128x128xf32>
    %22 = arith.truncf %21 : vector<128x128xf32> to vector<128x128xbf16>
    %c0_13 = arith.constant 0 : index
    %c0_14 = arith.constant 0 : index
    %23 = vector.load %arg14[%c0_13, %c0_14] : memref<128x128xbf16, #tpu.memory_space<vmem>>, vector<128x128xbf16>
    %cst_15 = arith.constant dense<0.000000e+00> : vector<128x128xf32>
    %24 = tpu.matmul %23, %20, %cst_15 {dimension_numbers = #tpu.dot_dimension_numbers<[1], [1], [0], [0], [0, 0, 1, 0], [], []>} : vector<128x128xbf16>, vector<128x128xbf16>, vector<128x128xf32> -> vector<128x128xf32>
    %c0_16 = arith.constant 0 : index
    %c0_17 = arith.constant 0 : index
    %25 = vector.load %arg15[%c0_16, %c0_17] : memref<128x1xf32, #tpu.memory_space<vmem>>, vector<128x1xf32>
    %cst_18 = arith.constant dense<0xFF800000> : vector<128xf32>
    %26 = vector.multi_reduction <maximumf>, %24, %cst_18 [1] : vector<128x128xf32> to vector<128xf32>
    %27 = vector.shape_cast %26 : vector<128xf32> to vector<128x1xf32>
    %28 = arith.maximumf %25, %27 : vector<128x1xf32>
    %29 = arith.subf %25, %28 : vector<128x1xf32>
    %30 = math.exp %29 : vector<128x1xf32>
    %31 = vector.broadcast %28 : vector<128x1xf32> to vector<128x128xf32>
    %32 = arith.subf %24, %31 : vector<128x128xf32>
    %33 = math.exp %32 : vector<128x128xf32>
    %c0_19 = arith.constant 0 : index
    %c0_20 = arith.constant 0 : index
    %34 = vector.load %arg16[%c0_19, %c0_20] : memref<128x1xf32, #tpu.memory_space<vmem>>, vector<128x1xf32>
    %35 = arith.mulf %30, %34 : vector<128x1xf32>
    %cst_21 = arith.constant dense<0.000000e+00> : vector<128xf32>
    %36 = vector.multi_reduction <add>, %33, %cst_21 [1] : vector<128x128xf32> to vector<128xf32>
    %37 = vector.shape_cast %36 : vector<128xf32> to vector<128x1xf32>
    %38 = arith.addf %35, %37 : vector<128x1xf32>
    %c0_22 = arith.constant 0 : index
    %c0_23 = arith.constant 0 : index
    %39 = vector.load %arg16[%c0_22, %c0_23] : memref<128x1xf32, #tpu.memory_space<vmem>>, vector<128x1xf32>
    tpu.vector_store %arg16[%c0_22, %c0_23], %38 {strides = array<i32>} : memref<128x1xf32, #tpu.memory_space<vmem>>, vector<128x1xf32>,
    %c0_24 = arith.constant 0 : index
    %c0_25 = arith.constant 0 : index
    %40 = vector.load %arg17[%c0_24, %c0_25] : memref<128x128xf32, #tpu.memory_space<vmem>>, vector<128x128xf32>
    %41 = vector.broadcast %30 : vector<128x1xf32> to vector<128x128xf32>
    %42 = arith.mulf %41, %40 : vector<128x128xf32>
    %43 = arith.truncf %33 : vector<128x128xf32> to vector<128x128xbf16>
    %cst_26 = arith.constant dense<0.000000e+00> : vector<128x128xf32>
    %44 = tpu.matmul %43, %22, %cst_26 {dimension_numbers = #tpu.dot_dimension_numbers<[1], [0], [0], [1], [0, 0, 1, 1], [], []>} : vector<128x128xbf16>, vector<128x128xbf16>, vector<128x128xf32> -> vector<128x128xf32>
    %45 = arith.addf %42, %44 : vector<128x128xf32>
    %c0_27 = arith.constant 0 : index
    %c0_28 = arith.constant 0 : index
    %46 = vector.load %arg17[%c0_27, %c0_28] : memref<128x128xf32, #tpu.memory_space<vmem>>, vector<128x128xf32>
    tpu.vector_store %arg17[%c0_27, %c0_28], %45 {strides = array<i32>} : memref<128x128xf32, #tpu.memory_space<vmem>>, vector<128x128xf32>,
    %c0_29 = arith.constant 0 : index
    %c0_30 = arith.constant 0 : index
    %47 = vector.load %arg15[%c0_29, %c0_30] : memref<128x1xf32, #tpu.memory_space<vmem>>, vector<128x1xf32>
    tpu.vector_store %arg15[%c0_29, %c0_30], %28 {strides = array<i32>} : memref<128x1xf32, #tpu.memory_space<vmem>>, vector<128x1xf32>,
    %c1_i32 = arith.constant 1 : i32
    %48 = arith.cmpi eq, %arg2, %c1_i32 : i32
    %49 = arith.extui %48 : i1 to i32
    %c0_i32_31 = arith.constant 0 : i32
    %50 = arith.cmpi ne, %49, %c0_i32_31 : i32
    scf.if %50 {
      %c0_32 = arith.constant 0 : index
      %c0_33 = arith.constant 0 : index
      %51 = vector.load %arg17[%c0_32, %c0_33] : memref<128x128xf32, #tpu.memory_space<vmem>>, vector<128x128xf32>
      %c0_34 = arith.constant 0 : index
      %c0_35 = arith.constant 0 : index
      %52 = vector.load %arg16[%c0_34, %c0_35] : memref<128x1xf32, #tpu.memory_space<vmem>>, vector<128x1xf32>
      %53 = tpu.reciprocal %52 {approx = true} : vector<128x1xf32> -> vector<128x1xf32>
      %54 = vector.broadcast %53 : vector<128x1xf32> to vector<128x128xf32>
      %55 = arith.mulf %51, %54 : vector<128x128xf32>
      %56 = arith.truncf %55 : vector<128x128xf32> to vector<128x128xbf16>
      %c0_36 = arith.constant 0 : index
      %c0_37 = arith.constant 0 : index
      %57 = vector.load %arg11[%c0_36, %c0_37] : memref<128x128xbf16, #tpu.memory_space<vmem>>, vector<128x128xbf16>
      %cst_38 = arith.constant dense<0.000000e+00> : vector<128x128xf32>
      %58 = tpu.matmul %56, %57, %cst_38 {dimension_numbers = #tpu.dot_dimension_numbers<[1], [0], [0], [1], [0, 0, 1, 1], [], []>} : vector<128x128xbf16>, vector<128x128xbf16>, vector<128x128xf32> -> vector<128x128xf32>
      %c0_39 = arith.constant 0 : index
      %c0_40 = arith.constant 0 : index
      %59 = vector.load %arg12[%c0_39, %c0_40] : memref<1x128xf32, #tpu.memory_space<vmem>>, vector<1x128xf32>
      %60 = vector.broadcast %59 : vector<1x128xf32> to vector<128x128xf32>
      %61 = arith.addf %58, %60 : vector<128x128xf32>
      %c0_41 = arith.constant 0 : index
      %c0_42 = arith.constant 0 : index
      %c0_43 = arith.constant 0 : index
      %62 = vector.load %arg3[%c0_41, %c0_42, %c0_43] : memref<1x128x128xf32, #tpu.memory_space<vmem>>, vector<1x128x128xf32>
      %63 = vector.shape_cast %62 : vector<1x128x128xf32> to vector<128x128xf32>
      %64 = arith.addf %61, %63 : vector<128x128xf32>
      %c0_44 = arith.constant 0 : index
      %c0_45 = arith.constant 0 : index
      %c0_46 = arith.constant 0 : index
      %65 = vector.load %arg13[%c0_44, %c0_45, %c0_46] : memref<1x128x128xf32, #tpu.memory_space<vmem>>, vector<1x128x128xf32>
      %66 = vector.shape_cast %65 : vector<1x128x128xf32> to vector<128x128xf32>
      %67 = vector.shape_cast %64 : vector<128x128xf32> to vector<1x128x128xf32>
      tpu.vector_store %arg13[%c0_44, %c0_45, %c0_46], %67 {strides = array<i32>} : memref<1x128x128xf32, #tpu.memory_space<vmem>>, vector<1x128x128xf32>,
    } else {
    }
    return
  }
  func.func @transform_0(%arg0: i32, %arg1: i32, %arg2: i32) -> (i32, i32, i32) {
    %c0_i32 = arith.constant 0 : i32
    %c0_i32_0 = arith.constant 0 : i32
    return %arg0, %arg1, %c0_i32 : i32, i32, i32
  }
  func.func @transform_1(%arg0: i32, %arg1: i32, %arg2: i32) -> (i32, i32, i32) {
    %c0_i32 = arith.constant 0 : i32
    %c0_i32_0 = arith.constant 0 : i32
    return %arg0, %arg2, %c0_i32 : i32, i32, i32
  }
  func.func @transform_2(%arg0: i32, %arg1: i32, %arg2: i32) -> (i32, i32, i32) {
    %c0_i32 = arith.constant 0 : i32
    %c0_i32_0 = arith.constant 0 : i32
    %c0_i32_1 = arith.constant 0 : i32
    return %arg0, %c0_i32, %c0_i32_0 : i32, i32, i32
  }
  func.func @transform_3(%arg0: i32, %arg1: i32, %arg2: i32) -> (i32, i32, i32) {
    %c0_i32 = arith.constant 0 : i32
    %c0_i32_0 = arith.constant 0 : i32
    %c0_i32_1 = arith.constant 0 : i32
    return %arg0, %c0_i32, %c0_i32_0 : i32, i32, i32
  }
  func.func @transform_4(%arg0: i32, %arg1: i32, %arg2: i32) -> (i32, i32) {
    %c0_i32 = arith.constant 0 : i32
    %c0_i32_0 = arith.constant 0 : i32
    %c0_i32_1 = arith.constant 0 : i32
    return %c0_i32, %c0_i32_0 : i32, i32
  }
  func.func @transform_5(%arg0: i32, %arg1: i32, %arg2: i32) -> (i32, i32) {
    %c0_i32 = arith.constant 0 : i32
    %c0_i32_0 = arith.constant 0 : i32
    %c0_i32_1 = arith.constant 0 : i32
    return %c0_i32, %c0_i32_0 : i32, i32
  }
  func.func @transform_6(%arg0: i32, %arg1: i32, %arg2: i32) -> (i32, i32) {
    %c0_i32 = arith.constant 0 : i32
    %c0_i32_0 = arith.constant 0 : i32
    %c0_i32_1 = arith.constant 0 : i32
    return %c0_i32, %c0_i32_0 : i32, i32
  }
  func.func @transform_7(%arg0: i32, %arg1: i32, %arg2: i32) -> (i32, i32) {
    %c0_i32 = arith.constant 0 : i32
    %c0_i32_0 = arith.constant 0 : i32
    %c0_i32_1 = arith.constant 0 : i32
    return %c0_i32, %c0_i32_0 : i32, i32
  }
  func.func @transform_8(%arg0: i32, %arg1: i32, %arg2: i32) -> (i32, i32) {
    %c0_i32 = arith.constant 0 : i32
    %c0_i32_0 = arith.constant 0 : i32
    %c0_i32_1 = arith.constant 0 : i32
    return %c0_i32, %c0_i32_0 : i32, i32
  }
  func.func @transform_9(%arg0: i32, %arg1: i32, %arg2: i32) -> (i32, i32) {
    %c0_i32 = arith.constant 0 : i32
    %c0_i32_0 = arith.constant 0 : i32
    %c0_i32_1 = arith.constant 0 : i32
    return %c0_i32, %c0_i32_0 : i32, i32
  }
  func.func @transform_10(%arg0: i32, %arg1: i32, %arg2: i32) -> (i32, i32, i32) {
    %c0_i32 = arith.constant 0 : i32
    %c0_i32_0 = arith.constant 0 : i32
    return %arg0, %arg1, %c0_i32 : i32, i32, i32
  }
}

</mosaic_0001>

<bundles_post_ra>
// kernel: tpu_custom_call.1
= control target key start
LH: loop header
LB: loop body
LE: loop exit
PB: predicated region body
PF: predicated region fallthrough
CT: control target
= control target key end

     0   :  { %s5022_s0 = inlined_call_operand.hbm [shape: f32[2,256,128], index: 0, kind: input, shape index: {}]   ;;  %s5023_s1 = inlined_call_operand.hbm [shape: f32[2,256,128], index: 1, kind: input, shape index: {}]   ;;  %s5024_s2 = inlined_call_operand.hbm [shape: f32[2,1,128], index: 2, kind: input, shape index: {}]   ;;  %s5025_s3 = inlined_call_operand.hbm [shape: f32[2,1,128], index: 3, kind: input, shape index: {}]   ;;  %s5026_s4 = inlined_call_operand.hbm [shape: bf16[128,128], index: 4, kind: input, shape index: {}]   ;;  %s5027_s5 = inlined_call_operand.hbm [shape: f32[1,128], index: 5, kind: input, shape index: {}]   ;;  %s5028_s6 = inlined_call_operand.hbm [shape: bf16[128,256], index: 6, kind: input, shape index: {}]   ;;  %s5029_s7 = inlined_call_operand.hbm [shape: f32[1,256], index: 7, kind: input, shape index: {}]   ;;  %s5030_s8 = inlined_call_operand.hbm [shape: bf16[128,128], index: 8, kind: input, shape index: {}]   ;;  %s5031_s9 = inlined_call_operand.hbm [shape: f32[1,128], index: 9, kind: input, shape index: {}]   ;;  %s5032_s10 = inlined_call_operand.hbm [shape: f32[2,256,128], index: 10, kind: output, shape index: {}]  }
   0x1   :  { %5068 = sst [smem:[#allocation49_spill]] %s5022_s0 }
   0x2   :  { %5069 = sst [smem:[#allocation50_spill]] %s5023_s1 }
   0x3   :  { %5070 = sst [smem:[#allocation51_spill]] %s5024_s2 }
   0x4   :  { %5071 = sst [smem:[#allocation52_spill]] %s5025_s3 }
   0x5   :  { %5072 = sst [smem:[#allocation53_spill]] %s5026_s4 }
   0x6   :  { %5073 = sst [smem:[#allocation54_spill]] %s5027_s5 }
   0x7   :  { %5074 = sst [smem:[#allocation55_spill]] %s5028_s6 }
   0x8   :  { %5075 = sst [smem:[#allocation56_spill]] %s5029_s7 }
   0x9   :  { %5076 = sst [smem:[#allocation57_spill]] %s5030_s8 }
   0xa   :  { %5077 = sst [smem:[#allocation58_spill]] %s5031_s9 }
   0xb   :  { %5078 = sst [smem:[#allocation59_spill]] %s5032_s10 }
   0xc   :  { %15 = vsyncpa [#allocation7], 0 }
   0xd   :  { %17 = vsyncpa [#allocation7 + $0x1], 0 }
   0xe   :  { %18 = vsyncpa [#allocation10], 0 }
   0xf   :  { %20 = vsyncpa [#allocation10 + $0x1], 0 }
  0x10   :  { %21 = vsyncpa [#allocation13], 0 }
  0x11   :  { %23 = vsyncpa [#allocation13 + $0x1], 0 }
  0x12   :  { %24 = vsyncpa [#allocation16], 0 }
  0x13   :  { %25 = vsyncpa [#allocation19], 0 }
  0x14   :  { %26 = vsyncpa [#allocation22], 0 }
  0x15   :  { %27 = vsyncpa [#allocation8], 0 }
  0x16   :  { %29 = vsyncpa [#allocation8 + $0x1], 0  ;;  %s3756_s13 = smov 0   ;;  %s3758_s14 = smov 0  }
  0x17   :  { %s3760_s15 = smov 0   ;;  %s3762_s16 = smov 0  }
  0x18   :  { %s3764_s17 = smov 0   ;;  %s3766_s18 = smov 0  }
  0x19   :  { %s3768_s19 = smov 0   ;;  %s3770_s20 = smov 0  }
  0x1a   :  { %s3772_s21 = smov 0   ;;  %s3774_s22 = smov 0  }
  0x1b   :  { %s3776_s23 = smov 0   ;;  %s3778_s24 = smov 0  }
  0x1c   :  { %s3780_s25 = smov 0   ;;  %s3782_s26 = smov 0  }
  0x1d   :  { %s3784_s27 = smov 0   ;;  %s3786_s28 = smov 0  }
  0x1e LB: > { %5079 = sst [smem:[#allocation33_spill]] %s3618_s13  ;;  %s3837_s29 = sadd.s32 4294967295, %s3678_s28   ;;  %s3678_s28 = sphi %s3786_s28, %s35_s28   ;;  %s3674_s27 = sphi %s3784_s27, %s5191_s27   ;;  %s3670_s26 = sphi %s3782_s26, %s5190_s26   ;;  %s3666_s25 = sphi %s3780_s25, %s5189_s25   ;;  %s3662_s24 = sphi %s3778_s24, %s5188_s24   ;;  %s3658_s23 = sphi %s3776_s23, %s5175_s23   ;;  %s3654_s22 = sphi %s3774_s22, %s5187_s22   ;;  %s3650_s21 = sphi %s3772_s21, %s5186_s21   ;;  %s3646_s20 = sphi %s3770_s20, %s5185_s20   ;;  %s3642_s19 = sphi %s3768_s19, %s5184_s19   ;;  %s3638_s18 = sphi %s3766_s18, %s5183_s18   ;;  %s3634_s17 = sphi %s3764_s17, %s5182_s17   ;;  %s3630_s16 = sphi %s3762_s16, %s5181_s16   ;;  %s3626_s15 = sphi %s3760_s15, %s5180_s15   ;;  %s3622_s14 = sphi %s3758_s14, %s5171_s14   ;;  %s3618_s13 = sphi %s3756_s13, %s5170_s13  }
  0x1f   : > { %5080 = sst [smem:[#allocation34_spill]] %s3622_s14  ;;  %p2522_p0 = scmp.ge.s32.totalorder %s3678_s28, 1 }
  0x20   : > { %5081 = sst [smem:[#allocation35_spill]] %s3626_s15  ;;  %p5043_p1 = scmp.eq.s32.totalorder %s3837_s29, 0 }
  0x21   : > { %5082 = sst [smem:[#allocation36_spill]] %s3642_s19  ;;  %p321_p2 = scmp.lt.s32.totalorder %s3678_s28, 9 }
  0x22   : > { %5083 = sst [smem:[#allocation37_spill]] %s3646_s20  ;;  %s3680_s11 = smov [#allocation14]  }
  0x23   : > { %5084 = sst [smem:[#allocation38_spill]] %s3650_s21  ;;  %p3842_p3 = pnand %p2522_p0, %p321_p2 }
  0x24   : > { %5085 = sst [smem:[#allocation39_spill]] %s3654_s22  ;;  %s333_s12 = sshll.u32 %s3680_s11, 4  ;;  %s3846_s12 = int_to_ptr.vmem [resolvable:$true] %s333_s12 }
  0x25   : > { %5086 = sst [smem:[#allocation40_spill]] %s3658_s23  ;;  %p2866_p4 = pneg %p3842_p3 }
  0x26   : > { %5087 = sst [smem:[#allocation41_spill]] %s3662_s24  ;;  %s3681_s24 = smov [#allocation15]  }
  0x27   : > { %5088 = sst [smem:[#allocation42_spill]] %s3670_s26  ;;  %p3852_p5 = pnand %p2866_p4, %p5043_p1 }
  0x28   : > { %s5089_s30 = scalar_select %p3842_p3, 1, 0 }
  0x29   : > { %s5091_s10 = scalar_select %p3852_p5, 1, 0 }
  0x2a   : > { %5090 = sst [smem:[#allocation43_spill]] %s5089_s30  ;;  %s347_s23 = sshll.u32 %s3681_s24, 4  ;;  %s3856_s23 = int_to_ptr.vmem [resolvable:$true] %s347_s23 }
  0x2b   : > { %s3682_s22 = smov [#allocation18]   ;;  %s5092_s4 = sld [smem:[#allocation53_spill]] }
  0x2c   : > { %s3858_s3 = sshll.u32 %s3682_s22, 4  ;;  %p3868_p7 = pneg %p3852_p5  ;;  %s372_s3 = int_to_ptr.vmem [resolvable:$true] %s3858_s3 }
  0x31   : > { %s3200_s11 = scalar_lea.hbm %s5092_s4, 1024 }
  0x32   : > { %p3201_p6 = scmp.ne.s32.totalorder %s5092_s4, %s3200_s11  ;;  %p3207_p10 = scmp.lt.u32.totalorder %s3200_s11, %s5092_s4 }
  0x34   : > { %p3203_p8 = pnand %p3868_p7, %p3201_p6 }
  0x36   : > { %p3204_p9 = pneg %p3203_p8 }
  0x38   : > { %p3209_p11 = pnand %p3207_p10, %p3204_p9 }
  0x3a   : > { %3212 = shalt.err (!%p3209_p11)
}
  0x3b   : > { %s3213_s2 = scalar_lea.vmem %s3846_s12, 1024  ;;  %p3221_p2 = scmp.lt.s32.totalorder %s3846_s12, %s3846_s12 }
  0x3c   : > { %p3214_p12 = scmp.ne.s32.totalorder %s3846_s12, %s3213_s2  ;;  %p3222_p4 = scmp.lt.s32.totalorder %s3213_s2, %s3213_s2 }
  0x3e   : > { %p3216_p13 = pnand %p3214_p12, %p3868_p7  ;;  %p3223_p6 = por %p3222_p4, %p3221_p2 }
  0x40   : > { %p3217_p0 = pneg %p3216_p13 }
  0x42   : > { %p3224_p8 = pnand %p3223_p6, %p3217_p0 }
  0x44   : > { %3227 = shalt.err (!%p3224_p8)
}
  0x45   : > { %s5045_s13 = smov 64   ;;  %s5046_s14 = smov 4  }
  0x46   : > { %2869 = dma.hbm_to_vmem [thread:$0]  (!%p3852_p5), %s5092_s4, 1024, %s3846_s12, [#allocation13], %s5045_s13, %s5045_s13, %s5046_s14  }
  0x47   : > { %s5094_s5 = sld [smem:[#allocation54_spill]] }
  0x4d   : > { %s3228_s2 = scalar_lea.hbm %s5094_s5, 16 }
  0x4e   : > { %p3229_p9 = scmp.ne.s32.totalorder %s5094_s5, %s3228_s2  ;;  %p3235_p12 = scmp.lt.u32.totalorder %s3228_s2, %s5094_s5 }
  0x50   : > { %p3231_p10 = pnand %p3229_p9, %p3868_p7 }
  0x52   : > { %p3232_p11 = pneg %p3231_p10 }
  0x54   : > { %p3237_p13 = pnand %p3235_p12, %p3232_p11 }
  0x56   : > { %3240 = shalt.err (!%p3237_p13)
}
  0x57   : > { %s3241_s12 = scalar_lea.vmem %s3856_s23, 16  ;;  %s3248_s0 = scalar_lea.vmem %s3856_s23, 32 }
  0x58   : > { %p3242_p0 = scmp.ne.s32.totalorder %s3856_s23, %s3241_s12  ;;  %p3249_p6 = scmp.lt.s32.totalorder %s3856_s23, %s3856_s23 }
  0x59   : > { %p3250_p8 = scmp.lt.s32.totalorder %s3248_s0, %s3241_s12 }
  0x5a   : > { %p3244_p2 = pnand %p3242_p0, %p3868_p7 }
  0x5b   : > { %p3251_p9 = por %p3250_p8, %p3249_p6 }
  0x5c   : > { %p3245_p4 = pneg %p3244_p2 }
  0x5e   : > { %p3252_p10 = pnand %p3251_p9, %p3245_p4 }
  0x60   : > { %3255 = shalt.err (!%p3252_p10)
}
  0x61   : > { %2872 = dma.hbm_to_vmem [thread:$0]  (!%p3852_p5), %s5094_s5, 16, %s3856_s23, [#allocation16]  }
  0x62   : > { %s5095_s7 = sld [smem:[#allocation56_spill]] }
  0x68   : > { %s3256_s11 = scalar_lea.hbm %s5095_s7, 32 }
  0x69   : > { %p3257_p11 = scmp.ne.s32.totalorder %s5095_s7, %s3256_s11  ;;  %p3263_p0 = scmp.lt.u32.totalorder %s3256_s11, %s5095_s7 }
  0x6b   : > { %p3259_p12 = pnand %p3257_p11, %p3868_p7 }
  0x6d   : > { %p3260_p13 = pneg %p3259_p12 }
  0x6f   : > { %p3265_p2 = pnand %p3263_p0, %p3260_p13 }
  0x71   : > { %3268 = shalt.err (!%p3265_p2)
}
  0x72   : > { %s3269_s0 = scalar_lea.vmem %s372_s3, 32  ;;  %p3277_p9 = scmp.lt.s32.totalorder %s372_s3, %s372_s3 }
  0x73   : > { %p3270_p4 = scmp.ne.s32.totalorder %s372_s3, %s3269_s0  ;;  %p3278_p10 = scmp.lt.s32.totalorder %s3269_s0, %s3269_s0 }
  0x75   : > { %p3272_p6 = pnand %p3270_p4, %p3868_p7  ;;  %p3279_p1 = por %p3278_p10, %p3277_p9 }
  0x77   : > { %p3273_p8 = pneg %p3272_p6 }
  0x79   : > { %p3280_p3 = pnand %p3279_p1, %p3273_p8 }
  0x7b   : > { %3283 = shalt.err (!%p3280_p3)
}
  0x7c   : > { %2878 = dma.hbm_to_vmem [thread:$0]  (!%p3852_p5), %s5095_s7, 32, %s372_s3, [#allocation19]  }
  0x7d   : > { %s47_s20 = sadd.s32 1, %s3666_s25  ;;  %p5049_p3 = scmp.eq.s32.totalorder %s3678_s28, 0 }
  0x7e   : > { %p3936_p1 = scmp.ge.s32.totalorder %s47_s20, 2  ;;  %p98_p11 = scmp.ne.s32.totalorder %s3638_s18, %s3634_s17 }
  0x7f   : > { %p104_p12 = scmp.ne.s32.totalorder %s3634_s17, %s3630_s16  ;;  %p5098_p0 = scmp.eq.s32.totalorder %s3837_s29, 0 }
  0x80   : > { %s5096_s21 = scalar_select %p3936_p1, 1, 0 }
  0x81   : > { %s5193_s20 = smov (%p3936_p1, %s47_s20), 0  ;;  %p3955_p13 = por %p98_p11, %p5049_p3 }
  0x82   : > { %p3961_p2 = por %p104_p12, %p5098_p0  ;;  %p5048_p4 = scmp.lt.s32.totalorder %s3678_s28, 8 }
  0x83   : > { %s5047_s2 = sshll.u32 %s3674_s27, 5  ;;  %s5054_s12 = sand.u32 1, %s3678_s28  }
  0x84   : > { %s5099_s22 = scalar_select %p3961_p2, 1, 0 }
  0x85   : > { %s431_s0 = sand.u32 1, %s3638_s18   ;;  %s2535_s16 = sshll.u32 %s3666_s25, 4 }
  0x86   : > { %5100 = sst [smem:[#allocation44_spill]] %s5099_s22  ;;  %s2534_s23 = sshll.u32 %s431_s0, 7 }
  0x87   : > { %s439_s19 = sadd.s32 %s2535_s16, %s5047_s2  ;;  %s433_s24 = scalar_lea.vmem [#allocation9], %s2534_s23 }
  0x88   : > { %s2537_s11 = sshll.u32 %s439_s19, 7  ;;  %s442_s30 = sshll.u32 %s433_s24, 4  ;;  %s3977_s30 = int_to_ptr.vmem [resolvable:$true] %s442_s30 }
  0x89   : > { %s5101_s1 = sld [smem:[#allocation50_spill]]  ;;  %p3983_p6 = pnand %p5048_p4, %p3955_p13 }
  0x8a   : > { %s3685_s24 = smov [#allocation17]   ;;  %s3991_s13 = scalar_lea.sflag [#allocation10], %s5054_s12 }
  0x8b   : > { %s357_s23 = sshll.u32 %s3685_s24, 4  ;;  %p3286_p9 = pneg %p3983_p6  ;;  %s3987_s23 = int_to_ptr.vmem [resolvable:$true] %s357_s23 }
  0x8f   : > { %s3975_s4 = scalar_lea.hbm %s5101_s1, %s2537_s11  ;;  %s3289_s16 = scalar_lea.hbm %s5101_s1, 8192 }
  0x90   : > { %s3284_s14 = scalar_lea.hbm %s3975_s4, 2048  ;;  %p3290_p12 = scmp.lt.u32.totalorder %s3975_s4, %s5101_s1 }
  0x91   : > { %p3285_p8 = scmp.ne.s32.totalorder %s3975_s4, %s3284_s14  ;;  %p3291_p13 = scmp.lt.u32.totalorder %s3289_s16, %s3284_s14 }
  0x92   : > { %p3293_p4 = scmp.lt.u32.totalorder %s3284_s14, %s3975_s4 }
  0x93   : > { %p3287_p10 = pnand %p3286_p9, %p3285_p8  ;;  %p3292_p0 = por %p3291_p13, %p3290_p12 }
  0x95   : > { %p3288_p11 = pneg %p3287_p10  ;;  %p3294_p3 = por %p3293_p4, %p3292_p0 }
  0x97   : > { %p3295_p2 = pnand %p3294_p3, %p3288_p11 }
  0x99   : > { %3298 = shalt.err (!%p3295_p2)
}
  0x9a   : > { %s3299_s24 = scalar_lea.vmem %s3977_s30, 2048  ;;  %s3686_s11 = smov [#allocation9]  }
  0x9b   : > { %p3300_p8 = scmp.ne.s32.totalorder %s3977_s30, %s3299_s24  ;;  %s3304_s3 = sshll.u32 %s3686_s11, 4  ;;  %s3305_s3 = int_to_ptr.vmem [resolvable:$false] %s3304_s3 }
  0x9c   : > { %s3306_s2 = scalar_lea.vmem %s3305_s3, 4096  ;;  %p3307_p5 = scmp.lt.s32.totalorder %s3977_s30, %s3305_s3 }
  0x9d   : > { %p3302_p10 = pnand %p3300_p8, %p3286_p9  ;;  %p3308_p12 = scmp.lt.s32.totalorder %s3306_s2, %s3299_s24 }
  0x9f   : > { %p3303_p1 = pneg %p3302_p10  ;;  %p3309_p13 = por %p3308_p12, %p3307_p5 }
  0xa1   : > { %p3310_p4 = pnand %p3309_p13, %p3303_p1 }
  0xa3   : > { %3313 = shalt.err (!%p3310_p4)
}
  0xa4   : > { %s5055_s14 = smov 128   ;;  %s5056_s16 = smov 8  }
  0xa5   : > { %2891 = dma.hbm_to_vmem [thread:$0]  (!%p3983_p6), %s3975_s4, 2048, %s3977_s30, %s3991_s13, %s5055_s14, %s5055_s14, %s5056_s16  }
  0xa6   : > { %s5103_s6 = sld [smem:[#allocation55_spill]] }
  0xac   : > { %s3314_s3 = scalar_lea.hbm %s5103_s6, 2048 }
  0xad   : > { %p3315_p5 = scmp.ne.s32.totalorder %s5103_s6, %s3314_s3  ;;  %p3321_p2 = scmp.lt.u32.totalorder %s3314_s3, %s5103_s6 }
  0xaf   : > { %p3317_p1 = pnand %p3315_p5, %p3868_p7 }
  0xb1   : > { %p3318_p3 = pneg %p3317_p1 }
  0xb3   : > { %p3323_p9 = pnand %p3321_p2, %p3318_p3 }
  0xb5   : > { %3326 = shalt.err (!%p3323_p9)
}
  0xb6   : > { %s3327_s4 = scalar_lea.vmem %s3987_s23, 2048  ;;  %p3335_p8 = scmp.lt.s32.totalorder %s3987_s23, %s3987_s23 }
  0xb7   : > { %p3328_p6 = scmp.ne.s32.totalorder %s3987_s23, %s3327_s4  ;;  %p3336_p10 = scmp.lt.s32.totalorder %s3327_s4, %s3327_s4 }
  0xb9   : > { %p3330_p11 = pnand %p3328_p6, %p3868_p7  ;;  %p3337_p12 = por %p3336_p10, %p3335_p8 }
  0xbb   : > { %p3331_p0 = pneg %p3330_p11 }
  0xbd   : > { %p3338_p13 = pnand %p3337_p12, %p3331_p0 }
  0xbf   : > { %3341 = shalt.err (!%p3338_p13)
}
  0xc0   : > { %p5104_p4 = scmp.ne.s32.totalorder %s5091_s10, 0  ;;  %s3689_s12 = smov [#allocation20]  }
  0xc1   : > { %s381_s0 = sshll.u32 %s3689_s12, 4  ;;  %s3690_s19 = smov [#allocation21]   ;;  %s382_s0 = int_to_ptr.vmem [resolvable:$true] %s381_s0 }
  0xc2   : > { %2875 = dma.hbm_to_vmem [thread:$0]  (!%p5104_p4), %s5103_s6, 2048, %s3987_s23, [#allocation16], %s5055_s14, %s5055_s14, %s5056_s16  }
  0xc3   : > { %s395_s11 = sshll.u32 %s3690_s19, 4  ;;  %s5105_s8 = sld [smem:[#allocation57_spill]]  ;;  %s396_s11 = int_to_ptr.vmem [resolvable:$true] %s395_s11 }
  0xc9   : > { %s3342_s2 = scalar_lea.hbm %s5105_s8, 1024 }
  0xca   : > { %p3343_p5 = scmp.ne.s32.totalorder %s5105_s8, %s3342_s2  ;;  %p3349_p2 = scmp.lt.u32.totalorder %s3342_s2, %s5105_s8 }
  0xcc   : > { %p3345_p1 = pnand %p3343_p5, %p3868_p7 }
  0xce   : > { %p3346_p3 = pneg %p3345_p1 }
  0xd0   : > { %p3351_p9 = pnand %p3349_p2, %p3346_p3 }
  0xd2   : > { %3354 = shalt.err (!%p3351_p9)
}
  0xd3   : > { %s3355_s23 = scalar_lea.vmem %s382_s0, 1024  ;;  %p3363_p8 = scmp.lt.s32.totalorder %s382_s0, %s382_s0 }
  0xd4   : > { %p3356_p6 = scmp.ne.s32.totalorder %s382_s0, %s3355_s23  ;;  %p3364_p10 = scmp.lt.s32.totalorder %s3355_s23, %s3355_s23 }
  0xd6   : > { %p3358_p11 = pnand %p3356_p6, %p3868_p7  ;;  %p3365_p12 = por %p3364_p10, %p3363_p8 }
  0xd8   : > { %p3359_p0 = pneg %p3358_p11 }
  0xda   : > { %p3366_p13 = pnand %p3365_p12, %p3359_p0 }
  0xdc   : > { %3369 = shalt.err (!%p3366_p13)
}
  0xdd   : > { %s5106_s5 = smov 4   ;;  %s5107_s30 = smov 64  }
  0xde   : > { %2881 = dma.hbm_to_vmem [thread:$0]  (!%p5104_p4), %s5105_s8, 1024, %s382_s0, [#allocation19], %s5107_s30, %s5107_s30, %s5106_s5  }
  0xdf   : > { %s5108_s9 = sld [smem:[#allocation58_spill]] }
  0xe5   : > { %s3370_s24 = scalar_lea.hbm %s5108_s9, 16 }
  0xe6   : > { %p3371_p5 = scmp.ne.s32.totalorder %s5108_s9, %s3370_s24  ;;  %p3377_p2 = scmp.lt.u32.totalorder %s3370_s24, %s5108_s9 }
  0xe8   : > { %p3373_p1 = pnand %p3371_p5, %p3868_p7 }
  0xea   : > { %p3374_p3 = pneg %p3373_p1 }
  0xec   : > { %p3379_p9 = pnand %p3377_p2, %p3374_p3 }
  0xee   : > { %3382 = shalt.err (!%p3379_p9)
}
  0xef   : > { %s3383_s7 = scalar_lea.vmem %s396_s11, 16  ;;  %s3390_s0 = scalar_lea.vmem %s396_s11, 32 }
  0xf0   : > { %p3384_p6 = scmp.ne.s32.totalorder %s396_s11, %s3383_s7  ;;  %p3391_p8 = scmp.lt.s32.totalorder %s396_s11, %s396_s11 }
  0xf1   : > { %p3392_p10 = scmp.lt.s32.totalorder %s3390_s0, %s3383_s7 }
  0xf2   : > { %p3386_p11 = pnand %p3384_p6, %p3868_p7 }
  0xf3   : > { %p3393_p12 = por %p3392_p10, %p3391_p8 }
  0xf4   : > { %p3387_p0 = pneg %p3386_p11 }
  0xf6   : > { %p3394_p13 = pnand %p3393_p12, %p3387_p0 }
  0xf8   : > { %3397 = shalt.err (!%p3394_p13)
}
  0xf9   : > { %s5109_s12 = sld [smem:[#allocation38_spill]]  ;;  %s5110_s19 = sld [smem:[#allocation37_spill]] }
  0xfa   : > { %s5111_s15 = sld [smem:[#allocation36_spill]]  ;;  %s2521_s10 = sadd.s32 4294967294, %s3678_s28  }
  0xfb   : > { %2884 = dma.hbm_to_vmem [thread:$0]  (!%p5104_p4), %s5108_s9, 16, %s396_s11, [#allocation22]  }
  0xfc   : > { %s50_s3 = sadd.s32 1, %s3670_s26  ;;  %p5112_p7 = scmp.ne.s32.totalorder %s5096_s21, 0 }
  0xfd   : > { %p308_p2 = scmp.eq.s32.totalorder %s3837_s29, 7  ;;  %p5113_p9 = scmp.eq.s32.totalorder %s3678_s28, 0 }
  0xfe   : > { %s5195_s3 = smov (!%p5112_p7, %s50_s3), %s3670_s26  ;;  %p5115_p4 = scmp.eq.s32.totalorder %s3837_s29, 0 }
  0xff   : > { %s63_s24 = sadd.s32 1, %s5109_s12  ;;  %p70_p5 = scmp.ne.s32.totalorder %s5109_s12, %s5110_s19 }
 0x100   : > { %p76_p1 = scmp.ne.s32.totalorder %s5110_s19, %s5111_s15  ;;  %p52_p3 = scmp.ge.s32.totalorder %s5195_s3, 2 }
 0x101   : > { %p4100_p6 = por %p5113_p9, %p70_p5  ;;  %s5118_s21 = sadd.s32 1, %s3674_s27 }
 0x102   : > { %p4109_p11 = por %p5115_p4, %p76_p1  ;;  %s5197_s3 = smov (%p52_p3, %s5195_s3), 0 }
 0x103   : > { %5117 = sst [smem:[#allocation45_spill]] %s5197_s3  ;;  %s5199_s21 = smov (!%p52_p3, %s5118_s21), %s3674_s27 }
 0x104   : > { %s5116_s11 = scalar_select %p4109_p11, 1, 0 }
 0x105   : > { %s59_s4 = ssub.s32 %s3670_s26, %s5197_s3  ;;  %p4120_p0 = por %p308_p2, %p70_p5 }
 0x106   : > { %p56_p8 = scmp.ge.s32.totalorder %s5199_s21, 2  ;;  %p314_p10 = scmp.eq.s32.totalorder %s2521_s10, 7 }
 0x107   : > { %s5119_s1 = scalar_select %p4120_p0, 1, 0 }
 0x108   : > { %s406_s23 = sand.u32 1, %s5109_s12   ;;  %s2531_s7 = sshll.u32 %s3670_s26, 4 }
 0x109   : > { %5120 = sst [smem:[#allocation46_spill]] %s5119_s1  ;;  %s5201_s21 = smov (%p56_p8, %s5199_s21), 0 }
 0x10a   : > { %5121 = sst [smem:[#allocation47_spill]] %s5201_s21  ;;  %p4131_p12 = por %p314_p10, %p76_p1 }
 0x10b   : > { %s4137_s5 = ssub.s32 %s3674_s27, %s5201_s21  ;;  %s2530_s30 = sshll.u32 %s406_s23, 7 }
 0x10c   : > { %s5122_s0 = scalar_select %p4131_p12, 1, 0 }
 0x10d   : > { %s60_s14 = sor.u32 %s59_s4, %s4137_s5  ;;  %s5124_s16 = ssub.s32 %s3666_s25, %s5193_s20 }
 0x10e   : > { %5123 = sst [smem:[#allocation48_spill]] %s5122_s0  ;;  %s88_s10 = sor.u32 %s5124_s16, %s4137_s5 }
 0x10f   : > { %p61_p13 = scmp.eq.s32.totalorder %s60_s14, 0  ;;  %p89_p7 = scmp.eq.s32.totalorder %s88_s10, 0 }
 0x110   : > { %s5125_s6 = sshll.u32 %s3674_s27, 5  ;;  %s5126_s19 = sadd.s32 1, %s3638_s18 }
 0x111   : > { %s416_s8 = sadd.s32 %s5125_s6, %s2531_s7  ;;  %s5203_s12 = smov (!%p61_p13, %s5109_s12), %s63_s24 }
 0x112   : > { %s4152_s15 = scalar_select %p89_p7, %s3638_s18, %s5126_s19  }
 0x113   : > { %s2533_s9 = sshll.u32 %s416_s8, 7  ;;  %s410_s3 = scalar_lea.vmem [#allocation6], %s2530_s30 }
 0x114   : > { %s419_s26 = sshll.u32 %s410_s3, 4  ;;  %s5127_s1 = sld [smem:[#allocation49_spill]]  ;;  %s4159_s26 = int_to_ptr.vmem [resolvable:$true] %s419_s26 }
 0x115   : > { %p5128_p5 = scmp.lt.s32.totalorder %s3678_s28, 8  ;;  %s4169_s8 = scalar_lea.sflag [#allocation7], %s406_s23 }
 0x117   : > { %p4165_p1 = pnand %p5128_p5, %p4100_p6 }
 0x119   : > { %p3400_p2 = pneg %p4165_p1 }
 0x11a   : > { %s4157_s22 = scalar_lea.hbm %s5127_s1, %s2533_s9  ;;  %s3403_s3 = scalar_lea.hbm %s5127_s1, 8192 }
 0x11b   : > { %s3398_s14 = scalar_lea.hbm %s4157_s22, 2048  ;;  %p3404_p6 = scmp.lt.u32.totalorder %s4157_s22, %s5127_s1 }
 0x11c   : > { %p3399_p3 = scmp.ne.s32.totalorder %s4157_s22, %s3398_s14  ;;  %p3405_p8 = scmp.lt.u32.totalorder %s3403_s3, %s3398_s14 }
 0x11d   : > { %p3407_p13 = scmp.lt.u32.totalorder %s3398_s14, %s4157_s22 }
 0x11e   : > { %p3401_p9 = pnand %p3400_p2, %p3399_p3  ;;  %p3406_p10 = por %p3405_p8, %p3404_p6 }
 0x120   : > { %p3402_p4 = pneg %p3401_p9  ;;  %p3408_p7 = por %p3407_p13, %p3406_p10 }
 0x122   : > { %p3409_p5 = pnand %p3408_p7, %p3402_p4 }
 0x124   : > { %3412 = shalt.err (!%p3409_p5)
}
 0x125   : > { %s3413_s21 = scalar_lea.vmem %s4159_s26, 2048  ;;  %s3691_s4 = smov [#allocation6]  }
 0x126   : > { %p3414_p3 = scmp.ne.s32.totalorder %s4159_s26, %s3413_s21  ;;  %s3418_s23 = sshll.u32 %s3691_s4, 4  ;;  %s3419_s23 = int_to_ptr.vmem [resolvable:$false] %s3418_s23 }
 0x127   : > { %s3420_s7 = scalar_lea.vmem %s3419_s23, 4096  ;;  %p3421_p0 = scmp.lt.s32.totalorder %s4159_s26, %s3419_s23 }
 0x128   : > { %p3416_p9 = pnand %p3414_p3, %p3400_p2  ;;  %p3422_p6 = scmp.lt.s32.totalorder %s3420_s7, %s3413_s21 }
 0x12a   : > { %p3417_p12 = pneg %p3416_p9  ;;  %p3423_p8 = por %p3422_p6, %p3421_p0 }
 0x12c   : > { %p3424_p10 = pnand %p3423_p8, %p3417_p12 }
 0x12e   : > { %3427 = shalt.err (!%p3424_p10)
}
 0x12f   : > { %s5130_s0 = smov 8   ;;  %s5131_s30 = smov 128  }
 0x130   : > { %s5132_s10 = sld [smem:[#allocation35_spill]]  ;;  %s5133_s19 = sld [smem:[#allocation34_spill]] }
 0x131   : > { %s5134_s14 = sld [smem:[#allocation33_spill]]  ;;  %p115_p0 = scmp.eq.s32.totalorder %s4137_s5, 0 }
 0x132   : > { %2888 = dma.hbm_to_vmem [thread:$0]  (!%p4165_p1), %s4157_s22, 2048, %s4159_s26, %s4169_s8, %s5131_s30, %s5131_s30, %s5130_s0  }
 0x133   : > { %p5135_p4 = scmp.eq.s32.totalorder %s3678_s28, 0  ;;  %p5136_p7 = scmp.eq.s32.totalorder %s3837_s29, 0 }
 0x134   : > { %s2538_s24 = sshll.u32 %s3674_s27, 4  ;;  %s5138_s4 = sld [smem:[#allocation51_spill]] }
 0x135   : > { %p5139_p1 = scmp.lt.s32.totalorder %s3678_s28, 8 }
 0x136   : > { %s117_s6 = sadd.s32 1, %s5132_s10  ;;  %p124_p12 = scmp.ne.s32.totalorder %s5132_s10, %s5133_s19 }
 0x137   : > { %p130_p2 = scmp.ne.s32.totalorder %s5133_s19, %s5134_s14  ;;  %s454_s3 = sand.u32 1, %s5132_s10  }
 0x138   : > { %s4207_s9 = scalar_select %p115_p0, %s5132_s10, %s117_s6  }
 0x139   : > { %p126_p13 = por %p124_p12, %p5135_p4  ;;  %p4213_p5 = por %p130_p2, %p5136_p7 }
 0x13a   : > { %s4224_s26 = scalar_lea.hbm %s5138_s4, %s2538_s24  ;;  %s455_s22 = scalar_lea.vmem [#allocation11], %s454_s3 }
 0x13b   : > { %s5137_s16 = scalar_select %p4213_p5, 1, 0 }
 0x13c   : > { %s462_s5 = sshll.u32 %s455_s22, 4  ;;  %p4230_p3 = pnand %p5139_p1, %p126_p13  ;;  %s463_s5 = int_to_ptr.vmem [resolvable:$true] %s462_s5 }
 0x13d   : > { %s3428_s23 = scalar_lea.hbm %s4224_s26, 16  ;;  %s3433_s30 = scalar_lea.hbm %s5138_s4, 32 }
 0x13e   : > { %p3429_p9 = scmp.ne.s32.totalorder %s4224_s26, %s3428_s23  ;;  %p3430_p6 = pneg %p4230_p3 }
 0x13f   : > { %p3434_p0 = scmp.lt.u32.totalorder %s4224_s26, %s5138_s4  ;;  %p3435_p12 = scmp.lt.u32.totalorder %s3433_s30, %s3428_s23 }
 0x140   : > { %p3431_p8 = pnand %p3430_p6, %p3429_p9  ;;  %p3437_p4 = scmp.lt.u32.totalorder %s3428_s23, %s4224_s26 }
 0x141   : > { %p3436_p2 = por %p3435_p12, %p3434_p0 }
 0x142   : > { %p3432_p10 = pneg %p3431_p8 }
 0x143   : > { %p3438_p13 = por %p3437_p4, %p3436_p2 }
 0x145   : > { %p3439_p7 = pnand %p3438_p13, %p3432_p10 }
 0x147   : > { %3442 = shalt.err (!%p3439_p7)
}
 0x148   : > { %s3443_s6 = scalar_lea.vmem %s463_s5, 16  ;;  %s3692_s2 = smov [#allocation11]  }
 0x149   : > { %p3444_p1 = scmp.ne.s32.totalorder %s463_s5, %s3443_s6  ;;  %s3448_s21 = sshll.u32 %s3692_s2, 4  ;;  %s3449_s21 = int_to_ptr.vmem [resolvable:$false] %s3448_s21 }
 0x14a   : > { %s3450_s22 = scalar_lea.vmem %s3449_s21, 32  ;;  %p3451_p5 = scmp.lt.s32.totalorder %s463_s5, %s3449_s21 }
 0x14b   : > { %p3446_p9 = pnand %p3444_p1, %p3430_p6  ;;  %p3452_p11 = scmp.lt.s32.totalorder %s3450_s22, %s3443_s6 }
 0x14d   : > { %p3447_p8 = pneg %p3446_p9  ;;  %p3453_p0 = por %p3452_p11, %p3451_p5 }
 0x14f   : > { %p3454_p12 = pnand %p3453_p0, %p3447_p8 }
 0x151   : > { %3457 = shalt.err (!%p3454_p12)
}
 0x152   : > { %2894 = dma.hbm_to_vmem [thread:$0]  (!%p4230_p3), %s4224_s26, 16, %s463_s5, %s3991_s13  }
 0x153   : > { %s5141_s0 = sld [smem:[#allocation52_spill]]  ;;  %s472_s19 = scalar_lea.vmem [#allocation12], %s454_s3 }
 0x154   : > { %s479_s14 = sshll.u32 %s472_s19, 4  ;;  %s5142_s6 = sand.u32 1, %s3678_s28   ;;  %s480_s14 = int_to_ptr.vmem [resolvable:$true] %s479_s14 }
 0x155   : > { %s470_s2 = scalar_lea.sflag [#allocation13], %s5142_s6 }
 0x159   : > { %s4261_s30 = scalar_lea.hbm %s5141_s0, %s2538_s24  ;;  %s3463_s24 = scalar_lea.hbm %s5141_s0, 32 }
 0x15a   : > { %s3458_s21 = scalar_lea.hbm %s4261_s30, 16  ;;  %p3464_p2 = scmp.lt.u32.totalorder %s4261_s30, %s5141_s0 }
 0x15b   : > { %p3459_p11 = scmp.ne.s32.totalorder %s4261_s30, %s3458_s21  ;;  %p3465_p4 = scmp.lt.u32.totalorder %s3463_s24, %s3458_s21 }
 0x15c   : > { %p3467_p7 = scmp.lt.u32.totalorder %s3458_s21, %s4261_s30 }
 0x15d   : > { %p3461_p5 = pnand %p3459_p11, %p3430_p6  ;;  %p3466_p13 = por %p3465_p4, %p3464_p2 }
 0x15f   : > { %p3462_p10 = pneg %p3461_p5  ;;  %p3468_p1 = por %p3467_p7, %p3466_p13 }
 0x161   : > { %p3469_p9 = pnand %p3468_p1, %p3462_p10 }
 0x163   : > { %3472 = shalt.err (!%p3469_p9)
}
 0x164   : > { %s3473_s3 = scalar_lea.vmem %s480_s14, 16  ;;  %s3693_s22 = smov [#allocation12]  }
 0x165   : > { %p3474_p8 = scmp.ne.s32.totalorder %s480_s14, %s3473_s3  ;;  %s3478_s23 = sshll.u32 %s3693_s22, 4  ;;  %s3479_s23 = int_to_ptr.vmem [resolvable:$false] %s3478_s23 }
 0x166   : > { %s3480_s7 = scalar_lea.vmem %s3479_s23, 32  ;;  %p3481_p11 = scmp.lt.s32.totalorder %s480_s14, %s3479_s23 }
 0x167   : > { %p3476_p0 = pnand %p3474_p8, %p3430_p6  ;;  %p3482_p5 = scmp.lt.s32.totalorder %s3480_s7, %s3473_s3 }
 0x169   : > { %p3477_p12 = pneg %p3476_p0  ;;  %p3483_p2 = por %p3482_p5, %p3481_p11 }
 0x16b   : > { %p3484_p4 = pnand %p3483_p2, %p3477_p12 }
 0x16d   : > { %3487 = shalt.err (!%p3484_p4)
}
 0x16e   : > { %2897 = dma.hbm_to_vmem [thread:$0]  (!%p4230_p3), %s4261_s30, 16, %s480_s14, %s470_s2  }
 0x16f   : > { %s5143_s19 = sld [smem:[#allocation43_spill]] }
 0x175   : > { %p5144_p10 = scmp.ne.s32.totalorder %s5143_s19, 0 }
 0x176   : > { %s5145_s6 = sld [smem:[#allocation37_spill]] (!%p5144_p10)  ;;  %p5146_p6 = scmp.ne.s32.totalorder (!%p5144_p10), %s5116_s11, 0 }
 0x177   : > { %488 = sbr.rel (%p5144_p10) target bundleno = 2149 (0x865), region = 60 }
 0x17c   : > { %s4289_s21 = sand.u32 (!%p5144_p10), 1, %s5145_s6  }
 0x17d   : > { %s2541_s13 = sshll.u32 (!%p5144_p10), %s4289_s21, 7  ;;  %s491_s26 = scalar_lea.sflag (!%p5144_p10), [#allocation7], %s4289_s21 }
 0x17e   : > { %s4295_s24 = scalar_lea.vmem [#allocation6], %s2541_s13 }
 0x17f   : > { %3581 = dma.done.wait (%p5146_p6), %s491_s26, 2048  }
 0x180   : > { %3583 = vsyncadd (%p5146_p6), %s491_s26, 4294965248  ;;  %s5147_s8 = sld [smem:[#allocation44_spill]]  ;;  %s499_s30 = sand.u32 1, %s3837_s29  }
 0x181   : > { %s501_s14 = sand.u32 1, %s3634_s17   ;;  %s500_s10 = scalar_lea.sflag [#allocation10], %s499_s30 }
 0x182   : > { %s2542_s2 = sshll.u32 %s501_s14, 7 }
 0x183   : > { %s4303_s5 = scalar_lea.vmem [#allocation9], %s2542_s2 }
 0x186   : > { %p5148_p3 = scmp.ne.s32.totalorder %s5147_s8, 0 }
 0x188   : > { %3585 = dma.done.wait (%p5148_p3), %s500_s10, 2048  }
 0x189   : > { %3587 = vsyncadd (%p5148_p3), %s500_s10, 4294965248  ;;  %s5149_s3 = sld [smem:[#allocation34_spill]]  ;;  %p5150_p13 = scmp.ne.s32.totalorder %s5137_s16, 0 }
 0x18f   : > { %s510_s22 = sand.u32 1, %s5149_s3  }
 0x190   : > { %s511_s23 = scalar_lea.vmem [#allocation11], %s510_s22 }
 0x191   : > { %3589 = dma.done.wait (%p5150_p13), %s500_s10, 16  }
 0x192   : > { %3591 = vsyncadd (%p5150_p13), %s500_s10, 4294967280  ;;  %s517_s11 = scalar_lea.sflag [#allocation13], %s499_s30  ;;  %s519_s7 = scalar_lea.vmem [#allocation12], %s510_s22 }
 0x193   : > { %3593 = dma.done.wait (%p5150_p13), %s517_s11, 16  }
 0x194   : > { %3595 = vsyncadd (%p5150_p13), %s517_s11, 4294967280  ;;  %p5151_p7 = scmp.eq.s32.totalorder %s3837_s29, 0 }
 0x196   : > { %3597 = dma.done.wait (%p5151_p7), [#allocation13], 1024   ;;  %p5152_p1 = pmov %p5151_p7 }
 0x198   : > { %3599 = vsyncadd (%p5152_p1), [#allocation13], 4294966272  ;;  %p5153_p9 = pmov %p5152_p1 }
 0x199   : > { %p5154_p8 = pmov %p5152_p1 }
 0x19a   : > { %3601 = dma.done.wait (%p5153_p9), [#allocation16], 2064  }
 0x19b   : > { %3603 = vsyncadd (%p5154_p8), [#allocation16], 4294965232  ;;  %p5155_p0 = pmov %p5152_p1 }
 0x19d   : > { %3605 = dma.done.wait (%p5155_p0), [#allocation19], 1056   ;;  %p5156_p12 = pmov %p5155_p0 }
 0x19e   : > { %p5157_p11 = pmov %p5155_p0 }
 0x19f   : > { %3607 = vsyncadd (%p5156_p12), [#allocation19], 4294966240 }
 0x1a0   : > { %3609 = dma.done.wait (%p5157_p11), [#allocation22], 16   ;;  %p5158_p5 = pmov %p5155_p0 }
 0x1a1   : > { %v4334_v0 = vld [vmem:[%s511_s23] sm:$0x1]  ;;  %s4340_s16 = scalar_lea.vmem [#allocation23], %s2541_s13  ;;  %s5159_s19 = sld [smem:[#allocation39_spill]] }
 0x1a2   : > { %3611 = vsyncadd (%p5158_p5), [#allocation22], 4294967280  ;;  %v4336_v1 = vld [vmem:[%s519_s7] sm:$0x1] }
 0x1a7   : > { %p2550_p2 = scmp.ne.s32.totalorder %s5159_s19, 0 }
 0x1a8   : > { %v3060_v2 = vld [vmem:[#allocation14] sm:$0xff] (!%p2550_p2)   ;;  %v620_v3 = vlaneseq (!%p2550_p2)  ;;  %v3061_v4 = vld [vmem:[#allocation14 + $0x8] sm:$0xff] (!%p2550_p2)   ;;  %v3062_v6 = vld [vmem:[#allocation14 + $0x10] sm:$0xff] (!%p2550_p2)   ;;  %vm855_vm0 = vcmask (!%p2550_p2), 7168  }
 0x1a9   : > { %602 = sbr.rel (%p2550_p2) target bundleno = 685 (0x2ad), region = 104  ;;  %2656 = vmatprep.subr.bf16.mxu0 (!%p2550_p2), %v3060_v2  ;;  %2784 = vmatprep.subr.bf16.mxu1 (!%p2550_p2), %v3060_v2  ;;  %v3063_v9 = vld [vmem:[#allocation14 + $0x18] sm:$0xff] (!%p2550_p2)   ;;  %v604_v12 = vld [vmem:[%s4295_s24 + $0x8] sm:$0xff] (!%p2550_p2)  ;;  %v3066_v27 = vld [vmem:[#allocation14 + $0x30] sm:$0xff] (!%p2550_p2)  }
 0x1aa   : > { %v621_v5 = vshrl.u32 (!%p2550_p2), %v620_v3, 7  ;;  %2657 = vmatpush3.bf16.msra.mxu0 (!%p2550_p2), %v3060_v2  ;;  %2792 = vmatpush3.bf16.msra.mxu1 (!%p2550_p2), %v3060_v2  ;;  %v603_v11 = vld [vmem:[%s4295_s24] sm:$0xff] (!%p2550_p2)  ;;  %v612_v16 = vld [vmem:[%s4295_s24 + $0x48] sm:$0xff] (!%p2550_p2)  ;;  %v605_v28 = vld [vmem:[%s4295_s24 + $0x10] sm:$0xff] (!%p2550_p2) }
 0x1ab   : > { %2658 = vmatprep.subr.bf16.mxu0 (!%p2550_p2), %v3061_v4  ;;  %2785 = vmatprep.subr.bf16.mxu1 (!%p2550_p2), %v3061_v4  ;;  %v611_v13 = vld [vmem:[%s4295_s24 + $0x40] sm:$0xff] (!%p2550_p2)  ;;  %v3065_v26 = vld [vmem:[#allocation14 + $0x28] sm:$0xff] (!%p2550_p2)   ;;  %v606_v29 = vld [vmem:[%s4295_s24 + $0x18] sm:$0xff] (!%p2550_p2) }
 0x1ac   : > { %v622_v7 = vsub.s32 (!%p2550_p2), 0, %v621_v5  ;;  %v3064_v22 = vld [vmem:[#allocation14 + $0x20] sm:$0xff] (!%p2550_p2)   ;;  %v613_v30 = vld [vmem:[%s4295_s24 + $0x50] sm:$0xff] (!%p2550_p2)  ;;  %v614_v31 = vld [vmem:[%s4295_s24 + $0x58] sm:$0xff] (!%p2550_p2) }
 0x1ad   : > { %v607_v32 = vld [vmem:[%s4295_s24 + $0x20] sm:$0xff] (!%p2550_p2)  ;;  %v608_v33 = vld [vmem:[%s4295_s24 + $0x28] sm:$0xff] (!%p2550_p2)  ;;  %v609_v50 = vld [vmem:[%s4295_s24 + $0x30] sm:$0xff] (!%p2550_p2) }
 0x1ae   : > { %v4344_v8 = vrot.slane (!%p2550_p2), %v4334_v0, %v622_v7  ;;  %2659 = vmatpush3.bf16.msra.mxu0 (!%p2550_p2), %v3061_v4  ;;  %2793 = vmatpush3.bf16.msra.mxu1 (!%p2550_p2), %v3061_v4  ;;  %v4347_v10 = vrot.slane (!%p2550_p2), %v4336_v1, %v622_v7  ;;  %v615_v34 = vld [vmem:[%s4295_s24 + $0x60] sm:$0xff] (!%p2550_p2)  ;;  %v616_v35 = vld [vmem:[%s4295_s24 + $0x68] sm:$0xff] (!%p2550_p2)  ;;  %v610_v54 = vld [vmem:[%s4295_s24 + $0x38] sm:$0xff] (!%p2550_p2) }
 0x1af   : > { %2660 = vmatprep.subr.bf16.mxu0 (!%p2550_p2), %v3062_v6  ;;  %2786 = vmatprep.subr.bf16.mxu1 (!%p2550_p2), %v3062_v6  ;;  %v3067_v44 = vld [vmem:[#allocation14 + $0x38] sm:$0xff] (!%p2550_p2)   ;;  %v617_v55 = vld [vmem:[%s4295_s24 + $0x70] sm:$0xff] (!%p2550_p2) }
 0x1b0   : > { %v625_v14 = vmul.f32 %v4344_v8, %v603_v11  ;;  %v626_v15 = vmul.f32 %v4344_v8, %v604_v12  ;;  %v633_v17 = vmul.f32 %v4344_v8, %v611_v13  ;;  %v634_v18 = vmul.f32 %v4344_v8, %v612_v16  ;;  %v618_v56 = vld [vmem:[%s4295_s24 + $0x78] sm:$0xff]  ;;  %v2551_v12 = vld [vmem:[#allocation15] ss:$0 sm:$0xff] }
 0x1b1   : > { %v627_v36 = vmul.f32 %v4344_v8, %v605_v28  ;;  %v628_v37 = vmul.f32 %v4344_v8, %v606_v29  ;;  %v635_v38 = vmul.f32 %v4344_v8, %v613_v30  ;;  %v636_v39 = vmul.f32 %v4344_v8, %v614_v31 }
 0x1b2   : > { %2661 = vmatpush3.bf16.msra.mxu0 %v3062_v6  ;;  %2794 = vmatpush3.bf16.msra.mxu1 %v3062_v6  ;;  %v647_v19 = vadd.f32 %v4347_v10, %v625_v14  ;;  %v648_v20 = vadd.f32 %v4347_v10, %v626_v15  ;;  %v655_v21 = vadd.f32 %v4347_v10, %v633_v17 }
 0x1b3   : > { %2662 = vmatprep.subr.bf16.mxu0 %v3063_v9  ;;  %2787 = vmatprep.subr.bf16.mxu1 %v3063_v9  ;;  %v656_v23 = vadd.f32 %v4347_v10, %v634_v18  ;;  %v629_v40 = vmul.f32 %v4344_v8, %v607_v32  ;;  %v630_v41 = vmul.f32 %v4344_v8, %v608_v33 }
 0x1b4   : > { %v663_v24 = vpack.c.bf16 %v648_v20, %v647_v19  ;;  %v637_v42 = vmul.f32 %v4344_v8, %v615_v34  ;;  %v638_v43 = vmul.f32 %v4344_v8, %v616_v35  ;;  %v649_v45 = vadd.f32 %v4347_v10, %v627_v36 }
 0x1b5   : > { %v667_v25 = vpack.c.bf16 %v656_v23, %v655_v21  ;;  %v650_v46 = vadd.f32 %v4347_v10, %v628_v37  ;;  %v657_v47 = vadd.f32 %v4347_v10, %v635_v38  ;;  %v658_v48 = vadd.f32 %v4347_v10, %v636_v39 }
 0x1b6   : > { %2663 = vmatpush3.bf16.msra.mxu0 %v3063_v9  ;;  %2795 = vmatpush3.bf16.msra.mxu1 %v3063_v9  ;;  %v651_v49 = vadd.f32 %v4347_v10, %v629_v40  ;;  %v652_v51 = vadd.f32 %v4347_v10, %v630_v41  ;;  %v659_v52 = vadd.f32 %v4347_v10, %v637_v42 }
 0x1b7   : > { %2664 = vmatprep.subr.bf16.mxu0 %v3064_v22  ;;  %2788 = vmatprep.subr.bf16.mxu1 %v3064_v22  ;;  %v660_v53 = vadd.f32 %v4347_v10, %v638_v43  ;;  %v664_v57 = vpack.c.bf16 %v650_v46, %v649_v45  ;;  %v631_v58 = vmul.f32 %v4344_v8, %v609_v50 }
 0x1b8   : > { %2672 = vmatprep.mubr.bf16.mxu0 %v663_v24  ;;  %2680 = vmatprep.mubr.bf16.mxu1 %v667_v25  ;;  %v668_v59 = vpack.c.bf16 %v658_v48, %v657_v47  ;;  %v632_v60 = vmul.f32 %v4344_v8, %v610_v54  ;;  %v639_v61 = vmul.f32 %v4344_v8, %v617_v55 }
 0x1b9   : > { %v640_v62 = vmul.f32 %v4344_v8, %v618_v56  ;;  %v665_v63 = vpack.c.bf16 %v652_v51, %v651_v49  ;;  %v669_v2 = vpack.c.bf16 %v660_v53, %v659_v52  ;;  %v653_v3 = vadd.f32 %v4347_v10, %v631_v58 }
 0x1ba   : > { %2665 = vmatpush3.bf16.msra.mxu0 %v3064_v22  ;;  %2796 = vmatpush3.bf16.msra.mxu1 %v3064_v22  ;;  %v654_v4 = vadd.f32 %v4347_v10, %v632_v60  ;;  %v661_v5 = vadd.f32 %v4347_v10, %v639_v61  ;;  %v3694_v8 = vmov -inf  }
 0x1bb   : > { %2666 = vmatprep.subr.bf16.mxu0 %v3065_v26  ;;  %2789 = vmatprep.subr.bf16.mxu1 %v3065_v26  ;;  %v662_v6 = vadd.f32 %v4347_v10, %v640_v62  ;;  %856 = vst.msk [vmem:[#allocation3] sm:$0xff] %vm855_vm0, %v3694_v8  ;;  %857 = vst.msk [vmem:[#allocation3 + $0x8] sm:$0xff] %vm855_vm0, %v3694_v8  ;;  %v3695_v10 = vmov 0.0  }
 0x1bc   : > { %v666_v7 = vpack.c.bf16 %v654_v4, %v653_v3  ;;  %858 = vst.msk [vmem:[#allocation3 + $0x10] sm:$0xff] %vm855_vm0, %v3694_v8  ;;  %859 = vst.msk [vmem:[#allocation3 + $0x18] sm:$0xff] %vm855_vm0, %v3694_v8 }
 0x1bd   : > { %v670_v9 = vpack.c.bf16 %v662_v6, %v661_v5  ;;  %860 = vst.msk [vmem:[#allocation3 + $0x20] sm:$0xff] %vm855_vm0, %v3694_v8  ;;  %861 = vst.msk [vmem:[#allocation3 + $0x28] sm:$0xff] %vm855_vm0, %v3694_v8 }
 0x1be   : > { %2667 = vmatpush3.bf16.msra.mxu0 %v3065_v26  ;;  %2797 = vmatpush3.bf16.msra.mxu1 %v3065_v26  ;;  %862 = vst.msk [vmem:[#allocation3 + $0x30] sm:$0xff] %vm855_vm0, %v3694_v8  ;;  %863 = vst.msk [vmem:[#allocation3 + $0x38] sm:$0xff] %vm855_vm0, %v3694_v8 }
 0x1bf   : > { %2668 = vmatprep.subr.bf16.mxu0 %v3066_v27  ;;  %2790 = vmatprep.subr.bf16.mxu1 %v3066_v27  ;;  %864 = vst.msk [vmem:[#allocation3 + $0x40] sm:$0xff] %vm855_vm0, %v3694_v8  ;;  %865 = vst.msk [vmem:[#allocation3 + $0x48] sm:$0xff] %vm855_vm0, %v3694_v8 }
 0x1c0   : > { %866 = vst.msk [vmem:[#allocation3 + $0x50] sm:$0xff] %vm855_vm0, %v3694_v8  ;;  %867 = vst.msk [vmem:[#allocation3 + $0x58] sm:$0xff] %vm855_vm0, %v3694_v8 }
 0x1c1   : > { %868 = vst.msk [vmem:[#allocation3 + $0x60] sm:$0xff] %vm855_vm0, %v3694_v8  ;;  %869 = vst.msk [vmem:[#allocation3 + $0x68] sm:$0xff] %vm855_vm0, %v3694_v8 }
 0x1c2   : > { %2669 = vmatpush3.bf16.msra.mxu0 %v3066_v27  ;;  %2798 = vmatpush3.bf16.msra.mxu1 %v3066_v27  ;;  %870 = vst.msk [vmem:[#allocation3 + $0x70] sm:$0xff] %vm855_vm0, %v3694_v8  ;;  %871 = vst.msk [vmem:[#allocation3 + $0x78] sm:$0xff] %vm855_vm0, %v3694_v8 }
 0x1c3   : > { %2670 = vmatprep.subr.bf16.mxu0 %v3067_v44  ;;  %2791 = vmatprep.subr.bf16.mxu1 %v3067_v44  ;;  %872 = vst.msk [vmem:[#allocation4] sm:$0xff] %vm855_vm0, %v3695_v10  ;;  %873 = vst.msk [vmem:[#allocation4 + $0x8] sm:$0xff] %vm855_vm0, %v3695_v10 }
 0x1c4   : > { %874 = vst.msk [vmem:[#allocation4 + $0x10] sm:$0xff] %vm855_vm0, %v3695_v10  ;;  %875 = vst.msk [vmem:[#allocation4 + $0x18] sm:$0xff] %vm855_vm0, %v3695_v10 }
 0x1c5   : > { %876 = vst.msk [vmem:[#allocation4 + $0x20] sm:$0xff] %vm855_vm0, %v3695_v10  ;;  %877 = vst.msk [vmem:[#allocation4 + $0x28] sm:$0xff] %vm855_vm0, %v3695_v10 }
 0x1c6   : > { %2671 = vmatpush3.bf16.msra.mxu0 %v3067_v44  ;;  %2799 = vmatpush3.bf16.msra.mxu1 %v3067_v44  ;;  %878 = vst.msk [vmem:[#allocation4 + $0x30] sm:$0xff] %vm855_vm0, %v3695_v10  ;;  %879 = vst.msk [vmem:[#allocation4 + $0x38] sm:$0xff] %vm855_vm0, %v3695_v10 }
 0x1c7   : > { %880 = vst.msk [vmem:[#allocation4 + $0x40] sm:$0xff] %vm855_vm0, %v3695_v10  ;;  %881 = vst.msk [vmem:[#allocation4 + $0x48] sm:$0xff] %vm855_vm0, %v3695_v10 }
 0x1c8   : > { %882 = vst.msk [vmem:[#allocation4 + $0x50] sm:$0xff] %vm855_vm0, %v3695_v10  ;;  %883 = vst.msk [vmem:[#allocation4 + $0x58] sm:$0xff] %vm855_vm0, %v3695_v10 }
 0x1c9   : > { %2673 = vmatmul.mubr.bf16.vlgmr.msra.gmra.mrb[0].mxu0 %v664_v57  ;;  %2681 = vmatmul.mubr.bf16.vlgmr.msra.gmra.mrb[0].mxu1 %v668_v59  ;;  %884 = vst.msk [vmem:[#allocation4 + $0x60] sm:$0xff] %vm855_vm0, %v3695_v10  ;;  %885 = vst.msk [vmem:[#allocation4 + $0x68] sm:$0xff] %vm855_vm0, %v3695_v10 }
 0x1ca   : > { %2676 = vmatprep.mubr.bf16.mxu0 %v665_v63  ;;  %2684 = vmatprep.mubr.bf16.mxu1 %v669_v2  ;;  %886 = vst.msk [vmem:[#allocation4 + $0x70] sm:$0xff] %vm855_vm0, %v3695_v10  ;;  %887 = vst.msk [vmem:[#allocation4 + $0x78] sm:$0xff] %vm855_vm0, %v3695_v10 }
 0x1cb   : > { %888 = vst [vmem:[#allocation5] sm:$0xff] %v3695_v10  ;;  %889 = vst [vmem:[#allocation5 + $0x8] sm:$0xff] %v3695_v10 }
 0x1cc   : > { %890 = vst [vmem:[#allocation5 + $0x10] sm:$0xff] %v3695_v10  ;;  %891 = vst [vmem:[#allocation5 + $0x18] sm:$0xff] %v3695_v10 }
 0x1cd   : > { %892 = vst [vmem:[#allocation5 + $0x20] sm:$0xff] %v3695_v10  ;;  %893 = vst [vmem:[#allocation5 + $0x28] sm:$0xff] %v3695_v10 }
 0x1ce   : > { %894 = vst [vmem:[#allocation5 + $0x30] sm:$0xff] %v3695_v10  ;;  %895 = vst [vmem:[#allocation5 + $0x38] sm:$0xff] %v3695_v10 }
 0x1cf   : > { %896 = vst [vmem:[#allocation5 + $0x40] sm:$0xff] %v3695_v10  ;;  %897 = vst [vmem:[#allocation5 + $0x48] sm:$0xff] %v3695_v10 }
 0x1d0   : > { %898 = vst [vmem:[#allocation5 + $0x50] sm:$0xff] %v3695_v10  ;;  %899 = vst [vmem:[#allocation5 + $0x58] sm:$0xff] %v3695_v10 }
 0x1d1   : > { %2677 = vmatmul.mubr.bf16.gmra.mrb[4].mxu0 %v666_v7  ;;  %2685 = vmatmul.mubr.bf16.gmra.mrb[4].mxu1 %v670_v9  ;;  %900 = vst [vmem:[#allocation5 + $0x60] sm:$0xff] %v3695_v10  ;;  %901 = vst [vmem:[#allocation5 + $0x68] sm:$0xff] %v3695_v10 }
 0x1d2   : > { %902 = vst [vmem:[#allocation5 + $0x70] sm:$0xff] %v3695_v10  ;;  %903 = vst [vmem:[#allocation5 + $0x78] sm:$0xff] %v3695_v10 }
 0x29c   : > { %v2674_v11 = vpop.f32.mrb[0].mxu0  ;;  %v2682_v13 = vpop.f32.mrb[0].mxu1 }
 0x29d   : > { %v776_v14 = vpop.f32.mrb[1].mxu0  ;;  %v808_v15 = vpop.f32.mrb[1].mxu1  ;;  %v785_v18 = vadd.f32 %v2674_v11, %v2551_v12  ;;  %v817_v19 = vadd.f32 %v2682_v13, %v2551_v12 }
 0x29e   : > { %v2675_v16 = vpop.f32.mrb[2].mxu0  ;;  %v2683_v17 = vpop.f32.mrb[2].mxu1  ;;  %v777_v24 = vadd.f32 %v2551_v12, %v776_v14  ;;  %v809_v25 = vadd.f32 %v2551_v12, %v808_v15 }
 0x29f   : > { %v788_v20 = vadd.f32 %v2675_v16, %v2551_v12  ;;  %v820_v21 = vadd.f32 %v2683_v17, %v2551_v12  ;;  %v779_v22 = vpop.f32.mrb[3].mxu0  ;;  %v811_v23 = vpop.f32.mrb[3].mxu1 }
 0x2a0   : > { %v780_v26 = vadd.f32 %v2551_v12, %v779_v22  ;;  %v812_v27 = vadd.f32 %v2551_v12, %v811_v23 }
 0x2a1   : > { %v840_v28 = vpack.c.bf16 %v788_v20, %v785_v18  ;;  %v844_v29 = vpack.c.bf16 %v820_v21, %v817_v19 }
 0x2a2   : > { %v839_v30 = vpack.c.bf16 %v780_v26, %v777_v24  ;;  %v843_v31 = vpack.c.bf16 %v812_v27, %v809_v25 }
 0x2a3   : > { %848 = vst [vmem:[#allocation2 + $0x8] sm:$0xff] %v840_v28  ;;  %852 = vst [vmem:[#allocation2 + $0x28] sm:$0xff] %v844_v29 }
 0x2a4   : > { %847 = vst [vmem:[#allocation2] sm:$0xff] %v839_v30  ;;  %851 = vst [vmem:[#allocation2 + $0x20] sm:$0xff] %v843_v31  ;;  %v2678_v32 = vpop.f32.mrb[4].mxu0  ;;  %v2686_v33 = vpop.f32.mrb[4].mxu1 }
 0x2a5   : > { %v792_v34 = vpop.f32.mrb[5].mxu0  ;;  %v824_v35 = vpop.f32.mrb[5].mxu1  ;;  %v801_v38 = vadd.f32 %v2678_v32, %v2551_v12  ;;  %v833_v39 = vadd.f32 %v2686_v33, %v2551_v12 }
 0x2a6   : > { %v2679_v36 = vpop.f32.mrb[6].mxu0  ;;  %v2687_v37 = vpop.f32.mrb[6].mxu1  ;;  %v793_v44 = vadd.f32 %v2551_v12, %v792_v34  ;;  %v825_v45 = vadd.f32 %v2551_v12, %v824_v35 }
 0x2a7   : > { %v804_v40 = vadd.f32 %v2679_v36, %v2551_v12  ;;  %v836_v41 = vadd.f32 %v2687_v37, %v2551_v12  ;;  %v795_v42 = vpop.f32.mrb[7].mxu0  ;;  %v827_v43 = vpop.f32.mrb[7].mxu1 }
 0x2a8   : > { %v796_v46 = vadd.f32 %v2551_v12, %v795_v42  ;;  %v828_v47 = vadd.f32 %v2551_v12, %v827_v43 }
 0x2a9   : > { %v842_v48 = vpack.c.bf16 %v804_v40, %v801_v38  ;;  %v846_v49 = vpack.c.bf16 %v836_v41, %v833_v39 }
 0x2aa   : > { %v841_v50 = vpack.c.bf16 %v796_v46, %v793_v44  ;;  %v845_v51 = vpack.c.bf16 %v828_v47, %v825_v45 }
 0x2ab   : > { %850 = vst [vmem:[#allocation2 + $0x18] sm:$0xff] %v842_v48  ;;  %854 = vst [vmem:[#allocation2 + $0x38] sm:$0xff] %v846_v49 }
 0x2ac   : > { %849 = vst [vmem:[#allocation2 + $0x10] sm:$0xff] %v841_v50  ;;  %853 = vst [vmem:[#allocation2 + $0x30] sm:$0xff] %v845_v51 }
 0x2ad PF: > { %v3070_v52 = vld [vmem:[#allocation17 + $0x4] ss:$8 sps:$4 sm:$0xff]   ;;  %v3072_v53 = vld [vmem:[#allocation17] ss:$8 sps:$4 sm:$0xff]   ;;  %v3696_v54 = vmov 0   ;;  %v921_v58 = vlaneseq  ;;  %v907_v18 = vld [vmem:[%s4303_s5 + $0x18] sm:$0xff] }
 0x2ae   : > { %1112 = vmatprep.mubr.bf16.mxu0 %v3696_v54  ;;  %3068 = vset.pattern.permute.xlu1 %v3696_v54  ;;  %v3073_v55 = vld [vmem:[#allocation17 + $0x14] ss:$8 sps:$4 sm:$0xff]   ;;  %v3075_v56 = vld [vmem:[#allocation17 + $0x10] ss:$8 sps:$4 sm:$0xff]   ;;  %v3076_v57 = vld [vmem:[#allocation17 + $0x24] ss:$8 sps:$4 sm:$0xff]  }
 0x2af   : > { %1080 = vmatprep.subr.bf16.mxu0 %v3070_v52  ;;  %3069 = vset.pattern.permute.xlu0 %v3696_v54  ;;  %v3078_v59 = vld [vmem:[#allocation17 + $0x20] ss:$8 sps:$4 sm:$0xff]   ;;  %v3079_v60 = vld [vmem:[#allocation17 + $0x34] ss:$8 sps:$4 sm:$0xff]   ;;  %v4432_v61 = vshrl.u32 %v921_v58, 7  ;;  %vm1634_vm1 = vcmask 7168  }
 0x2b0   : > { %1081 = vmatpush1.bf16.msra.mxu0 %v3072_v53  ;;  %v3081_v62 = vld [vmem:[#allocation17 + $0x30] ss:$8 sps:$4 sm:$0xff]   ;;  %v3082_v63 = vld [vmem:[#allocation17 + $0x44] ss:$8 sps:$4 sm:$0xff]   ;;  %v3084_v3 = vld [vmem:[#allocation17 + $0x40] ss:$8 sps:$4 sm:$0xff]  }
 0x2b1   : > { %1082 = vmatprep.subr.bf16.mxu0 %v3073_v55  ;;  %v4435_v2 = vsub.s32 0, %v4432_v61  ;;  %v3085_v4 = vld [vmem:[#allocation17 + $0x54] ss:$8 sps:$4 sm:$0xff]   ;;  %v3087_v6 = vld [vmem:[#allocation17 + $0x50] ss:$8 sps:$4 sm:$0xff]   ;;  %v905_v9 = vld [vmem:[%s4303_s5 + $0x8] sm:$0xff] }
 0x2b2   : > { %v904_v7 = vld [vmem:[%s4303_s5] sm:$0xff]  ;;  %v3088_v8 = vld [vmem:[#allocation17 + $0x64] ss:$8 sps:$4 sm:$0xff]   ;;  %v911_v31 = vld [vmem:[%s4303_s5 + $0x38] sm:$0xff]  ;;  %s5160_s29 = sld [smem:[#allocation39_spill]] }
 0x2b3   : > { %v4439_v5 = vrot.slane %v4334_v0, %v4435_v2  ;;  %v4447_v12 = vrot.slane %v4336_v1, %v4435_v2  ;;  %v3090_v13 = vld [vmem:[#allocation17 + $0x60] ss:$8 sps:$4 sm:$0xff]   ;;  %v3091_v0 = vld [vmem:[#allocation17 + $0x74] ss:$8 sps:$4 sm:$0xff]   ;;  %v3093_v16 = vld [vmem:[#allocation17 + $0x70] ss:$8 sps:$4 sm:$0xff]  }
 0x2b4   : > { %1083 = vmatpush1.bf16.msra.mxu0 %v3075_v56  ;;  %v906_v17 = vld [vmem:[%s4303_s5 + $0x10] sm:$0xff]  ;;  %v908_v23 = vld [vmem:[%s4303_s5 + $0x20] sm:$0xff]  ;;  %v909_v24 = vld [vmem:[%s4303_s5 + $0x28] sm:$0xff] }
 0x2b5   : > { %1084 = vmatprep.subr.bf16.mxu0 %v3076_v57  ;;  %v926_v10 = vmul.f32 %v4439_v5, %v904_v7  ;;  %v927_v11 = vmul.f32 %v4439_v5, %v905_v9  ;;  %v928_v20 = vmul.f32 %v4439_v5, %v906_v17  ;;  %v929_v1 = vmul.f32 %v4439_v5, %v907_v18  ;;  %v910_v30 = vld [vmem:[%s4303_s5 + $0x30] sm:$0xff]  ;;  %v912_v37 = vld [vmem:[%s4303_s5 + $0x40] sm:$0xff]  ;;  %v913_v38 = vld [vmem:[%s4303_s5 + $0x48] sm:$0xff] }
 0x2b6   : > { %v930_v26 = vmul.f32 %v4439_v5, %v908_v23  ;;  %v931_v27 = vmul.f32 %v4439_v5, %v909_v24  ;;  %v932_v33 = vmul.f32 %v4439_v5, %v910_v30  ;;  %v933_v34 = vmul.f32 %v4439_v5, %v911_v31  ;;  %v914_v44 = vld [vmem:[%s4303_s5 + $0x50] sm:$0xff]  ;;  %v915_v45 = vld [vmem:[%s4303_s5 + $0x58] sm:$0xff]  ;;  %v916_v51 = vld [vmem:[%s4303_s5 + $0x60] sm:$0xff] }
 0x2b7   : > { %v948_v14 = vadd.f32 %v4447_v12, %v926_v10  ;;  %v949_v15 = vadd.f32 %v4447_v12, %v927_v11  ;;  %v950_v21 = vadd.f32 %v4447_v12, %v928_v20  ;;  %v951_v22 = vadd.f32 %v4447_v12, %v929_v1  ;;  %v917_v52 = vld [vmem:[%s4303_s5 + $0x68] sm:$0xff]  ;;  %v1209_v9 = vld [vmem:[#allocation2] sm:$0xff] }
 0x2b8   : > { %1085 = vmatpush1.bf16.msra.mxu0 %v3078_v59  ;;  %v952_v28 = vadd.f32 %v4447_v12, %v930_v26  ;;  %v953_v29 = vadd.f32 %v4447_v12, %v931_v27  ;;  %v954_v35 = vadd.f32 %v4447_v12, %v932_v33  ;;  %v955_v36 = vadd.f32 %v4447_v12, %v933_v34  ;;  %v918_v59 = vld [vmem:[%s4303_s5 + $0x70] sm:$0xff]  ;;  %p2576_p4 = scmp.ne.s32.totalorder %s5160_s29, 1 }
 0x2b9   : > { %1086 = vmatprep.subr.bf16.mxu0 %v3079_v60  ;;  %v964_v19 = vpack.c.bf16 %v949_v15, %v948_v14  ;;  %v965_v25 = vpack.c.bf16 %v951_v22, %v950_v21  ;;  %v934_v40 = vmul.f32 %v4439_v5, %v912_v37  ;;  %v935_v41 = vmul.f32 %v4439_v5, %v913_v38  ;;  %v919_v60 = vld [vmem:[%s4303_s5 + $0x78] sm:$0xff] }
 0x2ba   : > { %v966_v32 = vpack.c.bf16 %v953_v29, %v952_v28  ;;  %v967_v39 = vpack.c.bf16 %v955_v36, %v954_v35  ;;  %v936_v47 = vmul.f32 %v4439_v5, %v914_v44  ;;  %v937_v48 = vmul.f32 %v4439_v5, %v915_v45  ;;  %2704 = vmatprep.mubr.bf16.mxu1 %v1209_v9 }
 0x2bb   : > { %v956_v42 = vadd.f32 %v4447_v12, %v934_v40  ;;  %v957_v43 = vadd.f32 %v4447_v12, %v935_v41  ;;  %v938_v55 = vmul.f32 %v4439_v5, %v916_v51  ;;  %v939_v56 = vmul.f32 %v4439_v5, %v917_v52 }
 0x2bc   : > { %1087 = vmatpush1.bf16.msra.mxu0 %v3081_v62  ;;  %v958_v49 = vadd.f32 %v4447_v12, %v936_v47  ;;  %v959_v50 = vadd.f32 %v4447_v12, %v937_v48  ;;  %v996_v10 = vsub.s32 1, %v4432_v61 }
 0x2bd   : > { %1088 = vmatprep.subr.bf16.mxu0 %v3082_v63  ;;  %v968_v46 = vpack.c.bf16 %v957_v43, %v956_v42  ;;  %v960_v57 = vadd.f32 %v4447_v12, %v938_v55  ;;  %v961_v58 = vadd.f32 %v4447_v12, %v939_v56  ;;  %v940_v63 = vmul.f32 %v4439_v5, %v918_v59 }
 0x2be   : > { %v969_v53 = vpack.c.bf16 %v959_v50, %v958_v49 }
 0x2bf   : > { %v970_v62 = vpack.c.bf16 %v961_v58, %v960_v57 }
 0x2c0   : > { %1089 = vmatpush1.bf16.msra.mxu0 %v3084_v3  ;;  %v941_v3 = vmul.f32 %v4439_v5, %v919_v60 }
 0x2c1   : > { %1090 = vmatprep.subr.bf16.mxu0 %v3085_v4  ;;  %v962_v4 = vadd.f32 %v4447_v12, %v940_v63 }
 0x2c4   : > { %1091 = vmatpush1.bf16.msra.mxu0 %v3087_v6  ;;  %v963_v6 = vadd.f32 %v4447_v12, %v941_v3 }
 0x2c5   : > { %1092 = vmatprep.subr.bf16.mxu0 %v3088_v8  ;;  %v988_v8 = vld [vmem:[#allocation18] sm:$0x3] }
 0x2c6   : > { %v971_v7 = vpack.c.bf16 %v963_v6, %v962_v4  ;;  %v4502_v11 = vrot.slane %v988_v8, %v4435_v2 }
 0x2c8   : > { %1093 = vmatpush1.bf16.msra.mxu0 %v3090_v13 }
 0x2c9   : > { %1094 = vmatprep.subr.bf16.mxu0 %v3091_v0  ;;  %v4504_v0 = vrot.slane %v988_v8, %v996_v10 }
 0x2cc   : > { %1095 = vmatpush1.bf16.msra.mxu0 %v3093_v16 }
 0x2cf   : > { %1113 = vmatmul.mubr.bf16.vlgmr.msra.gmra.mrb[0].mxu0 %v964_v19 }
 0x2d0   : > { %1122 = vmatprep.mubr.bf16.mxu0 %v3696_v54 }
 0x2d7   : > { %1123 = vmatmul.mubr.bf16.gmra.mrb[4].mxu0 %v965_v25 }
 0x2d8   : > { %1132 = vmatprep.mubr.bf16.mxu0 %v3696_v54 }
 0x2df   : > { %1133 = vmatmul.mubr.bf16.gmra.mrb[8].mxu0 %v966_v32 }
 0x2e0   : > { %1142 = vmatprep.mubr.bf16.mxu0 %v3696_v54 }
 0x2e7   : > { %1143 = vmatmul.mubr.bf16.gmra.mrb[12].mxu0 %v967_v39 }
 0x2e8   : > { %1152 = vmatprep.mubr.bf16.mxu0 %v3696_v54 }
 0x2ef   : > { %1153 = vmatmul.mubr.bf16.gmra.mrb[16].mxu0 %v968_v46 }
 0x2f0   : > { %1162 = vmatprep.mubr.bf16.mxu0 %v3696_v54 }
 0x2f7   : > { %1163 = vmatmul.mubr.bf16.gmra.mrb[20].mxu0 %v969_v53 }
 0x2f8   : > { %1172 = vmatprep.mubr.bf16.mxu0 %v3696_v54 }
 0x2ff   : > { %1173 = vmatmul.mubr.bf16.gmra.mrb[24].mxu0 %v970_v62 }
 0x300   : > { %1182 = vmatprep.mubr.bf16.mxu0 %v3696_v54 }
 0x307   : > { %1183 = vmatmul.mubr.bf16.gmra.mrb[28].mxu0 %v971_v7 }
 0x3a2   : > { %v1114_v13 = vpop.f32.mrb[0].mxu0 }
 0x3a3   : > { %v1115_v5 = vadd.f32 %v1114_v13, %v4502_v11  ;;  %v1116_v14 = vpop.f32.mrb[1].mxu0 }
 0x3a4   : > { %v1118_v15 = vpop.f32.mrb[2].mxu0  ;;  %v1117_v16 = vadd.f32 %v1116_v14, %v4504_v0 }
 0x3a5   : > { %v1119_v12 = vadd.f32 %v1118_v15, %v4502_v11  ;;  %v1120_v54 = vpop.f32.mrb[3].mxu0 }
 0x3a6   : > { %v1121_v17 = vadd.f32 %v1120_v54, %v4504_v0 }
 0x3a7   : > { %v1193_v18 = vpack.c.bf16 %v1119_v12, %v1115_v5 }
 0x3a8   : > { %v4510_v19 = vpack.c.bf16 %v1121_v17, %v1117_v16 }
 0x3a9   : > { %2688 = vmatprep.subr.bf16.mxu1 %v1193_v18 }
 0x3aa   : > { %v1124_v61 = vpop.f32.mrb[4].mxu0  ;;  %2689 = vmatpush3.bf16.xpose.msra.mxu1 %v1193_v18  ;;  %2720 = vmatprep.subr.bf16.mxu0 %v4510_v19 }
 0x3ab   : > { %v1125_v2 = vadd.f32 %v1124_v61, %v4502_v11  ;;  %v1126_v20 = vpop.f32.mrb[5].mxu0  ;;  %2721 = vmatpush3.bf16.msra.mxu0 %v4510_v19 }
 0x3ac   : > { %v1128_v1 = vpop.f32.mrb[6].mxu0  ;;  %v1127_v23 = vadd.f32 %v1126_v20, %v4504_v0 }
 0x3ad   : > { %v1129_v21 = vadd.f32 %v1128_v1, %v4502_v11  ;;  %v1130_v22 = vpop.f32.mrb[7].mxu0 }
 0x3ae   : > { %v1131_v24 = vadd.f32 %v1130_v22, %v4504_v0 }
 0x3af   : > { %v1194_v25 = vpack.c.bf16 %v1129_v21, %v1125_v2 }
 0x3b0   : > { %v4518_v26 = vpack.c.bf16 %v1131_v24, %v1127_v23 }
 0x3b1   : > { %2690 = vmatprep.subr.bf16.mxu1 %v1194_v25 }
 0x3b2   : > { %v1134_v27 = vpop.f32.mrb[8].mxu0  ;;  %2691 = vmatpush3.bf16.xpose.msra.mxu1 %v1194_v25  ;;  %2722 = vmatprep.subr.bf16.mxu0 %v4518_v26 }
 0x3b3   : > { %v1135_v28 = vadd.f32 %v1134_v27, %v4502_v11  ;;  %v1136_v29 = vpop.f32.mrb[9].mxu0  ;;  %2723 = vmatpush3.bf16.msra.mxu0 %v4518_v26  ;;  %v1210_v27 = vld [vmem:[#allocation2 + $0x8] sm:$0xff] }
 0x3b4   : > { %v1138_v30 = vpop.f32.mrb[10].mxu0  ;;  %v1137_v33 = vadd.f32 %v1136_v29, %v4504_v0  ;;  %v1214_v29 = vld [vmem:[#allocation2 + $0x28] sm:$0xff] }
 0x3b5   : > { %v1139_v31 = vadd.f32 %v1138_v30, %v4502_v11  ;;  %v1140_v32 = vpop.f32.mrb[11].mxu0 }
 0x3b6   : > { %v1141_v34 = vadd.f32 %v1140_v32, %v4504_v0 }
 0x3b7   : > { %v1195_v35 = vpack.c.bf16 %v1139_v31, %v1135_v28  ;;  %v1211_v28 = vld [vmem:[#allocation2 + $0x10] sm:$0xff] }
 0x3b8   : > { %v4526_v36 = vpack.c.bf16 %v1141_v34, %v1137_v33 }
 0x3b9   : > { %2692 = vmatprep.subr.bf16.mxu1 %v1195_v35 }
 0x3ba   : > { %v1144_v37 = vpop.f32.mrb[12].mxu0  ;;  %2693 = vmatpush3.bf16.xpose.msra.mxu1 %v1195_v35  ;;  %2724 = vmatprep.subr.bf16.mxu0 %v4526_v36 }
 0x3bb   : > { %v1145_v38 = vadd.f32 %v1144_v37, %v4502_v11  ;;  %v1146_v39 = vpop.f32.mrb[13].mxu0  ;;  %2725 = vmatpush3.bf16.msra.mxu0 %v4526_v36 }
 0x3bc   : > { %v1148_v40 = vpop.f32.mrb[14].mxu0  ;;  %v1147_v43 = vadd.f32 %v1146_v39, %v4504_v0 }
 0x3bd   : > { %v1149_v41 = vadd.f32 %v1148_v40, %v4502_v11  ;;  %v1150_v42 = vpop.f32.mrb[15].mxu0 }
 0x3be   : > { %v1151_v44 = vadd.f32 %v1150_v42, %v4504_v0 }
 0x3bf   : > { %v1196_v45 = vpack.c.bf16 %v1149_v41, %v1145_v38 }
 0x3c0   : > { %v4534_v46 = vpack.c.bf16 %v1151_v44, %v1147_v43 }
 0x3c1   : > { %2694 = vmatprep.subr.bf16.mxu1 %v1196_v45 }
 0x3c2   : > { %v1154_v47 = vpop.f32.mrb[16].mxu0  ;;  %2695 = vmatpush3.bf16.xpose.msra.mxu1 %v1196_v45  ;;  %2726 = vmatprep.subr.bf16.mxu0 %v4534_v46 }
 0x3c3   : > { %v1155_v48 = vadd.f32 %v1154_v47, %v4502_v11  ;;  %v1156_v49 = vpop.f32.mrb[17].mxu0  ;;  %2727 = vmatpush3.bf16.msra.mxu0 %v4534_v46 }
 0x3c4   : > { %v1158_v50 = vpop.f32.mrb[18].mxu0  ;;  %v1157_v53 = vadd.f32 %v1156_v49, %v4504_v0 }
 0x3c5   : > { %v1159_v51 = vadd.f32 %v1158_v50, %v4502_v11  ;;  %v1160_v52 = vpop.f32.mrb[19].mxu0 }
 0x3c6   : > { %v1161_v55 = vadd.f32 %v1160_v52, %v4504_v0 }
 0x3c7   : > { %v1197_v56 = vpack.c.bf16 %v1159_v51, %v1155_v48  ;;  %v4618_v48 = vld [vmem:[#allocation3 + $0x18] sm:$0xff]  ;;  %v1314_v51 = vld [vmem:[#allocation3] sm:$0xff] }
 0x3c8   : > { %v4542_v57 = vpack.c.bf16 %v1161_v55, %v1157_v53 }
 0x3c9   : > { %2696 = vmatprep.subr.bf16.mxu1 %v1197_v56 }
 0x3ca   : > { %v1164_v58 = vpop.f32.mrb[20].mxu0  ;;  %2697 = vmatpush3.bf16.xpose.msra.mxu1 %v1197_v56  ;;  %2728 = vmatprep.subr.bf16.mxu0 %v4542_v57  ;;  %v4631_v56 = vld [vmem:[#allocation3 + $0x8] sm:$0xff] }
 0x3cb   : > { %v1165_v59 = vadd.f32 %v1164_v58, %v4502_v11  ;;  %v1166_v60 = vpop.f32.mrb[21].mxu0  ;;  %2729 = vmatpush3.bf16.msra.mxu0 %v4542_v57  ;;  %v4635_v58 = vld [vmem:[#allocation3 + $0x38] sm:$0xff] }
 0x3cc   : > { %v1168_v62 = vpop.f32.mrb[22].mxu0  ;;  %v1167_v4 = vadd.f32 %v1166_v60, %v4504_v0 }
 0x3cd   : > { %v1169_v63 = vadd.f32 %v1168_v62, %v4502_v11  ;;  %v1170_v3 = vpop.f32.mrb[23].mxu0  ;;  %v4640_v62 = vld [vmem:[#allocation3 + $0x30] sm:$0xff] }
 0x3ce   : > { %v1171_v6 = vadd.f32 %v1170_v3, %v4504_v0 }
 0x3cf   : > { %v1198_v7 = vpack.c.bf16 %v1169_v63, %v1165_v59 }
 0x3d0   : > { %v1206_v9 = vpack.c.bf16 %v1171_v6, %v1167_v4  ;;  %v4648_v4 = vld [vmem:[#allocation3 + $0x28] sm:$0xff] }
 0x3d1   : > { %2698 = vmatprep.subr.bf16.mxu1 %v1198_v7 }
 0x3d2   : > { %v1174_v8 = vpop.f32.mrb[24].mxu0  ;;  %2699 = vmatpush3.bf16.xpose.msra.mxu1 %v1198_v7  ;;  %2730 = vmatprep.subr.bf16.mxu0 %v1206_v9 }
 0x3d3   : > { %v1175_v10 = vadd.f32 %v1174_v8, %v4502_v11  ;;  %v1176_v13 = vpop.f32.mrb[25].mxu0  ;;  %2731 = vmatpush3.bf16.msra.mxu0 %v1206_v9 }
 0x3d4   : > { %v1178_v5 = vpop.f32.mrb[26].mxu0  ;;  %v1177_v12 = vadd.f32 %v1176_v13, %v4504_v0  ;;  %v4660_v13 = vld [vmem:[#allocation3 + $0x40] sm:$0xff] }
 0x3d5   : > { %v1179_v14 = vadd.f32 %v1178_v5, %v4502_v11  ;;  %v1180_v15 = vpop.f32.mrb[27].mxu0 }
 0x3d6   : > { %v1181_v54 = vadd.f32 %v1180_v15, %v4504_v0  ;;  %v4666_v15 = vld [vmem:[#allocation3 + $0x50] sm:$0xff] }
 0x3d7   : > { %v1199_v16 = vpack.c.bf16 %v1179_v14, %v1175_v10 }
 0x3d8   : > { %v1207_v17 = vpack.c.bf16 %v1181_v54, %v1177_v12 }
 0x3d9   : > { %2700 = vmatprep.subr.bf16.mxu1 %v1199_v16 }
 0x3da   : > { %v1184_v18 = vpop.f32.mrb[28].mxu0  ;;  %2701 = vmatpush3.bf16.xpose.msra.mxu1 %v1199_v16  ;;  %2732 = vmatprep.subr.bf16.mxu0 %v1207_v17  ;;  %v1325_v16 = vld [vmem:[#allocation3 + $0x58] sm:$0xff] }
 0x3db   : > { %v1185_v61 = vadd.f32 %v1184_v18, %v4502_v11  ;;  %v1186_v2 = vpop.f32.mrb[29].mxu0  ;;  %2733 = vmatpush3.bf16.msra.mxu0 %v1207_v17 }
 0x3dc   : > { %v1188_v20 = vpop.f32.mrb[30].mxu0  ;;  %v1187_v22 = vadd.f32 %v1186_v2, %v4504_v0  ;;  %v4683_v2 = vld [vmem:[#allocation3 + $0x60] sm:$0xff] }
 0x3dd   : > { %v1189_v1 = vadd.f32 %v1188_v20, %v4502_v11  ;;  %v1190_v21 = vpop.f32.mrb[31].mxu0  ;;  %v1212_v11 = vld [vmem:[#allocation2 + $0x18] sm:$0xff]  ;;  %v4685_v20 = vld [vmem:[#allocation3 + $0x48] sm:$0xff] }
 0x3de   : > { %v1191_v23 = vadd.f32 %v1190_v21, %v4504_v0  ;;  %v1213_v0 = vld [vmem:[#allocation2 + $0x20] sm:$0xff] }
 0x3df   : > { %v1200_v24 = vpack.c.bf16 %v1189_v1, %v1185_v61 }
 0x3e0   : > { %v1208_v25 = vpack.c.bf16 %v1191_v23, %v1187_v22 }
 0x3e1   : > { %2702 = vmatprep.subr.bf16.mxu1 %v1200_v24 }
 0x3e2   : > { %2703 = vmatpush3.bf16.xpose.msra.mxu1 %v1200_v24  ;;  %2734 = vmatprep.subr.bf16.mxu0 %v1208_v25 }
 0x3e3   : > { %2800 = vmatprep.subr.bf16.mxu1 %v4510_v19  ;;  %2735 = vmatpush3.bf16.msra.mxu0 %v1208_v25 }
 0x3e9   : > { %2705 = vmatmul.mubr.bf16.vlgmr.msra.gmra.mrb[0].mxu1 %v1210_v27  ;;  %v4697_v27 = vld [vmem:[#allocation3 + $0x78] sm:$0xff] }
 0x3ea   : > { %2808 = vmatpush3.bf16.msra.mxu1 %v4510_v19  ;;  %2708 = vmatprep.mubr.bf16.mxu1 %v1211_v28  ;;  %v1215_v19 = vld [vmem:[#allocation2 + $0x30] sm:$0xff] }
 0x3eb   : > { %2801 = vmatprep.subr.bf16.mxu1 %v4518_v26 }
 0x3ee   : > { %2809 = vmatpush3.bf16.msra.mxu1 %v4518_v26  ;;  %v1216_v26 = vld [vmem:[#allocation2 + $0x38] sm:$0xff] }
 0x3ef   : > { %2802 = vmatprep.subr.bf16.mxu1 %v4526_v36 }
 0x3f1   : > { %2709 = vmatmul.mubr.bf16.gmra.mrb[4].mxu1 %v1212_v11 }
 0x3f2   : > { %2810 = vmatpush3.bf16.msra.mxu1 %v4526_v36  ;;  %2712 = vmatprep.mubr.bf16.mxu1 %v1213_v0 }
 0x3f3   : > { %2803 = vmatprep.subr.bf16.mxu1 %v4534_v46 }
 0x3f6   : > { %2811 = vmatpush3.bf16.msra.mxu1 %v4534_v46  ;;  %v4616_v46 = vld [vmem:[#allocation3 + $0x10] sm:$0xff] }
 0x3f7   : > { %2804 = vmatprep.subr.bf16.mxu1 %v4542_v57 }
 0x3f9   : > { %2713 = vmatmul.mubr.bf16.gmra.mrb[8].mxu1 %v1214_v29 }
 0x3fa   : > { %2812 = vmatpush3.bf16.msra.mxu1 %v4542_v57  ;;  %2716 = vmatprep.mubr.bf16.mxu1 %v1215_v19 }
 0x3fb   : > { %2805 = vmatprep.subr.bf16.mxu1 %v1206_v9 }
 0x3fe   : > { %2813 = vmatpush3.bf16.msra.mxu1 %v1206_v9  ;;  %v4655_v9 = vld [vmem:[#allocation3 + $0x20] sm:$0xff] }
 0x3ff   : > { %2806 = vmatprep.subr.bf16.mxu1 %v1207_v17 }
 0x401   : > { %2717 = vmatmul.mubr.bf16.gmra.mrb[12].mxu1 %v1216_v26 }
 0x402   : > { %2814 = vmatpush3.bf16.msra.mxu1 %v1207_v17 }
 0x403   : > { %2807 = vmatprep.subr.bf16.mxu1 %v1208_v25 }
 0x406   : > { %2815 = vmatpush3.bf16.msra.mxu1 %v1208_v25  ;;  %v4693_v25 = vld [vmem:[#allocation3 + $0x70] sm:$0xff] }
 0x4bc   : > { %v4568_v30 = vpop.f32.mrb[0].mxu1 }
 0x4bd   : > { %1334 = vmax.xlane.f32.xlu0 %v4568_v30  ;;  %v4571_v31 = vpop.f32.mrb[1].mxu1 }
 0x4be   : > { %v4573_v32 = vpop.f32.mrb[2].mxu1 }
 0x4bf   : > { %1336 = vmax.xlane.f32.xlu1 %v4573_v32  ;;  %v4576_v33 = vpop.f32.mrb[3].mxu1 }
 0x4c1   : > { %1330 = vmax.xlane.f32.xlu0 %v4571_v31 }
 0x4c4   : > { %v4579_v34 = vpop.f32.mrb[4].mxu1 }
 0x4c5   : > { %1332 = vmax.xlane.f32.xlu0 %v4576_v33  ;;  %v4582_v35 = vpop.f32.mrb[5].mxu1 }
 0x4c6   : > { %v4584_v36 = vpop.f32.mrb[6].mxu1 }
 0x4c7   : > { %1344 = vmax.xlane.f32.xlu1 %v4584_v36  ;;  %v4587_v37 = vpop.f32.mrb[7].mxu1 }
 0x4c9   : > { %1342 = vmax.xlane.f32.xlu0 %v4579_v34 }
 0x4cb   : > { %1340 = vmax.xlane.f32.xlu1 %v4587_v37 }
 0x4cc   : > { %v4591_v38 = vpop.f32.mrb[8].mxu1 }
 0x4cd   : > { %1338 = vmax.xlane.f32.xlu0 %v4582_v35  ;;  %v4594_v39 = vpop.f32.mrb[9].mxu1 }
 0x4ce   : > { %v4596_v40 = vpop.f32.mrb[10].mxu1 }
 0x4cf   : > { %1346 = vmax.xlane.f32.xlu1 %v4594_v39  ;;  %v4599_v41 = vpop.f32.mrb[11].mxu1 }
 0x4d1   : > { %1350 = vmax.xlane.f32.xlu0 %v4591_v38 }
 0x4d3   : > { %1352 = vmax.xlane.f32.xlu1 %v4596_v40 }
 0x4d4   : > { %v4603_v42 = vpop.f32.mrb[12].mxu1 }
 0x4d5   : > { %v4605_v43 = vpop.f32.mrb[13].mxu1 }
 0x4d6   : > { %v4607_v44 = vpop.f32.mrb[14].mxu1  ;;  %1354 = vmax.xlane.f32.xlu0 %v4605_v43 }
 0x4d7   : > { %1348 = vmax.xlane.f32.xlu1 %v4599_v41  ;;  %v4611_v45 = vpop.f32.mrb[15].mxu1 }
 0x4da   : > { %1358 = vmax.xlane.f32.xlu0 %v4603_v42 }
 0x4db   : > { %1360 = vmax.xlane.f32.xlu1 %v4607_v44 }
 0x4df   : > { %1356 = vmax.xlane.f32.xlu1 %v4611_v45 }
 0x54a   : > { %v1335_v47 = vpop.xlane.xlu0 %1334 }
 0x54b   : > { %v4621_v49 = vmax.f32 %v4616_v46, %v1335_v47 }
 0x54c   : > { %v1337_v50 = vpop.xlane.xlu1 %1336 }
 0x54d   : > { %1902 = vst.msk [vmem:[#allocation3 + $0x10] sm:$0xff] %vm1634_vm1, %v4621_v49  ;;  %v4626_v52 = vmax.f32 %v4618_v48, %v1337_v50  ;;  %1438 = vperm.xlu1 %3068, %v4621_v49  }
 0x54e   : > { %v1331_v53 = vpop.xlane.xlu0 %1330 }
 0x54f   : > { %1903 = vst.msk [vmem:[#allocation3 + $0x18] sm:$0xff] %vm1634_vm1, %v4626_v52  ;;  %v1362_v55 = vmax.f32 %v1314_v51, %v1331_v53  ;;  %v1381_v11 = vsub.f32 %v4618_v48, %v4626_v52 }
 0x551   : > { %1900 = vst.msk [vmem:[#allocation3] sm:$0xff] %vm1634_vm1, %v1362_v55  ;;  %1428 = vperm.xlu0 %3069, %v1362_v55   ;;  %1443 = vperm.xlu1 %3068, %v4626_v52   ;;  %v1378_v21 = vsub.f32 %v1314_v51, %v1362_v55  ;;  %v1327_v51 = vld [vmem:[#allocation3 + $0x68] sm:$0xff]  ;;  %v1400_v52 = vmul.f32 1.442695, %v1381_v11 }
 0x552   : > { %v1333_v57 = vpop.xlane.xlu0 %1332 }
 0x553   : > { %v4638_v59 = vmax.f32 %v4631_v56, %v1333_v57  ;;  %v1394_v0 = vmul.f32 1.442695, %v1378_v21 }
 0x554   : > { %v1345_v60 = vpop.xlane.xlu1 %1344 }
 0x555   : > { %1901 = vst.msk [vmem:[#allocation3 + $0x8] sm:$0xff] %vm1634_vm1, %v4638_v59  ;;  %v4645_v63 = vmax.f32 %v4635_v58, %v1345_v60  ;;  %1433 = vperm.xlu1 %3068, %v4638_v59   ;;  %v1379_v47 = vsub.f32 %v4631_v56, %v4638_v59  ;;  %3094 = vpow2.f32 %v1394_v0  ;;  %v1380_v56 = vsub.f32 %v4616_v46, %v4621_v49 }
 0x556   : > { %v1343_v3 = vpop.xlane.xlu0 %1342  ;;  %3096 = vpow2.f32 %v1400_v52 }
 0x557   : > { %1907 = vst.msk [vmem:[#allocation3 + $0x38] sm:$0xff] %vm1634_vm1, %v4645_v63  ;;  %v4653_v6 = vmax.f32 %v4640_v62, %v1343_v3  ;;  %v1396_v59 = vmul.f32 1.442695, %v1379_v47  ;;  %v1385_v60 = vsub.f32 %v4635_v58, %v4645_v63 }
 0x558   : > { %v1341_v7 = vpop.xlane.xlu1 %1340 }
 0x559   : > { %1906 = vst.msk [vmem:[#allocation3 + $0x30] sm:$0xff] %vm1634_vm1, %v4653_v6  ;;  %v1367_v8 = vmax.f32 %v4648_v4, %v1341_v7  ;;  %v1398_v7 = vmul.f32 1.442695, %v1380_v56  ;;  %3098 = vpow2.f32 %v1396_v59  ;;  %v1384_v58 = vsub.f32 %v4640_v62, %v4653_v6 }
 0x55a   : > { %v1339_v10 = vpop.xlane.xlu0 %1338 }
 0x55b   : > { %1905 = vst.msk [vmem:[#allocation3 + $0x28] sm:$0xff] %vm1634_vm1, %v1367_v8  ;;  %v4664_v5 = vmax.f32 %v4655_v9, %v1339_v10  ;;  %1453 = vperm.xlu0 %3069, %v1367_v8   ;;  %v1383_v53 = vsub.f32 %v4648_v4, %v1367_v8  ;;  %v1408_v8 = vmul.f32 1.442695, %v1385_v60 }
 0x55c   : > { %v1347_v14 = vpop.xlane.xlu1 %1346 }
 0x55d   : > { %1904 = vst.msk [vmem:[#allocation3 + $0x20] sm:$0xff] %vm1634_vm1, %v4664_v5  ;;  %v4671_v12 = vmax.f32 %v4660_v13, %v1347_v14  ;;  %1448 = vperm.xlu1 %3068, %v4664_v5   ;;  %v1404_v3 = vmul.f32 1.442695, %v1383_v53  ;;  %v1382_v4 = vsub.f32 %v4655_v9, %v4664_v5  ;;  %v1406_v14 = vmul.f32 1.442695, %v1384_v58 }
 0x55e   : > { %v1351_v54 = vpop.xlane.xlu0 %1350 }
 0x55f   : > { %1908 = vst.msk [vmem:[#allocation3 + $0x40] sm:$0xff] %vm1634_vm1, %v4671_v12  ;;  %v4677_v17 = vmax.f32 %v4666_v15, %v1351_v54  ;;  %1463 = vperm.xlu0 %3069, %v4645_v63   ;;  %3100 = vpow2.f32 %v1404_v3  ;;  %v4729_v49 = vpop.eup %3094  ;;  %v1402_v63 = vmul.f32 1.442695, %v1382_v4 }
 0x560   : > { %v1353_v18 = vpop.xlane.xlu1 %1352  ;;  %3102 = vpow2.f32 %v1398_v7  ;;  %v4736_v5 = vpop.eup %3096 }
 0x561   : > { %1910 = vst.msk [vmem:[#allocation3 + $0x50] sm:$0xff] %vm1634_vm1, %v4677_v17  ;;  %v1373_v61 = vmax.f32 %v1325_v16, %v1353_v18  ;;  %1478 = vperm.xlu1 %3068, %v4677_v17   ;;  %3104 = vpow2.f32 %v1408_v8  ;;  %v1388_v54 = vsub.f32 %v4666_v15, %v4677_v17 }
 0x562   : > { %3106 = vpow2.f32 %v1402_v63 }
 0x563   : > { %1911 = vst.msk [vmem:[#allocation3 + $0x58] sm:$0xff] %vm1634_vm1, %v1373_v61  ;;  %v1355_v1 = vpop.xlane.xlu0 %1354  ;;  %v1389_v46 = vsub.f32 %v1325_v16, %v1373_v61  ;;  %v4741_v16 = vpop.eup %3098 }
 0x564   : > { %v1349_v22 = vpop.xlane.xlu1 %1348  ;;  %v4689_v23 = vmax.f32 %v4683_v2, %v1355_v1 }
 0x565   : > { %v1371_v24 = vmax.f32 %v4685_v20, %v1349_v22  ;;  %1468 = vperm.xlu1 %3068, %v4671_v12   ;;  %v1416_v10 = vmul.f32 1.442695, %v1389_v46 }
 0x566   : > { %1912 = vst.msk [vmem:[#allocation3 + $0x60] sm:$0xff] %vm1634_vm1, %v4689_v23  ;;  %v1390_v22 = vsub.f32 %v4683_v2, %v4689_v23 }
 0x567   : > { %1909 = vst.msk [vmem:[#allocation3 + $0x48] sm:$0xff] %vm1634_vm1, %v1371_v24  ;;  %v1359_v28 = vpop.xlane.xlu0 %1358  ;;  %v1387_v9 = vsub.f32 %v4685_v20, %v1371_v24  ;;  %3108 = vpow2.f32 %v1416_v10  ;;  %v1414_v20 = vmul.f32 1.442695, %v1388_v54 }
 0x568   : > { %v1361_v29 = vpop.xlane.xlu1 %1360  ;;  %v4703_v19 = vmax.f32 %v4693_v25, %v1359_v28  ;;  %3110 = vpow2.f32 %v1406_v14 }
 0x569   : > { %v4706_v26 = vmax.f32 %v4697_v27, %v1361_v29  ;;  %1483 = vperm.xlu1 %3068, %v1373_v61   ;;  %v1412_v62 = vmul.f32 1.442695, %v1387_v9  ;;  %v4744_v18 = vpop.eup %3100  ;;  %v1386_v61 = vsub.f32 %v4660_v13, %v4671_v12  ;;  %v1418_v12 = vmul.f32 1.442695, %v1390_v22 }
 0x56a   : > { %v1392_v50 = vsub.f32 %v4693_v25, %v4703_v19  ;;  %1914 = vst.msk [vmem:[#allocation3 + $0x70] sm:$0xff] %vm1634_vm1, %v4703_v19  ;;  %v4749_v1 = vpop.eup %3102 }
 0x56b   : > { %v1393_v48 = vsub.f32 %v4697_v27, %v4706_v26  ;;  %1915 = vst.msk [vmem:[#allocation3 + $0x78] sm:$0xff] %vm1634_vm1, %v4706_v26  ;;  %3112 = vpow2.f32 %v1412_v62  ;;  %v4752_v17 = vpop.eup %3104  ;;  %v1410_v21 = vmul.f32 1.442695, %v1386_v61 }
 0x56c   : > { %v1357_v55 = vpop.xlane.xlu1 %1356  ;;  %3114 = vpow2.f32 %v1414_v20 }
 0x56d   : > { %v1375_v57 = vmax.f32 %v1327_v51, %v1357_v55  ;;  %1473 = vperm.xlu1 %3068, %v1371_v24   ;;  %v4757_v24 = vpop.eup %3106 }
 0x56f   : > { %1913 = vst.msk [vmem:[#allocation3 + $0x68] sm:$0xff] %vm1634_vm1, %v1375_v57  ;;  %1493 = vperm.xlu0 %3069, %v1375_v57  }
 0x571   : > { %1458 = vperm.xlu1 %3068, %v4653_v6   ;;  %v1391_v6 = vsub.f32 %v1327_v51, %v1375_v57  ;;  %v4760_v13 = vpop.eup %3108 }
 0x572   : > { %v4763_v28 = vpop.eup %3110 }
 0x573   : > { %1503 = vperm.xlu0 %3069, %v4706_v26   ;;  %v1420_v15 = vmul.f32 1.442695, %v1391_v6 }
 0x575   : > { %1488 = vperm.xlu1 %3068, %v4689_v23   ;;  %3116 = vpow2.f32 %v1420_v15  ;;  %v4766_v11 = vpop.eup %3112 }
 0x576   : > { %3118 = vpow2.f32 %v1410_v21  ;;  %v4769_v2 = vpop.eup %3114 }
 0x577   : > { %1669 = vperm.xlu0 %3069, %v4729_v49   ;;  %3120 = vpow2.f32 %v1418_v12 }
 0x579   : > { %1498 = vperm.xlu1 %3068, %v4703_v19  }
 0x57b   : > { %1684 = vperm.xlu0 %3069, %v4736_v5  }
 0x57d   : > { %1674 = vperm.xlu1 %3068, %v4741_v16  }
 0x57f   : > { %1694 = vperm.xlu0 %3069, %v4744_v18   ;;  %v4772_v23 = vpop.eup %3116 }
 0x580   : > { %v4775_v0 = vpop.eup %3118 }
 0x581   : > { %1679 = vperm.xlu1 %3068, %v4749_v1   ;;  %v4778_v29 = vpop.eup %3120 }
 0x583   : > { %1704 = vperm.xlu0 %3069, %v4752_v17  }
 0x585   : > { %1689 = vperm.xlu1 %3068, %v4757_v24  }
 0x587   : > { %1724 = vperm.xlu0 %3069, %v4760_v13  }
 0x589   : > { %1699 = vperm.xlu1 %3068, %v4763_v28  }
 0x58b   : > { %1714 = vperm.xlu0 %3069, %v4766_v11  }
 0x58d   : > { %1719 = vperm.xlu1 %3068, %v4769_v2  }
 0x58f   : > { %1734 = vperm.xlu0 %3069, %v4772_v23  }
 0x591   : > { %1709 = vperm.xlu1 %3068, %v4775_v0  }
 0x595   : > { %1729 = vperm.xlu1 %3068, %v4778_v29  }
 0x5cc   : > { %v1439_v47 = vpop.permute.xlu1 %1438 }
 0x5cd   : > { %v1508_v51 = vsub.f32 %v4568_v30, %v1439_v47 }
 0x5cf   : > { %v1526_v52 = vmul.f32 1.442695, %v1508_v51 }
 0x5d0   : > { %v1429_v53 = vpop.permute.xlu0 %1428  ;;  %v1444_v55 = vpop.permute.xlu1 %1443 }
 0x5d1   : > { %3122 = vpow2.f32 %v1526_v52  ;;  %v1506_v57 = vsub.f32 %v4571_v31, %v1429_v53  ;;  %v1509_v56 = vsub.f32 %v4573_v32, %v1444_v55 }
 0x5d3   : > { %v1522_v59 = vmul.f32 1.442695, %v1506_v57  ;;  %v1528_v60 = vmul.f32 1.442695, %v1509_v56 }
 0x5d4   : > { %v1434_v3 = vpop.permute.xlu1 %1433 }
 0x5d5   : > { %3124 = vpow2.f32 %v1522_v59  ;;  %v1507_v7 = vsub.f32 %v4576_v33, %v1434_v3 }
 0x5d6   : > { %3126 = vpow2.f32 %v1528_v60 }
 0x5d7   : > { %v1524_v4 = vmul.f32 1.442695, %v1507_v7 }
 0x5d9   : > { %3128 = vpow2.f32 %v1524_v4 }
 0x5da   : > { %v1454_v8 = vpop.permute.xlu0 %1453 }
 0x5db   : > { %v3123_v46 = vpop.eup %3122  ;;  %v1511_v30 = vsub.f32 %v4587_v37, %v1454_v8 }
 0x5dc   : > { %1590 = vadd.xlane.f32.xlu0 %v3123_v46  ;;  %v1449_v58 = vpop.permute.xlu1 %1448 }
 0x5dd   : > { %v1532_v63 = vmul.f32 1.442695, %v1511_v30  ;;  %v1510_v31 = vsub.f32 %v4582_v35, %v1449_v58 }
 0x5de   : > { %v1464_v10 = vpop.permute.xlu0 %1463 }
 0x5df   : > { %v3125_v32 = vpop.eup %3124  ;;  %v1530_v9 = vmul.f32 1.442695, %v1510_v31  ;;  %v1513_v14 = vsub.f32 %v4584_v36, %v1464_v10  ;;  %3130 = vpow2.f32 %v1532_v63 }
 0x5e0   : > { %v3127_v54 = vpop.eup %3126  ;;  %1586 = vadd.xlane.f32.xlu1 %v3125_v32  ;;  %v1479_v33 = vpop.permute.xlu1 %1478 }
 0x5e1   : > { %3132 = vpow2.f32 %v1530_v9  ;;  %v1536_v62 = vmul.f32 1.442695, %v1513_v14  ;;  %v1764_v6 = vpack.c.bf16 %v3127_v54, %v3123_v46  ;;  %v1516_v37 = vsub.f32 %v4591_v38, %v1479_v33 }
 0x5e3   : > { %v3129_v61 = vpop.eup %3128  ;;  %3134 = vpow2.f32 %v1536_v62  ;;  %v1542_v15 = vmul.f32 1.442695, %v1516_v37  ;;  %v1422_v37 = vmul.f32 1.442695, %v1392_v50 }
 0x5e4   : > { %1592 = vadd.xlane.f32.xlu1 %v3127_v54  ;;  %1588 = vadd.xlane.f32.xlu0 %v3129_v61  ;;  %v1469_v20 = vpop.permute.xlu1 %1468  ;;  %v1763_v35 = vpack.c.bf16 %v3129_v61, %v3125_v32 }
 0x5e5   : > { %v1514_v36 = vsub.f32 %v4594_v39, %v1469_v20  ;;  %3136 = vpow2.f32 %v1542_v15  ;;  %v1424_v15 = vmul.f32 1.442695, %v1393_v48 }
 0x5e6   : > { %2736 = vmatprep.mubr.bf16.mxu0 %v1763_v35 }
 0x5e7   : > { %2737 = vmatmul.mubr.bf16.vlgmr.msra.gmra.mrb[32].mxu0 %v1764_v6  ;;  %v1538_v52 = vmul.f32 1.442695, %v1514_v36 }
 0x5e8   : > { %v1484_v21 = vpop.permute.xlu1 %1483 }
 0x5e9   : > { %v1517_v22 = vsub.f32 %v4596_v40, %v1484_v21  ;;  %v3131_v12 = vpop.eup %3130 }
 0x5eb   : > { %v3133_v47 = vpop.eup %3132  ;;  %v1544_v51 = vmul.f32 1.442695, %v1517_v22 }
 0x5ec   : > { %v1474_v53 = vpop.permute.xlu1 %1473  ;;  %v1765_v55 = vpack.c.bf16 %v3131_v12, %v3133_v47 }
 0x5ed   : > { %v3135_v38 = vpop.eup %3134  ;;  %3138 = vpow2.f32 %v1544_v51  ;;  %v1515_v57 = vsub.f32 %v4599_v41, %v1474_v53 }
 0x5ee   : > { %v1494_v56 = vpop.permute.xlu0 %1493  ;;  %1600 = vadd.xlane.f32.xlu1 %v3135_v38  ;;  %2740 = vmatprep.mubr.bf16.mxu0 %v1765_v55  ;;  %3140 = vpow2.f32 %v1538_v52  ;;  %v1556_v55 = vld [vmem:[#allocation4 + $0x10] sm:$0xff] }
 0x5ef   : > { %v1540_v59 = vmul.f32 1.442695, %v1515_v57  ;;  %v1519_v39 = vsub.f32 %v4611_v45, %v1494_v56  ;;  %v3137_v58 = vpop.eup %3136 }
 0x5f0   : > { %v1459_v60 = vpop.permute.xlu1 %1458 }
 0x5f1   : > { %3142 = vpow2.f32 %v1540_v59  ;;  %v1512_v40 = vsub.f32 %v4579_v34, %v1459_v60  ;;  %v1548_v8 = vmul.f32 1.442695, %v1519_v39  ;;  %v1554_v59 = vld [vmem:[#allocation4] sm:$0xff] }
 0x5f2   : > { %v1504_v3 = vpop.permute.xlu0 %1503  ;;  %1596 = vadd.xlane.f32.xlu1 %v3131_v12  ;;  %v1570_v60 = vmul.f32 %v4729_v49, %v1554_v59 }
 0x5f3   : > { %v1534_v7 = vmul.f32 1.442695, %v1512_v40  ;;  %v1521_v4 = vsub.f32 %v4607_v44, %v1504_v3  ;;  %v1555_v3 = vld [vmem:[#allocation4 + $0x8] sm:$0xff] }
 0x5f4   : > { %v1489_v46 = vpop.permute.xlu1 %1488 }
 0x5f5   : > { %3144 = vpow2.f32 %v1534_v7  ;;  %v1552_v41 = vmul.f32 1.442695, %v1521_v4  ;;  %v1518_v30 = vsub.f32 %v4605_v43, %v1489_v46  ;;  %v1557_v7 = vld [vmem:[#allocation4 + $0x18] sm:$0xff] }
 0x5f6   : > { %v4806_v25 = vpop.permute.xlu0 %1669  ;;  %v1573_v46 = vmul.f32 %v4736_v5, %v1557_v7 }
 0x5f7   : > { %v3139_v63 = vpop.eup %3138  ;;  %3146 = vpow2.f32 %v1552_v41  ;;  %v1546_v31 = vmul.f32 1.442695, %v1518_v30 }
 0x5f8   : > { %3148 = vpow2.f32 %v1548_v8  ;;  %1608 = vadd.xlane.f32.xlu1 %v3139_v63  ;;  %v1499_v45 = vpop.permute.xlu1 %1498  ;;  %v1768_v10 = vpack.c.bf16 %v3139_v63, %v3137_v58  ;;  %v3141_v32 = vpop.eup %3140  ;;  %v1571_v8 = vmul.f32 %v4741_v16, %v1555_v3  ;;  %v1561_v63 = vld [vmem:[#allocation4 + $0x38] sm:$0xff]  ;;  %v1562_v3 = vld [vmem:[#allocation4 + $0x40] sm:$0xff] }
 0x5f9   : > { %3150 = vpow2.f32 %v1546_v31  ;;  %v1520_v34 = vsub.f32 %v4603_v42, %v1499_v45  ;;  %v1577_v49 = vmul.f32 %v4752_v17, %v1561_v63  ;;  %v1559_v45 = vld [vmem:[#allocation4 + $0x28] sm:$0xff] }
 0x5fa   : > { %v4810_v50 = vpop.permute.xlu0 %1684  ;;  %v1575_v16 = vmul.f32 %v4744_v18, %v1559_v45  ;;  %v1652_v45 = vld [vmem:[#allocation5 + $0x8] sm:$0xff] }
 0x5fb   : > { %v3143_v9 = vpop.eup %3142  ;;  %v1550_v44 = vmul.f32 1.442695, %v1520_v34 }
 0x5fc   : > { %1604 = vadd.xlane.f32.xlu1 %v3143_v9  ;;  %v1767_v14 = vpack.c.bf16 %v3143_v9, %v3141_v32  ;;  %v4808_v19 = vpop.permute.xlu1 %1674 }
 0x5fd   : > { %3152 = vpow2.f32 %v1550_v44 }
 0x5fe   : > { %2744 = vmatprep.mubr.bf16.mxu1 %v1767_v14  ;;  %3154 = vpow2.f32 %v1422_v37  ;;  %v4814_v22 = vpop.permute.xlu0 %1694  ;;  %v1563_v14 = vld [vmem:[#allocation4 + $0x48] sm:$0xff] }
 0x5ff   : > { %v3145_v54 = vpop.eup %3144  ;;  %2745 = vmatmul.mubr.bf16.vlgmr.msra.gmra.mrb[16].mxu1 %v1768_v10  ;;  %3156 = vpow2.f32 %v1424_v15  ;;  %v1579_v17 = vmul.f32 %v4766_v11, %v1563_v14  ;;  %v1567_v15 = vld [vmem:[#allocation4 + $0x68] sm:$0xff] }
 0x600   : > { %1598 = vadd.xlane.f32.xlu0 %v3145_v54  ;;  %v1766_v43 = vpack.c.bf16 %v3135_v38, %v3145_v54  ;;  %v4812_v21 = vpop.permute.xlu1 %1679  ;;  %v1572_v38 = vmul.f32 %v4749_v1, %v1556_v55 }
 0x601   : > { %v3147_v33 = vpop.eup %3146 }
 0x602   : > { %v3149_v62 = vpop.eup %3148  ;;  %1616 = vadd.xlane.f32.xlu1 %v3147_v33  ;;  %2741 = vmatmul.mubr.bf16.gmra.mrb[36].mxu0 %v1766_v43 }
 0x603   : > { %v3151_v6 = vpop.eup %3150 }
 0x604   : > { %1594 = vadd.xlane.f32.xlu0 %v3133_v47  ;;  %v1769_v61 = vpack.c.bf16 %v3149_v62, %v3151_v6  ;;  %v4816_v12 = vpop.permute.xlu1 %1689  ;;  %v4818_v47 = vpop.permute.xlu0 %1704 }
 0x606   : > { %1612 = vadd.xlane.f32.xlu1 %v3149_v62  ;;  %2748 = vmatprep.mubr.bf16.mxu1 %v1769_v61 }
 0x607   : > { %v3153_v42 = vpop.eup %3152 }
 0x608   : > { %1606 = vadd.xlane.f32.xlu0 %v3137_v58  ;;  %v1770_v20 = vpack.c.bf16 %v3147_v33, %v3153_v42  ;;  %v4800_v35 = vpop.eup %3154  ;;  %v4820_v51 = vpop.permute.xlu1 %1699  ;;  %v1560_v33 = vld [vmem:[#allocation4 + $0x30] sm:$0xff] }
 0x609   : > { %v3157_v36 = vpop.eup %3156  ;;  %v4822_v27 = vpop.permute.xlu0 %1724  ;;  %v1576_v18 = vmul.f32 %v4763_v28, %v1560_v33  ;;  %v1662_v33 = vld [vmem:[#allocation5 + $0x58] sm:$0xff] }
 0x60a   : > { %2749 = vmatmul.mubr.bf16.gmra.mrb[20].mxu1 %v1770_v20 }
 0x60c   : > { %1602 = vadd.xlane.f32.xlu0 %v3141_v32  ;;  %v4824_v26 = vpop.permute.xlu1 %1719  ;;  %v1565_v32 = vld [vmem:[#allocation4 + $0x58] sm:$0xff] }
 0x60d   : > { %v4826_v48 = vpop.permute.xlu0 %1714  ;;  %v1581_v9 = vmul.f32 %v4760_v13, %v1565_v32 }
 0x610   : > { %1614 = vadd.xlane.f32.xlu0 %v3153_v42  ;;  %v4828_v52 = vpop.permute.xlu1 %1709  ;;  %v1558_v42 = vld [vmem:[#allocation4 + $0x20] sm:$0xff] }
 0x611   : > { %v4830_v53 = vpop.permute.xlu0 %1734 }
 0x614   : > { %1610 = vadd.xlane.f32.xlu0 %v3151_v6  ;;  %v4833_v57 = vpop.permute.xlu1 %1729  ;;  %v1569_v6 = vld [vmem:[#allocation4 + $0x78] sm:$0xff] }
 0x615   : > { %v1585_v20 = vmul.f32 %v3157_v36, %v1569_v6  ;;  %v1655_v6 = vld [vmem:[#allocation5 + $0x20] sm:$0xff] }
 0x617   : > { %1739 = vperm.xlu1 %3068, %v4800_v35  }
 0x62a   : > { %1744 = vperm.xlu0 %3069, %v3157_v36  }
 0x669   : > { %v1591_v56 = vpop.xlane.xlu0 %1590 }
 0x66a   : > { %v1620_v39 = vadd.f32 %v1591_v56, %v1572_v38  ;;  %v1574_v38 = vmul.f32 %v4757_v24, %v1558_v42  ;;  %v1564_v56 = vld [vmem:[#allocation4 + $0x50] sm:$0xff]  ;;  %v1578_v24 = vmul.f32 %v4775_v0, %v1562_v3  ;;  %v1651_v0 = vld [vmem:[#allocation5] sm:$0xff]  ;;  %v1758_v42 = vmul.f32 %v4822_v27, %v1662_v33 }
 0x66b   : > { %v1580_v36 = vmul.f32 %v4769_v2, %v1564_v56  ;;  %v1751_v56 = vmul.f32 %v4816_v12, %v1655_v6  ;;  %v1665_v12 = vld [vmem:[#allocation5 + $0x70] sm:$0xff] }
 0x66c   : > { %1637 = vst.msk [vmem:[#allocation4 + $0x10] sm:$0xff] %vm1634_vm1, %v1620_v39  ;;  %v1583_v39 = vmul.f32 %v4772_v23, %v1567_v15 }
 0x66d   : > { %v1587_v40 = vpop.xlane.xlu1 %1586 }
 0x66e   : > { %v1618_v4 = vadd.f32 %v1587_v40, %v1570_v60 }
 0x670   : > { %1635 = vst.msk [vmem:[#allocation4] sm:$0xff] %vm1634_vm1, %v1618_v4 }
 0x671   : > { %v1589_v1 = vpop.xlane.xlu0 %1588  ;;  %v1593_v41 = vpop.xlane.xlu1 %1592 }
 0x672   : > { %v1619_v30 = vadd.f32 %v1589_v1, %v1571_v8  ;;  %v1621_v58 = vadd.f32 %v1593_v41, %v1573_v46  ;;  %v1568_v8 = vld [vmem:[#allocation4 + $0x70] sm:$0xff]  ;;  %v1566_v41 = vld [vmem:[#allocation4 + $0x60] sm:$0xff] }
 0x673   : > { %v1584_v23 = vmul.f32 %v4800_v35, %v1568_v8  ;;  %v1582_v2 = vmul.f32 %v4778_v29, %v1566_v41 }
 0x674   : > { %1636 = vst.msk [vmem:[#allocation4 + $0x8] sm:$0xff] %vm1634_vm1, %v1619_v30  ;;  %1638 = vst.msk [vmem:[#allocation4 + $0x18] sm:$0xff] %vm1634_vm1, %v1621_v58 }
 0x67b   : > { %v1601_v31 = vpop.xlane.xlu1 %1600 }
 0x67c   : > { %v1625_v10 = vadd.f32 %v1601_v31, %v1577_v49  ;;  %v1653_v49 = vld [vmem:[#allocation5 + $0x10] sm:$0xff]  ;;  %v1654_v31 = vld [vmem:[#allocation5 + $0x18] sm:$0xff] }
 0x67e   : > { %1642 = vst.msk [vmem:[#allocation4 + $0x38] sm:$0xff] %vm1634_vm1, %v1625_v10  ;;  %v1749_v10 = vmul.f32 %v4812_v21, %v1653_v49  ;;  %v1659_v21 = vld [vmem:[#allocation5 + $0x40] sm:$0xff] }
 0x67f   : > { %v1597_v34 = vpop.xlane.xlu1 %1596 }
 0x680   : > { %v1623_v5 = vadd.f32 %v1597_v34, %v1575_v16  ;;  %v1747_v16 = vmul.f32 %v4806_v25, %v1651_v0  ;;  %v1750_v34 = vmul.f32 %v4810_v50, %v1654_v31  ;;  %v1657_v25 = vld [vmem:[#allocation5 + $0x30] sm:$0xff] }
 0x681   : > { %v1753_v15 = vmul.f32 %v4820_v51, %v1657_v25 }
 0x682   : > { %1640 = vst.msk [vmem:[#allocation4 + $0x28] sm:$0xff] %vm1634_vm1, %v1623_v5 }
 0x685   : > { %v1609_v44 = vpop.xlane.xlu1 %1608 }
 0x686   : > { %v1629_v54 = vadd.f32 %v1609_v44, %v1581_v9  ;;  %v1748_v9 = vmul.f32 %v4808_v19, %v1652_v45 }
 0x688   : > { %1646 = vst.msk [vmem:[#allocation4 + $0x58] sm:$0xff] %vm1634_vm1, %v1629_v54 }
 0x689   : > { %v1605_v43 = vpop.xlane.xlu1 %1604 }
 0x68a   : > { %v1627_v62 = vadd.f32 %v1605_v43, %v1579_v17  ;;  %v1661_v43 = vld [vmem:[#allocation5 + $0x50] sm:$0xff] }
 0x68b   : > { %v1757_v50 = vmul.f32 %v4824_v26, %v1661_v43  ;;  %v1941_v43 = vld [vmem:[#allocation4 + $0x28] sm:$0xff] (!%p2576_p4) }
 0x68c   : > { %1644 = vst.msk [vmem:[#allocation4 + $0x48] sm:$0xff] %vm1634_vm1, %v1627_v62  ;;  %v1660_v62 = vld [vmem:[#allocation5 + $0x48] sm:$0xff] }
 0x68d   : > { %v1599_v61 = vpop.xlane.xlu0 %1598 }
 0x68e   : > { %v1624_v37 = vadd.f32 %v1599_v61, %v1576_v18  ;;  %v1755_v18 = vmul.f32 %v4828_v52, %v1659_v21  ;;  %v1658_v61 = vld [vmem:[#allocation5 + $0x38] sm:$0xff] }
 0x68f   : > { %v1617_v13 = vpop.xlane.xlu1 %1616  ;;  %v1754_v52 = vmul.f32 %v4818_v47, %v1658_v61  ;;  %v1666_v47 = vld [vmem:[#allocation5 + $0x78] sm:$0xff]  ;;  %v3164_v61 = vld [vmem:[#allocation20 + $0x20] sm:$0xff] (!%p2576_p4)  }
 0x690   : > { %1641 = vst.msk [vmem:[#allocation4 + $0x30] sm:$0xff] %vm1634_vm1, %v1624_v37  ;;  %v1633_v55 = vadd.f32 %v1617_v13, %v1585_v20  ;;  %v1656_v13 = vld [vmem:[#allocation5 + $0x28] sm:$0xff] }
 0x691   : > { %v1595_v11 = vpop.xlane.xlu0 %1594 }
 0x692   : > { %1650 = vst.msk [vmem:[#allocation4 + $0x78] sm:$0xff] %vm1634_vm1, %v1633_v55  ;;  %v1622_v59 = vadd.f32 %v1595_v11, %v1574_v38  ;;  %v1756_v55 = vmul.f32 %v4826_v48, %v1660_v62  ;;  %v3163_v62 = vld [vmem:[#allocation20 + $0x18] sm:$0xff] (!%p2576_p4)  }
 0x693   : > { %v1613_v60 = vpop.xlane.xlu1 %1612 }
 0x694   : > { %1639 = vst.msk [vmem:[#allocation4 + $0x20] sm:$0xff] %vm1634_vm1, %v1622_v59  ;;  %v1631_v28 = vadd.f32 %v1613_v60, %v1583_v39 }
 0x695   : > { %v1607_v40 = vpop.xlane.xlu0 %1606 }
 0x696   : > { %1648 = vst.msk [vmem:[#allocation4 + $0x68] sm:$0xff] %vm1634_vm1, %v1631_v28  ;;  %v1628_v7 = vadd.f32 %v1607_v40, %v1580_v36  ;;  %v1752_v36 = vmul.f32 %v4814_v22, %v1656_v13 }
 0x698   : > { %1645 = vst.msk [vmem:[#allocation4 + $0x50] sm:$0xff] %vm1634_vm1, %v1628_v7  ;;  %v1740_v7 = vpop.permute.xlu1 %1739 }
 0x699   : > { %v1603_v4 = vpop.xlane.xlu0 %1602 }
 0x69a   : > { %v1626_v46 = vadd.f32 %v1603_v4, %v1578_v24  ;;  %v1663_v4 = vld [vmem:[#allocation5 + $0x60] sm:$0xff] }
 0x69b   : > { %v1759_v22 = vmul.f32 %v4833_v57, %v1663_v4  ;;  %v1936_v57 = vld [vmem:[#allocation4] sm:$0xff] (!%p2576_p4) }
 0x69c   : > { %1643 = vst.msk [vmem:[#allocation4 + $0x40] sm:$0xff] %vm1634_vm1, %v1626_v46  ;;  %v1664_v46 = vld [vmem:[#allocation5 + $0x68] sm:$0xff]  ;;  %v1940_v33 = vld [vmem:[#allocation4 + $0x20] sm:$0xff] (!%p2576_p4) }
 0x69d   : > { %v1615_v1 = vpop.xlane.xlu0 %1614 }
 0x69e   : > { %v1632_v30 = vadd.f32 %v1615_v1, %v1584_v23  ;;  %v1761_v23 = vmul.f32 %v1740_v7, %v1665_v12 }
 0x6a0   : > { %1649 = vst.msk [vmem:[#allocation4 + $0x70] sm:$0xff] %vm1634_vm1, %v1632_v30 }
 0x6a1   : > { %v1611_v58 = vpop.xlane.xlu0 %1610 }
 0x6a2   : > { %v1630_v63 = vadd.f32 %v1611_v58, %v1582_v2  ;;  %v1760_v58 = vmul.f32 %v4830_v53, %v1664_v46  ;;  %v1937_v53 = vld [vmem:[#allocation4 + $0x8] sm:$0xff] (!%p2576_p4) }
 0x6a4   : > { %1647 = vst.msk [vmem:[#allocation4 + $0x60] sm:$0xff] %vm1634_vm1, %v1630_v63 }
 0x6a9   : > { %v1745_v8 = vpop.permute.xlu0 %1744 }
 0x6aa   : > { %v1762_v41 = vmul.f32 %v1745_v8, %v1666_v47 }
 0x6ba   : > { %v2738_v35 = vpop.f32.mrb[32].mxu0 }
 0x6bb   : > { %v1870_v5 = vadd.f32 %v2738_v35, %v1749_v10  ;;  %v1805_v32 = vpop.f32.mrb[33].mxu0  ;;  %v1944_v10 = vld [vmem:[#allocation4 + $0x40] sm:$0xff] (!%p2576_p4)  ;;  %v3697_v35 = vmov (!%p2576_p4), 0  }
 0x6bc   : > { %v1868_v29 = vadd.f32 %v1805_v32, %v1747_v16  ;;  %v2739_v44 = vpop.f32.mrb[34].mxu0  ;;  %v1945_v16 = vld [vmem:[#allocation4 + $0x48] sm:$0xff] (!%p2576_p4)  ;;  %3159 = vset.pattern.permute.xlu1 (!%p2576_p4), %v3697_v35  ;;  %3158 = vset.pattern.permute.xlu0 (!%p2576_p4), %v3697_v35  ;;  %3168 = vrcp.f32 (!%p2576_p4), %v1944_v10 }
 0x6bd   : > { %1886 = vst [vmem:[#allocation5 + $0x10] sm:$0xff] %v1870_v5  ;;  %v1871_v14 = vadd.f32 %v2739_v44, %v1750_v34  ;;  %v1808_v54 = vpop.f32.mrb[35].mxu0  ;;  %3170 = vrcp.f32 (!%p2576_p4), %v1936_v57  ;;  %v1939_v34 = vld [vmem:[#allocation4 + $0x18] sm:$0xff] (!%p2576_p4)  ;;  %v1938_v5 = vld [vmem:[#allocation4 + $0x10] sm:$0xff] (!%p2576_p4)  ;;  %v3160_v32 = vld [vmem:[#allocation20] sm:$0xff] (!%p2576_p4)  }
 0x6be   : > { %1884 = vst [vmem:[#allocation5] sm:$0xff] %v1868_v29  ;;  %v1869_v17 = vadd.f32 %v1808_v54, %v1748_v9  ;;  %3172 = vrcp.f32 (!%p2576_p4), %v1945_v16  ;;  %v3161_v9 = vld [vmem:[#allocation20 + $0x8] sm:$0xff] (!%p2576_p4)   ;;  %v1947_v29 = vld [vmem:[#allocation4 + $0x58] sm:$0xff] (!%p2576_p4)  ;;  %2752 = vmatprep.subr.bf16.mxu0 (!%p2576_p4), %v3160_v32  ;;  %2816 = vmatprep.subr.bf16.mxu1 (!%p2576_p4), %v3160_v32 }
 0x6bf   : > { %1887 = vst [vmem:[#allocation5 + $0x18] sm:$0xff] %v1871_v14  ;;  %3174 = vrcp.f32 (!%p2576_p4), %v1937_v53  ;;  %v1946_v44 = vld [vmem:[#allocation4 + $0x50] sm:$0xff] (!%p2576_p4)  ;;  %2753 = vmatpush3.bf16.msra.mxu0 (!%p2576_p4), %v3160_v32  ;;  %2824 = vmatpush3.bf16.msra.mxu1 (!%p2576_p4), %v3160_v32  ;;  %v3162_v14 = vld [vmem:[#allocation20 + $0x10] sm:$0xff] (!%p2576_p4)  }
 0x6c0   : > { %1885 = vst [vmem:[#allocation5 + $0x8] sm:$0xff] %v1869_v17  ;;  %3176 = vrcp.f32 (!%p2576_p4), %v1939_v34  ;;  %2754 = vmatprep.subr.bf16.mxu0 (!%p2576_p4), %v3161_v9  ;;  %2817 = vmatprep.subr.bf16.mxu1 (!%p2576_p4), %v3161_v9 }
 0x6c1   : > { %3178 = vrcp.f32 (!%p2576_p4), %v1938_v5 }
 0x6c2   : > { %3180 = vrcp.f32 (!%p2576_p4), %v1947_v29 }
 0x6c3   : > { %3182 = vrcp.f32 (!%p2576_p4), %v1946_v44  ;;  %2755 = vmatpush3.bf16.msra.mxu0 (!%p2576_p4), %v3161_v9  ;;  %2825 = vmatpush3.bf16.msra.mxu1 (!%p2576_p4), %v3161_v9 }
 0x6c4   : > { %2756 = vmatprep.subr.bf16.mxu0 (!%p2576_p4), %v3162_v14  ;;  %3184 = vrcp.f32 (!%p2576_p4), %v1941_v43  ;;  %2818 = vmatprep.subr.bf16.mxu1 (!%p2576_p4), %v3162_v14 }
 0x6c5   : > { %3186 = vrcp.f32 (!%p2576_p4), %v1940_v33  ;;  %v1920_v12 = vld [vmem:[#allocation5] sm:$0xff] (!%p2576_p4) }
 0x6c6   : > { %v3169_v54 = vpop.eup (!%p2576_p4), %3168 }
 0x6c7   : > { %v3171_v17 = vpop.eup (!%p2576_p4), %3170  ;;  %2010 = vperm.xlu1 (!%p2576_p4), %3159, %v3169_v54   ;;  %2757 = vmatpush3.bf16.msra.mxu0 (!%p2576_p4), %v3162_v14  ;;  %v1921_v7 = vld [vmem:[#allocation5 + $0x8] sm:$0xff] (!%p2576_p4) }
 0x6c8   : > { %v3173_v21 = vpop.eup (!%p2576_p4), %3172  ;;  %1970 = vperm.xlu0 (!%p2576_p4), %3158, %v3171_v17   ;;  %2758 = vmatprep.subr.bf16.mxu0 (!%p2576_p4), %v3163_v62 }
 0x6c9   : > { %v3175_v25 = vpop.eup (!%p2576_p4), %3174  ;;  %2826 = vmatpush3.bf16.msra.mxu1 (!%p2576_p4), %v3162_v14 }
 0x6ca   : > { %v3177_v6 = vpop.eup (!%p2576_p4), %3176  ;;  %2819 = vmatprep.subr.bf16.mxu1 (!%p2576_p4), %v3163_v62 }
 0x6cb   : > { %2015 = vperm.xlu1 (!%p2576_p4), %3159, %v3173_v21   ;;  %2759 = vmatpush3.bf16.msra.mxu0 (!%p2576_p4), %v3163_v62 }
 0x6cc   : > { %1975 = vperm.xlu0 (!%p2576_p4), %3158, %v3175_v25   ;;  %2760 = vmatprep.subr.bf16.mxu0 (!%p2576_p4), %v3164_v61 }
 0x6cd   : > { %2827 = vmatpush3.bf16.msra.mxu1 (!%p2576_p4), %v3163_v62 }
 0x6ce   : > { %2820 = vmatprep.subr.bf16.mxu1 (!%p2576_p4), %v3164_v61 }
 0x6cf   : > { %1985 = vperm.xlu1 (!%p2576_p4), %3159, %v3177_v6   ;;  %2761 = vmatpush3.bf16.msra.mxu0 (!%p2576_p4), %v3164_v61 }
 0x6d1   : > { %2828 = vmatpush3.bf16.msra.mxu1 (!%p2576_p4), %v3164_v61 }
 0x6d2   : > { %v2746_v19 = vpop.f32.mrb[16].mxu1 }
 0x6d3   : > { %v1878_v37 = vadd.f32 %v2746_v19, %v1757_v50  ;;  %v1837_v20 = vpop.f32.mrb[17].mxu1  ;;  %v1949_v50 = vld [vmem:[#allocation4 + $0x68] sm:$0xff] (!%p2576_p4)  ;;  %v3179_v19 = vpop.eup (!%p2576_p4), %3178 }
 0x6d4   : > { %v1876_v38 = vadd.f32 %v1837_v20, %v1755_v18  ;;  %v2747_v11 = vpop.f32.mrb[18].mxu1  ;;  %v1948_v18 = vld [vmem:[#allocation4 + $0x60] sm:$0xff] (!%p2576_p4)  ;;  %3188 = vrcp.f32 (!%p2576_p4), %v1949_v50  ;;  %1980 = vperm.xlu0 (!%p2576_p4), %3158, %v3179_v19   ;;  %v1942_v20 = vld [vmem:[#allocation4 + $0x30] sm:$0xff] (!%p2576_p4) }
 0x6d5   : > { %1894 = vst [vmem:[#allocation5 + $0x50] sm:$0xff] %v1878_v37  ;;  %v1879_v26 = vadd.f32 %v2747_v11, %v1758_v42  ;;  %v2742_v59 = vpop.f32.mrb[36].mxu0  ;;  %v1840_v39 = vpop.f32.mrb[19].mxu1  ;;  %3190 = vrcp.f32 (!%p2576_p4), %v1948_v18  ;;  %v1943_v42 = vld [vmem:[#allocation4 + $0x38] sm:$0xff] (!%p2576_p4)  ;;  %v1950_v11 = vld [vmem:[#allocation4 + $0x70] sm:$0xff] (!%p2576_p4) }
 0x6d6   : > { %1892 = vst [vmem:[#allocation5 + $0x40] sm:$0xff] %v1876_v38  ;;  %v1874_v60 = vadd.f32 %v2742_v59, %v1753_v15  ;;  %v1877_v27 = vadd.f32 %v1840_v39, %v1756_v55  ;;  %v1821_v28 = vpop.f32.mrb[37].mxu0  ;;  %v3181_v37 = vpop.eup (!%p2576_p4), %3180  ;;  %v3165_v15 = vld [vmem:[#allocation20 + $0x28] sm:$0xff] (!%p2576_p4)   ;;  %3192 = vrcp.f32 (!%p2576_p4), %v1943_v42  ;;  %v1951_v55 = vld [vmem:[#allocation4 + $0x78] sm:$0xff] (!%p2576_p4) }
 0x6d7   : > { %1895 = vst [vmem:[#allocation5 + $0x58] sm:$0xff] %v1879_v26  ;;  %v1872_v51 = vadd.f32 %v1821_v28, %v1751_v56  ;;  %v2743_v40 = vpop.f32.mrb[38].mxu0  ;;  %v3183_v13 = vpop.eup (!%p2576_p4), %3182  ;;  %2025 = vperm.xlu1 (!%p2576_p4), %3159, %v3181_v37   ;;  %3194 = vrcp.f32 (!%p2576_p4), %v1942_v20  ;;  %2762 = vmatprep.subr.bf16.mxu0 (!%p2576_p4), %v3165_v15  ;;  %v3166_v26 = vld [vmem:[#allocation20 + $0x30] sm:$0xff] (!%p2576_p4)  }
 0x6d8   : > { %1890 = vst [vmem:[#allocation5 + $0x30] sm:$0xff] %v1874_v60  ;;  %1893 = vst [vmem:[#allocation5 + $0x48] sm:$0xff] %v1877_v27  ;;  %v1875_v48 = vadd.f32 %v2743_v40, %v1754_v52  ;;  %v1824_v3 = vpop.f32.mrb[39].mxu0  ;;  %v3185_v38 = vpop.eup (!%p2576_p4), %3184  ;;  %2020 = vperm.xlu0 (!%p2576_p4), %3158, %v3183_v13   ;;  %3196 = vrcp.f32 (!%p2576_p4), %v1951_v55  ;;  %2821 = vmatprep.subr.bf16.mxu1 (!%p2576_p4), %v3165_v15  ;;  %v3167_v52 = vld [vmem:[#allocation20 + $0x38] sm:$0xff] (!%p2576_p4)  }
 0x6d9   : > { %1888 = vst [vmem:[#allocation5 + $0x20] sm:$0xff] %v1872_v51  ;;  %v1873_v24 = vadd.f32 %v1824_v3, %v1752_v36  ;;  %v3187_v56 = vpop.eup (!%p2576_p4), %3186  ;;  %3198 = vrcp.f32 (!%p2576_p4), %v1950_v11  ;;  %2763 = vmatpush3.bf16.msra.mxu0 (!%p2576_p4), %v3165_v15  ;;  %2829 = vmatpush3.bf16.msra.mxu1 (!%p2576_p4), %v3165_v15 }
 0x6da   : > { %1891 = vst [vmem:[#allocation5 + $0x38] sm:$0xff] %v1875_v48  ;;  %2764 = vmatprep.subr.bf16.mxu0 (!%p2576_p4), %v3166_v26  ;;  %2822 = vmatprep.subr.bf16.mxu1 (!%p2576_p4), %v3166_v26 }
 0x6db   : > { %1889 = vst [vmem:[#allocation5 + $0x28] sm:$0xff] %v1873_v24  ;;  %1995 = vperm.xlu1 (!%p2576_p4), %3159, %v3185_v38  }
 0x6dc   : > { %1990 = vperm.xlu0 (!%p2576_p4), %3158, %v3187_v56  }
 0x6dd   : > { %v2750_v1 = vpop.f32.mrb[20].mxu1  ;;  %1919 = sbr.rel (%p2576_p4) target bundleno = 2120 (0x848), region = 108  ;;  %2765 = vmatpush3.bf16.msra.mxu0 (!%p2576_p4), %v3166_v26  ;;  %2830 = vmatpush3.bf16.msra.mxu1 (!%p2576_p4), %v3166_v26  ;;  %v1928_v48 = vld [vmem:[#allocation5 + $0x40] sm:$0xff] (!%p2576_p4)  ;;  %v4880_v26 = vld [vmem:[#allocation21] ss:$0 sm:$0xff] (!%p2576_p4) }
 0x6de   : > { %v1882_v30 = vadd.f32 %v2750_v1, %v1761_v23  ;;  %v1853_v2 = vpop.f32.mrb[21].mxu1  ;;  %v3189_v59 = vpop.eup (!%p2576_p4), %3188  ;;  %2766 = vmatprep.subr.bf16.mxu0 (!%p2576_p4), %v3167_v52  ;;  %2823 = vmatprep.subr.bf16.mxu1 (!%p2576_p4), %v3167_v52  ;;  %v1922_v1 = vld [vmem:[#allocation5 + $0x10] sm:$0xff] (!%p2576_p4) }
 0x6df   : > { %v1880_v63 = vadd.f32 %v1853_v2, %v1759_v22  ;;  %v2751_v49 = vpop.f32.mrb[22].mxu1  ;;  %v3191_v39 = vpop.eup (!%p2576_p4), %3190  ;;  %2035 = vperm.xlu1 (!%p2576_p4), %3159, %v3189_v59   ;;  %v1929_v3 = vld [vmem:[#allocation5 + $0x48] sm:$0xff] (!%p2576_p4)  ;;  %v1923_v22 = vld [vmem:[#allocation5 + $0x18] sm:$0xff] (!%p2576_p4)  ;;  %v1926_v50 = vld [vmem:[#allocation5 + $0x30] sm:$0xff] (!%p2576_p4) }
 0x6e0   : > { %1898 = vst [vmem:[#allocation5 + $0x70] sm:$0xff] %v1882_v30  ;;  %v1883_v0 = vadd.f32 %v2751_v49, %v1762_v41  ;;  %v1856_v31 = vpop.f32.mrb[23].mxu1  ;;  %v3193_v60 = vpop.eup (!%p2576_p4), %3192  ;;  %2030 = vperm.xlu0 (!%p2576_p4), %3158, %v3191_v39   ;;  %v1924_v34 = vld [vmem:[#allocation5 + $0x20] sm:$0xff] (!%p2576_p4)  ;;  %v2242_v39 = vld [vmem:[%s4295_s24 + $0x10] sm:$0xff] (!%p2576_p4) }
 0x6e1   : > { %1896 = vst [vmem:[#allocation5 + $0x60] sm:$0xff] %v1880_v63  ;;  %v1881_v45 = vadd.f32 %v1856_v31, %v1760_v58  ;;  %v3195_v27 = vpop.eup (!%p2576_p4), %3194  ;;  %2767 = vmatpush3.bf16.msra.mxu0 (!%p2576_p4), %v3167_v52  ;;  %2831 = vmatpush3.bf16.msra.mxu1 (!%p2576_p4), %v3167_v52  ;;  %v1930_v31 = vld [vmem:[#allocation5 + $0x50] sm:$0xff] (!%p2576_p4)  ;;  %v1927_v62 = vld [vmem:[#allocation5 + $0x38] sm:$0xff] (!%p2576_p4) }
 0x6e2   : > { %1899 = vst [vmem:[#allocation5 + $0x78] sm:$0xff] %v1883_v0  ;;  %v3197_v28 = vpop.eup (!%p2576_p4), %3196  ;;  %v1931_v0 = vld [vmem:[#allocation5 + $0x58] sm:$0xff] (!%p2576_p4)  ;;  %v1925_v53 = vld [vmem:[#allocation5 + $0x28] sm:$0xff] (!%p2576_p4) }
 0x6e3   : > { %1897 = vst [vmem:[#allocation5 + $0x68] sm:$0xff] %v1881_v45  ;;  %2005 = vperm.xlu1 (!%p2576_p4), %3159, %v3193_v60   ;;  %v3199_v36 = vpop.eup (!%p2576_p4), %3198 }
 0x6e4   : > { %2000 = vperm.xlu0 %3158, %v3195_v27   ;;  %v2240_v27 = vld [vmem:[%s4295_s24] sm:$0xff] }
 0x6e7   : > { %2045 = vperm.xlu1 %3159, %v3197_v28   ;;  %v1934_v20 = vld [vmem:[#allocation5 + $0x70] sm:$0xff] }
 0x6e8   : > { %2040 = vperm.xlu0 %3158, %v3199_v36   ;;  %v1932_v54 = vld [vmem:[#allocation5 + $0x60] sm:$0xff] }
 0x6e9   : > { %v1935_v37 = vld [vmem:[#allocation5 + $0x78] sm:$0xff] }
 0x6ea   : > { %v1933_v14 = vld [vmem:[#allocation5 + $0x68] sm:$0xff] }
 0x746   : > { %v2011_v51 = vpop.permute.xlu1 %2010 }
 0x747   : > { %v1971_v40 = vpop.permute.xlu0 %1970  ;;  %v2056_v4 = vmul.f32 %v2011_v51, %v1928_v48  ;;  %v2243_v51 = vld [vmem:[%s4295_s24 + $0x18] sm:$0xff] }
 0x748   : > { %v2048_v46 = vmul.f32 %v1971_v40, %v1920_v12  ;;  %v2241_v12 = vld [vmem:[%s4295_s24 + $0x8] sm:$0xff] }
 0x74a   : > { %v2016_v24 = vpop.permute.xlu1 %2015 }
 0x74b   : > { %v2057_v47 = vmul.f32 %v2016_v24, %v1929_v3  ;;  %v1976_v8 = vpop.permute.xlu0 %1975 }
 0x74c   : > { %v2049_v23 = vmul.f32 %v1976_v8, %v1921_v7 }
 0x74d   : > { %v2068_v41 = vpack.c.bf16 %v2057_v47, %v2056_v4  ;;  %v2250_v47 = vld [vmem:[%s4295_s24 + $0x50] sm:$0xff] }
 0x74e   : > { %v1986_v30 = vpop.permute.xlu1 %1985  ;;  %v2064_v2 = vpack.c.bf16 %v2049_v23, %v2048_v46 }
 0x74f   : > { %v2051_v58 = vmul.f32 %v1986_v30, %v1923_v22  ;;  %2776 = vmatprep.mubr.bf16.mxu1 %v2068_v41  ;;  %v2248_v22 = vld [vmem:[%s4295_s24 + $0x40] sm:$0xff] }
 0x750   : > { %2768 = vmatprep.mubr.bf16.mxu0 %v2064_v2  ;;  %v2251_v2 = vld [vmem:[%s4295_s24 + $0x58] sm:$0xff] }
 0x753   : > { %v1981_v63 = vpop.permute.xlu0 %1980 }
 0x754   : > { %v2050_v49 = vmul.f32 %v1981_v63, %v1922_v1 }
 0x756   : > { %v2065_v45 = vpack.c.bf16 %v2051_v58, %v2050_v49  ;;  %v2026_v10 = vpop.permute.xlu1 %2025 }
 0x757   : > { %v2059_v57 = vmul.f32 %v2026_v10, %v1931_v0  ;;  %v2021_v16 = vpop.permute.xlu0 %2020  ;;  %v2249_v0 = vld [vmem:[%s4295_s24 + $0x48] sm:$0xff] }
 0x758   : > { %v2058_v35 = vmul.f32 %v2021_v16, %v1930_v31  ;;  %2769 = vmatmul.mubr.bf16.vlgmr.msra.gmra.mrb[0].mxu0 %v2065_v45 }
 0x75a   : > { %v2069_v5 = vpack.c.bf16 %v2059_v57, %v2058_v35  ;;  %v1996_v32 = vpop.permute.xlu1 %1995  ;;  %v2246_v35 = vld [vmem:[%s4295_s24 + $0x30] sm:$0xff] }
 0x75b   : > { %v2053_v9 = vmul.f32 %v1996_v32, %v1925_v53  ;;  %v1991_v29 = vpop.permute.xlu0 %1990 }
 0x75c   : > { %v2052_v44 = vmul.f32 %v1991_v29, %v1924_v34  ;;  %2777 = vmatmul.mubr.bf16.vlgmr.msra.gmra.mrb[0].mxu1 %v2069_v5  ;;  %v2244_v5 = vld [vmem:[%s4295_s24 + $0x20] sm:$0xff]  ;;  %v2247_v29 = vld [vmem:[%s4295_s24 + $0x38] sm:$0xff] }
 0x75e   : > { %v2066_v17 = vpack.c.bf16 %v2053_v9, %v2052_v44  ;;  %v2036_v43 = vpop.permute.xlu1 %2035 }
 0x75f   : > { %v2061_v21 = vmul.f32 %v2036_v43, %v1933_v14  ;;  %v2031_v33 = vpop.permute.xlu0 %2030 }
 0x760   : > { %v2060_v25 = vmul.f32 %v2031_v33, %v1932_v54  ;;  %2772 = vmatprep.mubr.bf16.mxu0 %v2066_v17  ;;  %v2245_v17 = vld [vmem:[%s4295_s24 + $0x28] sm:$0xff] }
 0x762   : > { %v2070_v6 = vpack.c.bf16 %v2061_v21, %v2060_v25  ;;  %v2006_v18 = vpop.permute.xlu1 %2005  ;;  %v2254_v25 = vld [vmem:[%s4295_s24 + $0x70] sm:$0xff] }
 0x763   : > { %v2055_v19 = vmul.f32 %v2006_v18, %v1927_v62  ;;  %v2001_v61 = vpop.permute.xlu0 %2000  ;;  %v2252_v18 = vld [vmem:[%s4295_s24 + $0x60] sm:$0xff] }
 0x764   : > { %v2054_v42 = vmul.f32 %v2001_v61, %v1926_v50  ;;  %2780 = vmatprep.mubr.bf16.mxu1 %v2070_v6 }
 0x766   : > { %v2067_v13 = vpack.c.bf16 %v2055_v19, %v2054_v42  ;;  %v2046_v15 = vpop.permute.xlu1 %2045 }
 0x767   : > { %v2063_v55 = vmul.f32 %v2046_v15, %v1935_v37  ;;  %v2041_v38 = vpop.permute.xlu0 %2040  ;;  %v2255_v37 = vld [vmem:[%s4295_s24 + $0x78] sm:$0xff] }
 0x768   : > { %v2062_v11 = vmul.f32 %v2041_v38, %v1934_v20  ;;  %2773 = vmatmul.mubr.bf16.gmra.mrb[4].mxu0 %v2067_v13 }
 0x76a   : > { %v2071_v56 = vpack.c.bf16 %v2063_v55, %v2062_v11  ;;  %v2253_v55 = vld [vmem:[%s4295_s24 + $0x68] sm:$0xff] }
 0x76c   : > { %2781 = vmatmul.mubr.bf16.gmra.mrb[4].mxu1 %v2071_v56 }
 0x82b   : > { %v2770_v59 = vpop.f32.mrb[0].mxu0 }
 0x82c   : > { %v2186_v52 = vadd.f32 %v2770_v59, %v4880_v26  ;;  %v2177_v60 = vpop.f32.mrb[1].mxu0 }
 0x82d   : > { %v2178_v28 = vadd.f32 %v4880_v26, %v2177_v60  ;;  %v2771_v36 = vpop.f32.mrb[2].mxu0 }
 0x82e   : > { %v2258_v40 = vadd.f32 %v2242_v39, %v2186_v52  ;;  %v2189_v48 = vadd.f32 %v2771_v36, %v4880_v26  ;;  %v2180_v3 = vpop.f32.mrb[3].mxu0 }
 0x82f   : > { %v2256_v7 = vadd.f32 %v2240_v27, %v2178_v28  ;;  %v2181_v24 = vadd.f32 %v4880_v26, %v2180_v3  ;;  %v2778_v4 = vpop.f32.mrb[0].mxu1 }
 0x830   : > { %2274 = vst [vmem:[%s4340_s16 + $0x10] sm:$0xff] %v2258_v40  ;;  %v2259_v8 = vadd.f32 %v2243_v51, %v2189_v48  ;;  %v2218_v46 = vadd.f32 %v2778_v4, %v4880_v26  ;;  %v2209_v23 = vpop.f32.mrb[1].mxu1 }
 0x831   : > { %2272 = vst [vmem:[%s4340_s16] sm:$0xff] %v2256_v7  ;;  %v2257_v1 = vadd.f32 %v2241_v12, %v2181_v24  ;;  %v2210_v41 = vadd.f32 %v4880_v26, %v2209_v23  ;;  %v2779_v30 = vpop.f32.mrb[2].mxu1 }
 0x832   : > { %2275 = vst [vmem:[%s4340_s16 + $0x18] sm:$0xff] %v2259_v8  ;;  %v2266_v58 = vadd.f32 %v2250_v47, %v2218_v46  ;;  %v2221_v63 = vadd.f32 %v2779_v30, %v4880_v26  ;;  %v2212_v49 = vpop.f32.mrb[3].mxu1 }
 0x833   : > { %2273 = vst [vmem:[%s4340_s16 + $0x8] sm:$0xff] %v2257_v1  ;;  %v2264_v31 = vadd.f32 %v2248_v22, %v2210_v41  ;;  %v2213_v45 = vadd.f32 %v4880_v26, %v2212_v49 }
 0x834   : > { %2282 = vst [vmem:[%s4340_s16 + $0x50] sm:$0xff] %v2266_v58  ;;  %v2267_v10 = vadd.f32 %v2251_v2, %v2221_v63 }
 0x835   : > { %2280 = vst [vmem:[%s4340_s16 + $0x40] sm:$0xff] %v2264_v31  ;;  %v2265_v57 = vadd.f32 %v2249_v0, %v2213_v45 }
 0x836   : > { %2283 = vst [vmem:[%s4340_s16 + $0x58] sm:$0xff] %v2267_v10 }
 0x837   : > { %2281 = vst [vmem:[%s4340_s16 + $0x48] sm:$0xff] %v2265_v57 }
 0x83b   : > { %v2774_v16 = vpop.f32.mrb[4].mxu0 }
 0x83c   : > { %v2202_v53 = vadd.f32 %v2774_v16, %v4880_v26  ;;  %v2193_v34 = vpop.f32.mrb[5].mxu0 }
 0x83d   : > { %v2194_v32 = vadd.f32 %v4880_v26, %v2193_v34  ;;  %v2775_v9 = vpop.f32.mrb[6].mxu0 }
 0x83e   : > { %v2262_v44 = vadd.f32 %v2246_v35, %v2202_v53  ;;  %v2205_v14 = vadd.f32 %v2775_v9, %v4880_v26  ;;  %v2196_v54 = vpop.f32.mrb[7].mxu0 }
 0x83f   : > { %v2260_v43 = vadd.f32 %v2244_v5, %v2194_v32  ;;  %v2197_v21 = vadd.f32 %v4880_v26, %v2196_v54  ;;  %v2782_v33 = vpop.f32.mrb[4].mxu1 }
 0x840   : > { %2278 = vst [vmem:[%s4340_s16 + $0x30] sm:$0xff] %v2262_v44  ;;  %v2263_v62 = vadd.f32 %v2247_v29, %v2205_v14  ;;  %v2234_v50 = vadd.f32 %v2782_v33, %v4880_v26  ;;  %v2225_v6 = vpop.f32.mrb[5].mxu1 }
 0x841   : > { %2276 = vst [vmem:[%s4340_s16 + $0x20] sm:$0xff] %v2260_v43  ;;  %v2261_v19 = vadd.f32 %v2245_v17, %v2197_v21  ;;  %v2226_v61 = vadd.f32 %v4880_v26, %v2225_v6  ;;  %v2783_v42 = vpop.f32.mrb[6].mxu1 }
 0x842   : > { %2279 = vst [vmem:[%s4340_s16 + $0x38] sm:$0xff] %v2263_v62  ;;  %v2270_v20 = vadd.f32 %v2254_v25, %v2234_v50  ;;  %v2237_v13 = vadd.f32 %v2783_v42, %v4880_v26  ;;  %v2228_v15 = vpop.f32.mrb[7].mxu1 }
 0x843   : > { %2277 = vst [vmem:[%s4340_s16 + $0x28] sm:$0xff] %v2261_v19  ;;  %v2268_v38 = vadd.f32 %v2252_v18, %v2226_v61  ;;  %v2229_v11 = vadd.f32 %v4880_v26, %v2228_v15 }
 0x844   : > { %2286 = vst [vmem:[%s4340_s16 + $0x70] sm:$0xff] %v2270_v20  ;;  %v2271_v56 = vadd.f32 %v2255_v37, %v2237_v13 }
 0x845   : > { %2284 = vst [vmem:[%s4340_s16 + $0x60] sm:$0xff] %v2268_v38  ;;  %v2269_v59 = vadd.f32 %v2253_v55, %v2229_v11 }
 0x846   : > { %2287 = vst [vmem:[%s4340_s16 + $0x78] sm:$0xff] %v2271_v56 }
 0x847   : > { %2285 = vst [vmem:[%s4340_s16 + $0x68] sm:$0xff] %v2269_v59 }
 0x848 PF: > { %s5161_s6 = sld [smem:[#allocation40_spill]]  ;;  %s5162_s13 = sld [smem:[#allocation41_spill]] }
 0x849   : > { %s5163_s26 = sld [smem:[#allocation46_spill]]  ;;  %s2304_s14 = sshll.u32 %s4340_s16, 4  ;;  %s4933_s14 = int_to_ptr.vmem [resolvable:$true] %s2304_s14 }
 0x84a   : > { %s5164_s3 = sld [smem:[#allocation59_spill]]  ;;  %s2289_s23 = scalar_lea.sflag [#allocation8], %s4289_s21 }
 0x84b   : > { %s3488_s11 = scalar_lea.vmem %s4933_s14, 2048  ;;  %s3698_s7 = smov [#allocation23]  }
 0x84c   : > { %p3489_p10 = scmp.ne.s32.totalorder %s4933_s14, %s3488_s11  ;;  %s3492_s16 = sshll.u32 %s3698_s7, 4  ;;  %s3493_s16 = int_to_ptr.vmem [resolvable:$false] %s3492_s16 }
 0x84d   : > { %s3494_s19 = scalar_lea.vmem %s3493_s16, 4096  ;;  %p3495_p7 = scmp.lt.s32.totalorder %s4933_s14, %s3493_s16 }
 0x84e   : > { %s2587_s8 = sshll.u32 %s5161_s6, 4  ;;  %s2588_s30 = sshll.u32 %s5162_s13, 5 }
 0x84f   : > { %s2301_s24 = sadd.s32 %s2588_s30, %s2587_s8  ;;  %p5165_p6 = scmp.ne.s32.totalorder %s5163_s26, 0 }
 0x850   : > { %s2589_s2 = sshll.u32 %s2301_s24, 7  ;;  %p3496_p1 = scmp.lt.s32.totalorder %s3494_s19, %s3488_s11 }
 0x851   : > { %s4938_s22 = scalar_lea.hbm %s5164_s3, %s2589_s2  ;;  %p3490_p3 = pnand %p3489_p10, %p5165_p6 }
 0x852   : > { %p3497_p9 = por %p3496_p1, %p3495_p7 }
 0x853   : > { %p3491_p13 = pneg %p3490_p3 }
 0x855   : > { %p3498_p8 = pnand %p3497_p9, %p3491_p13 }
 0x857   : > { %3501 = shalt.err (!%p3498_p8)
}
 0x858   : > { %s3502_s29 = scalar_lea.hbm %s4938_s22, 2048  ;;  %s3506_s8 = scalar_lea.hbm %s5164_s3, 8192 }
 0x859   : > { %p3503_p0 = scmp.ne.s32.totalorder %s4938_s22, %s3502_s29  ;;  %p3507_p5 = scmp.lt.u32.totalorder %s4938_s22, %s5164_s3 }
 0x85a   : > { %p3508_p2 = scmp.lt.u32.totalorder %s3506_s8, %s3502_s29  ;;  %p3510_p10 = scmp.lt.u32.totalorder %s3502_s29, %s4938_s22 }
 0x85b   : > { %p3504_p12 = pnand %p3503_p0, %p5165_p6 }
 0x85c   : > { %p3509_p4 = por %p3508_p2, %p3507_p5 }
 0x85d   : > { %p3505_p11 = pneg %p3504_p12 }
 0x85e   : > { %p3511_p3 = por %p3510_p10, %p3509_p4 }
 0x860   : > { %p3512_p13 = pnand %p3511_p3, %p3505_p11 }
 0x862   : > { %3515 = shalt.err (!%p3512_p13)
}
 0x863   : > { %s3699_s2 = smov 128   ;;  %s3700_s10 = smov 8  }
 0x864   : > { %2864 = dma.vmem_to_hbm [thread:$0]  (%p5165_p6), %s4933_s14, 2048, %s4938_s22, %s2289_s23, %s3699_s2, %s3699_s2, %s3700_s10  }
 0x865 PF: > { %s5166_s5 = sld [smem:[#allocation36_spill]]  ;;  %s5167_s11 = sld [smem:[#allocation48_spill]] }
 0x866   : > { %p2915_p7 = scmp.ge.s32.totalorder %s3678_s28, 2 }
 0x86b   : > { %s2319_s7 = sand.u32 1, %s5166_s5   ;;  %p5168_p1 = scmp.ne.s32.totalorder %s5167_s11, 0 }
 0x86c   : > { %s2320_s16 = scalar_lea.sflag [#allocation8], %s2319_s7 }
 0x86d   : > { %p2899_p9 = pnand %p2915_p7, %p5168_p1 }
 0x86f   : > { %3613 = dma.done.wait (!%p2899_p9), %s2320_s16, 2048  }
 0x870   : > { %3615 = vsyncadd (!%p2899_p9), %s2320_s16, 4294965248  ;;  %s35_s28 = sadd.s32 1, %s3678_s28   ;;  %s5170_s13 = sld [smem:[#allocation34_spill]] }
 0x871   : > { %p4969_p8 = scmp.ge.s32.totalorder %s35_s28, 10   ;;  %s5171_s14 = sld [smem:[#allocation35_spill]] }
 0x872   : > { %s5172_s21 = smov %s4152_s15  ;;  %s5173_s26 = sld [smem:[#allocation37_spill]] }
 0x873   : > { %s5174_s22 = sld [smem:[#allocation38_spill]]  ;;  %s5175_s23 = sld [smem:[#allocation42_spill]] }
 0x874   : > { %s5176_s29 = smov %s5193_s20  ;;  %s5177_s6 = sld [smem:[#allocation45_spill]] }
 0x875   : > { %s5178_s8 = sld [smem:[#allocation47_spill]]  ;;  %s5180_s15 = smov %s4207_s9 }
 0x876   : > { %s5181_s16 = smov %s3634_s17  ;;  %s5182_s17 = smov %s3638_s18 }
 0x877   : > { %s5183_s18 = smov %s5172_s21  ;;  %s5186_s21 = smov %s5203_s12 }
 0x878   : > { %s5184_s19 = smov %s5173_s26  ;;  %s5188_s24 = smov %s3674_s27 }
 0x879   : > { %s5185_s20 = smov %s5174_s22  ;;  %s5187_s22 = smov %s3666_s25 }
 0x87a   : > { %s5189_s25 = smov %s5176_s29  ;;  %s5190_s26 = smov %s5177_s6 }
 0x87b   : > { %s5191_s27 = smov %s5178_s8  ;;  %34 = sbr.rel (!%p4969_p8) target bundleno = 30 (0x1e), region = 174 }
 0x882   :  { %2325 = vsyncpa [#allocation7], 1 }
 0x883   :  { %2327 = vsyncpa [#allocation7 + $0x1], 1 }
 0x884   :  { %2328 = vsyncpa [#allocation10], 1 }
 0x885   :  { %2330 = vsyncpa [#allocation10 + $0x1], 1 }
 0x886   :  { %2331 = vsyncpa [#allocation13], 1 }
 0x887   :  { %2333 = vsyncpa [#allocation13 + $0x1], 1 }
 0x888   :  { %2334 = vsyncpa [#allocation16], 1 }
 0x889   :  { %2335 = vsyncpa [#allocation19], 1 }
 0x88a   :  { %2336 = vsyncpa [#allocation22], 1 }
 0x88b   :  { %2337 = vsyncpa [#allocation8], 1 }
 0x88c   :  { %2339 = vsyncpa [#allocation8 + $0x1], 1 }

</bundles_post_ra>
